<compile_context>
chip_gen: v5e
topology: v5e:2x2
jax: 0.10.0
libtpu: 0.0.40
codegen_flags: <defaults>
</compile_context>

<pallas_src>
import functools

import jax
import jax.numpy as jnp
from jax import lax
from jax.experimental import pallas as pl
from jax.experimental.pallas import tpu as pltpu


def _round_up(x: int, m: int) -> int:
    return (x + m - 1) // m * m


def _fixed_point(step, Xs0, BUs, n_chunks, K, tol):
    """Chunked while_loop: one convergence check (cross-lane max + scalar sync)
    per K iterations.  Xs0/BUs are tuples of independent batch sub-tiles; the
    sub-chains are data-independent so the scheduler can overlap them."""

    def one_round(Xs):
        return tuple(step(x, bu) for x, bu in zip(Xs, BUs))

    def cond(c):
        _, it, err = c
        return jnp.logical_and(it < n_chunks, err >= tol)

    def body(c):
        Xs, it, _ = c
        for _ in range(K - 1):           # K-1 unchecked iterations (static unroll)
            Xs = one_round(Xs)
        Xn = one_round(Xs)               # checked iteration
        err = functools.reduce(
            jnp.maximum, [jnp.max(jnp.abs(a - b)) for a, b in zip(Xn, Xs)])
        return Xn, it + 1, err

    Xs, _, _ = lax.while_loop(
        cond, body,
        (Xs0, jnp.asarray(0, jnp.int32), jnp.asarray(jnp.inf, jnp.float32)))
    return Xs


def _implicit_kernel(*refs, mitr, tol, check_every, use_bf16, split_chain):
    """Per-batch-tile kernel.  All weights are VMEM-resident (constant block).

    refs (use_bf16=True):  a32(n,n), abf(n,n), bt(p,n), ct(n,q), dt(p,q),
                           u(tm,p), y(tm,q)
    refs (use_bf16=False): a32, bt, ct, dt, u, y
    """
    if use_bf16:
        a32_ref, abf_ref, bt_ref, ct_ref, dt_ref, u_ref, y_ref = refs
    else:
        a32_ref, bt_ref, ct_ref, dt_ref, u_ref, y_ref = refs
        abf_ref = None

    A32 = a32_ref[...]                                         # projected A^T, f32
    U = u_ref[...].astype(jnp.float32)                         # (tm, p)
    BU = jnp.dot(U, bt_ref[...], preferred_element_type=jnp.float32)  # (tm, n)

    tm = BU.shape[0]
    half = tm // 2
    bounds = ((0, half), (half, tm)) if split_chain else ((0, tm),)
    BUs = tuple(BU[lo:hi] for lo, hi in bounds)
    Us = tuple(U[lo:hi] for lo, hi in bounds)
    Xs = tuple(jnp.zeros_like(bu) for bu in BUs)               # X0 = 0

    K = check_every
    # ceil-chunking: may over-run by < K iterations past mitr / convergence;
    # benign for the contractive fixed point (only moves X closer to X*).
    n_chunks = pl.cdiv(mitr, K)

    def step_f32(x, bu):
        return jnp.maximum(
            jnp.dot(x, A32, preferred_element_type=jnp.float32) + bu, 0.0)

    if use_bf16:
        Abf = abf_ref[...]                                     # pre-cast in wrapper

        def step_bf16(x, bu):
            return jnp.maximum(
                jnp.dot(x.astype(jnp.bfloat16), Abf,
                        preferred_element_type=jnp.float32) + bu, 0.0)

        # bf16 products floor the residual around ~2^-8 * |X|; stop the bf16
        # bulk phase there, then a short f32 phase drives the residual to the
        # true `tol` (same fixed point as the f32/PyTorch reference).
        bf16_tol = jnp.maximum(jnp.float32(tol),
                               jnp.float32(2.0 ** -6) * jnp.max(jnp.abs(BU)))
        Xs = _fixed_point(step_bf16, Xs, BUs, n_chunks, K, bf16_tol)
        Xs = _fixed_point(step_f32, Xs, BUs, n_chunks, K, jnp.float32(tol))
    else:
        Xs = _fixed_point(step_f32, Xs, BUs, n_chunks, K, jnp.float32(tol))

    # Y = X @ C^T + U @ D^T   (batch-first), written half-tile by half-tile.
    Ct = ct_ref[...]
    Dt = dt_ref[...]
    for (lo, hi), Xh, Uh in zip(bounds, Xs, Us):
        Yh = (jnp.dot(Xh, Ct, preferred_element_type=jnp.float32)
              + jnp.dot(Uh, Dt, preferred_element_type=jnp.float32))
        y_ref[lo:hi, :] = Yh.astype(y_ref.dtype)


def implicit_model_forward(U, A, B, C, D, *, kappa=0.99, mitr=300, tol=3e-6,
                           tile_m=None, use_bf16_matmul=True):
    """U: (batch, input_dim) -> (batch, output_dim)."""
    m, p = U.shape
    n = A.shape[0]
    q = C.shape[0]

    # Lane-dense padding (last dims -> multiples of 128).
    n_pad = _round_up(n, 128)
    p_pad = _round_up(p, 128)
    q_pad = _round_up(q, 128)

    # ---- device introspection ---------------------------------------------
    vmem_cap = 128 << 20
    try:
        info = pltpu.get_tpu_info()
        vmem_cap = int(getattr(info, "vmem_capacity_bytes", vmem_cap))
    except Exception:
        pass
    kind = ""
    try:
        kind = jax.devices()[0].device_kind.lower()
    except Exception:
        pass
    # v7x-like: 2 TensorCores / 64 MiB VMEM per TC.  Detect via either signal.
    dual_core = ("v7" in kind) or (vmem_cap <= (64 << 20))
    # Leave headroom for Mosaic internal scratch/semaphores: ~52 MiB on 64 MiB
    # chips, ~105 MiB on 128 MiB chips.
    vmem_usable = int(vmem_cap * 0.82)

    # ---- batch tiling -------------------------------------------------------
    if tile_m is None:
        if dual_core:
            # >= 2 "parallel" grid steps so both TensorCores get work.
            tile_m = min(_round_up(int(pl.cdiv(m, 2)), 8), 512)
        else:
            # Single TC: bigger tiles amortize per-step + per-iteration overhead.
            tile_m = min(_round_up(m, 16), 1024)
    tile_m = max(8, _round_up(int(tile_m), 8))

    weight_bytes_1buf = (4 * n_pad * n_pad
                         + (2 * n_pad * n_pad if use_bf16_matmul else 0)
                         + 4 * (p_pad * n_pad + n_pad * q_pad + p_pad * q_pad))

    def _vmem_needed(tm, weight_buffers):
        io = 2 * 4 * tm * (p_pad + q_pad)                 # double-buffered U/Y tiles
        work = tm * n_pad * (4 + 3 * 4 + (2 if use_bf16_matmul else 0))  # BU + live X copies + bf16 cast
        work += 4 * tm * (p_pad + q_pad)                  # f32 U copy + Y temp
        return weight_buffers * weight_bytes_1buf + io + work + (4 << 20)

    # Shrink the batch tile (never the resident weights) if it would not fit.
    while tile_m > 8 and _vmem_needed(tile_m, 1) > vmem_usable:
        tile_m = max(8, _round_up(tile_m // 2, 8))
    # TODO(synk): if the resident weights alone exceed VMEM (very large
    # hidden_dim), the A contraction would need K-tiling / weight streaming;
    # not implemented here.

    m_pad = _round_up(max(m, tile_m), tile_m)
    grid = (m_pad // tile_m,)
    split_chain = (tile_m % 16 == 0) and tile_m >= 16

    # ---- host-side weight prep (projection, transpose, pad, cast) ----------
    f32 = jnp.float32
    Af = A.astype(f32)
    row_l1 = jnp.sum(jnp.abs(Af), axis=1, keepdims=True)       # (n, 1)
    A_proj = Af * (kappa / jnp.maximum(row_l1, kappa))          # row-wise L1 rescale
    At32 = jnp.zeros((n_pad, n_pad), f32).at[:n, :n].set(A_proj.T)   # (A_proj)^T
    Atbf = At32.astype(jnp.bfloat16)
    Bt = jnp.zeros((p_pad, n_pad), f32).at[:p, :n].set(B.T.astype(f32))
    Ct = jnp.zeros((n_pad, q_pad), f32).at[:n, :q].set(C.T.astype(f32))
    Dt = jnp.zeros((p_pad, q_pad), f32).at[:p, :q].set(D.T.astype(f32))
    Up = jnp.zeros((m_pad, p_pad), f32).at[:m, :p].set(U.astype(f32))

    check_every = min(12, max(1, int(mitr)))
    kernel = functools.partial(
        _implicit_kernel, mitr=int(mitr), tol=float(tol),
        check_every=check_every, use_bf16=use_bf16_matmul,
        split_chain=split_chain)

    # Advisory cost hint (the while_loop hides the true cost from XLA).
    flops = (2 * m_pad * n_pad * n_pad * int(mitr)
             + 2 * m_pad * n_pad * (p_pad + q_pad)
             + 2 * m_pad * p_pad * q_pad)
    bytes_accessed = weight_bytes_1buf + 4 * m_pad * (p_pad + q_pad)
    cost = pl.CostEstimate(flops=flops, transcendentals=0,
                           bytes_accessed=bytes_accessed)

    weight_shapes = ([(n_pad, n_pad)]
                     + ([(n_pad, n_pad)] if use_bf16_matmul else [])
                     + [(p_pad, n_pad), (n_pad, q_pad), (p_pad, q_pad)])
    weight_args = ([At32] + ([Atbf] if use_bf16_matmul else []) + [Bt, Ct, Dt])

    def _run(single_buffer_weights):
        def w_spec(shape):
            if single_buffer_weights:
                # Constant index_map -> no re-DMA across grid steps; a single
                # buffer halves resident weight VMEM (key on 64 MiB chips).
                return pl.BlockSpec(shape, lambda i: (0, 0),
                                    pipeline_mode=pl.Buffered(1))
            return pl.BlockSpec(shape, lambda i: (0, 0))

        n_weight_bufs = 1 if single_buffer_weights else 2
        vmem_limit = int(min(max(_vmem_needed(tile_m, n_weight_bufs), 32 << 20),
                             vmem_usable))
        in_specs = [w_spec(s) for s in weight_shapes] + [
            pl.BlockSpec((tile_m, p_pad), lambda i: (i, 0))]     # U batch tile
        return pl.pallas_call(
            kernel,
            out_shape=jax.ShapeDtypeStruct((m_pad, q_pad), jnp.float32),
            grid_spec=pltpu.PrefetchScalarGridSpec(
                num_scalar_prefetch=0,
                grid=grid,
                in_specs=in_specs,
                out_specs=pl.BlockSpec((tile_m, q_pad), lambda i: (i, 0)),
            ),
            compiler_params=pltpu.CompilerParams(
                dimension_semantics=("parallel",),
                vmem_limit_bytes=vmem_limit),
            cost_estimate=cost,
        )(*weight_args, Up)

    try:
        Yp = jax.block_until_ready(_run(True))
    except Exception:
        # pipeline_mode=pl.Buffered(1) unsupported on this jax/Mosaic version:
        # fall back to default double-buffered weight specs (still correct).
        Yp = _run(False)

    return Yp[:m, :q]


def _reference_forward(U, A, B, C, D, *, kappa=0.99, mitr=300, tol=3e-6):
    """Pure-JAX reference in the original (feature, batch) layout."""
    row_l1 = jnp.sum(jnp.abs(A), axis=1, keepdims=True)
    A_proj = A * (kappa / jnp.maximum(row_l1, kappa))
    Ut = U.T                                   # (p, m)
    BU = B @ Ut                                # (n, m)
    X = jnp.zeros_like(BU)
    for _ in range(mitr):
        X_new = jnp.maximum(A_proj @ X + BU, 0.0)
        if float(jnp.max(jnp.abs(X_new - X))) < tol:
            X = X_new
            break
        X = X_new
    return (C @ X + D @ Ut).T                  # (m, q)


if __name__ == "__main__":
    # Small shapes consistent with the module's forward.
    batch, input_dim, hidden_dim, output_dim = 8, 16, 32, 8

    key = jax.random.PRNGKey(0)
    k_a, k_b, k_c, k_d, k_u, k_u2 = jax.random.split(key, 6)

    # Deterministic parameter init mirroring torch.randn(...) / hidden_dim.
    A = jax.random.normal(k_a, (hidden_dim, hidden_dim), jnp.float32) / hidden_dim
    B = jax.random.normal(k_b, (hidden_dim, input_dim), jnp.float32) / hidden_dim
    C = jax.random.normal(k_c, (output_dim, hidden_dim), jnp.float32) / hidden_dim
    D = jax.random.normal(k_d, (output_dim, input_dim), jnp.float32) / hidden_dim
    U = jax.random.normal(k_u, (batch, input_dim), jnp.float32)

    # Default path: bf16 bulk iterations + f32 refinement, 2-way chain split.
    Y = implicit_model_forward(U, A, B, C, D)
    Y = jax.block_until_ready(Y)
    Y_ref = _reference_forward(U, A, B, C, D)
    assert Y.shape == (batch, output_dim)
    assert jnp.allclose(Y, Y_ref, atol=1e-4, rtol=1e-4), "mismatch vs reference"

    # Second case: non-multiple-of-8 batch with an explicit small tile to
    # exercise the multi-step batch grid, single-chain path and zero-padding.
    batch2 = 20
    U2 = jax.random.normal(k_u2, (batch2, input_dim), jnp.float32)
    Y2 = implicit_model_forward(U2, A, B, C, D, tile_m=8)
    Y2 = jax.block_until_ready(Y2)
    Y2_ref = _reference_forward(U2, A, B, C, D)
    assert Y2.shape == (batch2, output_dim)
    assert jnp.allclose(Y2, Y2_ref, atol=1e-4, rtol=1e-4), "mismatch vs reference (tiled)"

    # Third case: pure-f32 path (use_bf16_matmul=False) for coverage.
    Y3 = implicit_model_forward(U, A, B, C, D, use_bf16_matmul=False)
    Y3 = jax.block_until_ready(Y3)
    assert jnp.allclose(Y3, Y_ref, atol=1e-4, rtol=1e-4), "mismatch vs reference (f32)"

    # TODO(synk): low-rank (L @ R^T) weights, bias padding, no_D variant,
    # optional X0 warm start and the custom implicit backward
    # (grad_mitr/grad_tol) are not lowered here; only the default forward
    # configuration is implemented.
    print("KERNEL_OK")
</pallas_src>

<mosaic_0001>
module attributes {stable_mosaic.version = 11 : i64} {
  func.func @_implicit_kernel(%arg0: i32, %arg1: memref<128x128xf32, #tpu.memory_space<vmem>>, %arg2: memref<128x128xbf16, #tpu.memory_space<vmem>>, %arg3: memref<128x128xf32, #tpu.memory_space<vmem>>, %arg4: memref<128x128xf32, #tpu.memory_space<vmem>>, %arg5: memref<128x128xf32, #tpu.memory_space<vmem>>, %arg6: memref<16x128xf32, #tpu.memory_space<vmem>>, %arg7: memref<16x128xf32, #tpu.memory_space<vmem>>) attributes {dimension_semantics = [#tpu.dimension_semantics<parallel>], iteration_bounds = array<i64: 1>, scalar_prefetch = 0 : i64, scratch_operands = 0 : i64, tpu.core_type = #tpu.core_type<tc>, window_params = [{pipeline_mode = #tpu.pipeline_mode<synchronous>, transform_indices = @transform_0, window_bounds = array<i64: 128, 128>}, {pipeline_mode = #tpu.pipeline_mode<synchronous>, transform_indices = @transform_1, window_bounds = array<i64: 128, 128>}, {pipeline_mode = #tpu.pipeline_mode<synchronous>, transform_indices = @transform_2, window_bounds = array<i64: 128, 128>}, {pipeline_mode = #tpu.pipeline_mode<synchronous>, transform_indices = @transform_3, window_bounds = array<i64: 128, 128>}, {pipeline_mode = #tpu.pipeline_mode<synchronous>, transform_indices = @transform_4, window_bounds = array<i64: 128, 128>}, {transform_indices = @transform_5, window_bounds = array<i64: 16, 128>}, {transform_indices = @transform_6, window_bounds = array<i64: 16, 128>}]} {
    %c0 = arith.constant 0 : index
    %c0_0 = arith.constant 0 : index
    %0 = vector.load %arg1[%c0, %c0_0] : memref<128x128xf32, #tpu.memory_space<vmem>>, vector<128x128xf32>
    %c0_1 = arith.constant 0 : index
    %c0_2 = arith.constant 0 : index
    %1 = vector.load %arg6[%c0_1, %c0_2] : memref<16x128xf32, #tpu.memory_space<vmem>>, vector<16x128xf32>
    %c0_3 = arith.constant 0 : index
    %c0_4 = arith.constant 0 : index
    %2 = vector.load %arg3[%c0_3, %c0_4] : memref<128x128xf32, #tpu.memory_space<vmem>>, vector<128x128xf32>
    %cst = arith.constant dense<0.000000e+00> : vector<16x128xf32>
    %3 = tpu.matmul %1, %2, %cst {dimension_numbers = #tpu.dot_dimension_numbers<[1], [0], [0], [1], [0, 0, 1, 1], [], []>} : vector<16x128xf32>, vector<128x128xf32>, vector<16x128xf32> -> vector<16x128xf32>
    %4 = vector.extract_strided_slice %3 {offsets = [0, 0], sizes = [8, 128], strides = [1, 1]} : vector<16x128xf32> to vector<8x128xf32>
    %5 = vector.extract_strided_slice %3 {offsets = [8, 0], sizes = [8, 128], strides = [1, 1]} : vector<16x128xf32> to vector<8x128xf32>
    %6 = vector.extract_strided_slice %1 {offsets = [0, 0], sizes = [8, 128], strides = [1, 1]} : vector<16x128xf32> to vector<8x128xf32>
    %7 = vector.extract_strided_slice %1 {offsets = [8, 0], sizes = [8, 128], strides = [1, 1]} : vector<16x128xf32> to vector<8x128xf32>
    %cst_5 = arith.constant 0.000000e+00 : f32
    %8 = vector.broadcast %cst_5 : f32 to vector<8x128xf32>
    %cst_6 = arith.constant 0.000000e+00 : f32
    %9 = vector.broadcast %cst_6 : f32 to vector<8x128xf32>
    %c0_7 = arith.constant 0 : index
    %c0_8 = arith.constant 0 : index
    %10 = vector.load %arg2[%c0_7, %c0_8] : memref<128x128xbf16, #tpu.memory_space<vmem>>, vector<128x128xbf16>
    %11 = math.absf %3 : vector<16x128xf32>
    %12 = vector.shape_cast %11 : vector<16x128xf32> to vector<1x16x128xf32>
    %cst_9 = arith.constant dense<0xFF800000> : vector<1xf32>
    %13 = vector.multi_reduction <maximumf>, %12, %cst_9 [1, 2] : vector<1x16x128xf32> to vector<1xf32>
    %14 = vector.shape_cast %13 : vector<1xf32> to vector<1x1x1xf32>
    %15 = vector.extract %14[0, 0, 0] : f32 from vector<1x1x1xf32>
    %cst_10 = arith.constant 1.562500e-02 : f32
    %16 = arith.mulf %cst_10, %15 : f32
    %cst_11 = arith.constant 3.000000e-06 : f32
    %17 = arith.maximumf %cst_11, %16 : f32
    %c0_i32 = arith.constant 0 : i32
    %cst_12 = arith.constant 0x7F800000 : f32
    %18:4 = scf.while (%arg8 = %8, %arg9 = %9, %arg10 = %c0_i32, %arg11 = %cst_12) : (vector<8x128xf32>, vector<8x128xf32>, i32, f32) -> (vector<8x128xf32>, vector<8x128xf32>, i32, f32) {
      %c25_i32 = arith.constant 25 : i32
      %30 = arith.cmpi slt, %arg10, %c25_i32 : i32
      %31 = arith.cmpf oge, %arg11, %17 : f32
      %32 = arith.andi %30, %31 : i1
      scf.condition(%32) %arg8, %arg9, %arg10, %arg11 : vector<8x128xf32>, vector<8x128xf32>, i32, f32
    } do {
    ^bb0(%arg8: vector<8x128xf32>, %arg9: vector<8x128xf32>, %arg10: i32, %arg11: f32):
      %30 = arith.truncf %arg8 : vector<8x128xf32> to vector<8x128xbf16>
      %cst_27 = arith.constant dense<0.000000e+00> : vector<8x128xf32>
      %31 = tpu.matmul %30, %10, %cst_27 {dimension_numbers = #tpu.dot_dimension_numbers<[1], [0], [0], [1], [0, 0, 1, 1], [], []>} : vector<8x128xbf16>, vector<128x128xbf16>, vector<8x128xf32> -> vector<8x128xf32>
      %32 = arith.addf %31, %4 : vector<8x128xf32>
      %cst_28 = arith.constant 0.000000e+00 : f32
      %33 = vector.broadcast %cst_28 : f32 to vector<8x128xf32>
      %34 = arith.maximumf %32, %33 : vector<8x128xf32>
      %35 = arith.truncf %arg9 : vector<8x128xf32> to vector<8x128xbf16>
      %cst_29 = arith.constant dense<0.000000e+00> : vector<8x128xf32>
      %36 = tpu.matmul %35, %10, %cst_29 {dimension_numbers = #tpu.dot_dimension_numbers<[1], [0], [0], [1], [0, 0, 1, 1], [], []>} : vector<8x128xbf16>, vector<128x128xbf16>, vector<8x128xf32> -> vector<8x128xf32>
      %37 = arith.addf %36, %5 : vector<8x128xf32>
      %cst_30 = arith.constant 0.000000e+00 : f32
      %38 = vector.broadcast %cst_30 : f32 to vector<8x128xf32>
      %39 = arith.maximumf %37, %38 : vector<8x128xf32>
      %40 = arith.truncf %34 : vector<8x128xf32> to vector<8x128xbf16>
      %cst_31 = arith.constant dense<0.000000e+00> : vector<8x128xf32>
      %41 = tpu.matmul %40, %10, %cst_31 {dimension_numbers = #tpu.dot_dimension_numbers<[1], [0], [0], [1], [0, 0, 1, 1], [], []>} : vector<8x128xbf16>, vector<128x128xbf16>, vector<8x128xf32> -> vector<8x128xf32>
      %42 = arith.addf %41, %4 : vector<8x128xf32>
      %cst_32 = arith.constant 0.000000e+00 : f32
      %43 = vector.broadcast %cst_32 : f32 to vector<8x128xf32>
      %44 = arith.maximumf %42, %43 : vector<8x128xf32>
      %45 = arith.truncf %39 : vector<8x128xf32> to vector<8x128xbf16>
      %cst_33 = arith.constant dense<0.000000e+00> : vector<8x128xf32>
      %46 = tpu.matmul %45, %10, %cst_33 {dimension_numbers = #tpu.dot_dimension_numbers<[1], [0], [0], [1], [0, 0, 1, 1], [], []>} : vector<8x128xbf16>, vector<128x128xbf16>, vector<8x128xf32> -> vector<8x128xf32>
      %47 = arith.addf %46, %5 : vector<8x128xf32>
      %cst_34 = arith.constant 0.000000e+00 : f32
      %48 = vector.broadcast %cst_34 : f32 to vector<8x128xf32>
      %49 = arith.maximumf %47, %48 : vector<8x128xf32>
      %50 = arith.truncf %44 : vector<8x128xf32> to vector<8x128xbf16>
      %cst_35 = arith.constant dense<0.000000e+00> : vector<8x128xf32>
      %51 = tpu.matmul %50, %10, %cst_35 {dimension_numbers = #tpu.dot_dimension_numbers<[1], [0], [0], [1], [0, 0, 1, 1], [], []>} : vector<8x128xbf16>, vector<128x128xbf16>, vector<8x128xf32> -> vector<8x128xf32>
      %52 = arith.addf %51, %4 : vector<8x128xf32>
      %cst_36 = arith.constant 0.000000e+00 : f32
      %53 = vector.broadcast %cst_36 : f32 to vector<8x128xf32>
      %54 = arith.maximumf %52, %53 : vector<8x128xf32>
      %55 = arith.truncf %49 : vector<8x128xf32> to vector<8x128xbf16>
      %cst_37 = arith.constant dense<0.000000e+00> : vector<8x128xf32>
      %56 = tpu.matmul %55, %10, %cst_37 {dimension_numbers = #tpu.dot_dimension_numbers<[1], [0], [0], [1], [0, 0, 1, 1], [], []>} : vector<8x128xbf16>, vector<128x128xbf16>, vector<8x128xf32> -> vector<8x128xf32>
      %57 = arith.addf %56, %5 : vector<8x128xf32>
      %cst_38 = arith.constant 0.000000e+00 : f32
      %58 = vector.broadcast %cst_38 : f32 to vector<8x128xf32>
      %59 = arith.maximumf %57, %58 : vector<8x128xf32>
      %60 = arith.truncf %54 : vector<8x128xf32> to vector<8x128xbf16>
      %cst_39 = arith.constant dense<0.000000e+00> : vector<8x128xf32>
      %61 = tpu.matmul %60, %10, %cst_39 {dimension_numbers = #tpu.dot_dimension_numbers<[1], [0], [0], [1], [0, 0, 1, 1], [], []>} : vector<8x128xbf16>, vector<128x128xbf16>, vector<8x128xf32> -> vector<8x128xf32>
      %62 = arith.addf %61, %4 : vector<8x128xf32>
      %cst_40 = arith.constant 0.000000e+00 : f32
      %63 = vector.broadcast %cst_40 : f32 to vector<8x128xf32>
      %64 = arith.maximumf %62, %63 : vector<8x128xf32>
      %65 = arith.truncf %59 : vector<8x128xf32> to vector<8x128xbf16>
      %cst_41 = arith.constant dense<0.000000e+00> : vector<8x128xf32>
      %66 = tpu.matmul %65, %10, %cst_41 {dimension_numbers = #tpu.dot_dimension_numbers<[1], [0], [0], [1], [0, 0, 1, 1], [], []>} : vector<8x128xbf16>, vector<128x128xbf16>, vector<8x128xf32> -> vector<8x128xf32>
      %67 = arith.addf %66, %5 : vector<8x128xf32>
      %cst_42 = arith.constant 0.000000e+00 : f32
      %68 = vector.broadcast %cst_42 : f32 to vector<8x128xf32>
      %69 = arith.maximumf %67, %68 : vector<8x128xf32>
      %70 = arith.truncf %64 : vector<8x128xf32> to vector<8x128xbf16>
      %cst_43 = arith.constant dense<0.000000e+00> : vector<8x128xf32>
      %71 = tpu.matmul %70, %10, %cst_43 {dimension_numbers = #tpu.dot_dimension_numbers<[1], [0], [0], [1], [0, 0, 1, 1], [], []>} : vector<8x128xbf16>, vector<128x128xbf16>, vector<8x128xf32> -> vector<8x128xf32>
      %72 = arith.addf %71, %4 : vector<8x128xf32>
      %cst_44 = arith.constant 0.000000e+00 : f32
      %73 = vector.broadcast %cst_44 : f32 to vector<8x128xf32>
      %74 = arith.maximumf %72, %73 : vector<8x128xf32>
      %75 = arith.truncf %69 : vector<8x128xf32> to vector<8x128xbf16>
      %cst_45 = arith.constant dense<0.000000e+00> : vector<8x128xf32>
      %76 = tpu.matmul %75, %10, %cst_45 {dimension_numbers = #tpu.dot_dimension_numbers<[1], [0], [0], [1], [0, 0, 1, 1], [], []>} : vector<8x128xbf16>, vector<128x128xbf16>, vector<8x128xf32> -> vector<8x128xf32>
      %77 = arith.addf %76, %5 : vector<8x128xf32>
      %cst_46 = arith.constant 0.000000e+00 : f32
      %78 = vector.broadcast %cst_46 : f32 to vector<8x128xf32>
      %79 = arith.maximumf %77, %78 : vector<8x128xf32>
      %80 = arith.truncf %74 : vector<8x128xf32> to vector<8x128xbf16>
      %cst_47 = arith.constant dense<0.000000e+00> : vector<8x128xf32>
      %81 = tpu.matmul %80, %10, %cst_47 {dimension_numbers = #tpu.dot_dimension_numbers<[1], [0], [0], [1], [0, 0, 1, 1], [], []>} : vector<8x128xbf16>, vector<128x128xbf16>, vector<8x128xf32> -> vector<8x128xf32>
      %82 = arith.addf %81, %4 : vector<8x128xf32>
      %cst_48 = arith.constant 0.000000e+00 : f32
      %83 = vector.broadcast %cst_48 : f32 to vector<8x128xf32>
      %84 = arith.maximumf %82, %83 : vector<8x128xf32>
      %85 = arith.truncf %79 : vector<8x128xf32> to vector<8x128xbf16>
      %cst_49 = arith.constant dense<0.000000e+00> : vector<8x128xf32>
      %86 = tpu.matmul %85, %10, %cst_49 {dimension_numbers = #tpu.dot_dimension_numbers<[1], [0], [0], [1], [0, 0, 1, 1], [], []>} : vector<8x128xbf16>, vector<128x128xbf16>, vector<8x128xf32> -> vector<8x128xf32>
      %87 = arith.addf %86, %5 : vector<8x128xf32>
      %cst_50 = arith.constant 0.000000e+00 : f32
      %88 = vector.broadcast %cst_50 : f32 to vector<8x128xf32>
      %89 = arith.maximumf %87, %88 : vector<8x128xf32>
      %90 = arith.truncf %84 : vector<8x128xf32> to vector<8x128xbf16>
      %cst_51 = arith.constant dense<0.000000e+00> : vector<8x128xf32>
      %91 = tpu.matmul %90, %10, %cst_51 {dimension_numbers = #tpu.dot_dimension_numbers<[1], [0], [0], [1], [0, 0, 1, 1], [], []>} : vector<8x128xbf16>, vector<128x128xbf16>, vector<8x128xf32> -> vector<8x128xf32>
      %92 = arith.addf %91, %4 : vector<8x128xf32>
      %cst_52 = arith.constant 0.000000e+00 : f32
      %93 = vector.broadcast %cst_52 : f32 to vector<8x128xf32>
      %94 = arith.maximumf %92, %93 : vector<8x128xf32>
      %95 = arith.truncf %89 : vector<8x128xf32> to vector<8x128xbf16>
      %cst_53 = arith.constant dense<0.000000e+00> : vector<8x128xf32>
      %96 = tpu.matmul %95, %10, %cst_53 {dimension_numbers = #tpu.dot_dimension_numbers<[1], [0], [0], [1], [0, 0, 1, 1], [], []>} : vector<8x128xbf16>, vector<128x128xbf16>, vector<8x128xf32> -> vector<8x128xf32>
      %97 = arith.addf %96, %5 : vector<8x128xf32>
      %cst_54 = arith.constant 0.000000e+00 : f32
      %98 = vector.broadcast %cst_54 : f32 to vector<8x128xf32>
      %99 = arith.maximumf %97, %98 : vector<8x128xf32>
      %100 = arith.truncf %94 : vector<8x128xf32> to vector<8x128xbf16>
      %cst_55 = arith.constant dense<0.000000e+00> : vector<8x128xf32>
      %101 = tpu.matmul %100, %10, %cst_55 {dimension_numbers = #tpu.dot_dimension_numbers<[1], [0], [0], [1], [0, 0, 1, 1], [], []>} : vector<8x128xbf16>, vector<128x128xbf16>, vector<8x128xf32> -> vector<8x128xf32>
      %102 = arith.addf %101, %4 : vector<8x128xf32>
      %cst_56 = arith.constant 0.000000e+00 : f32
      %103 = vector.broadcast %cst_56 : f32 to vector<8x128xf32>
      %104 = arith.maximumf %102, %103 : vector<8x128xf32>
      %105 = arith.truncf %99 : vector<8x128xf32> to vector<8x128xbf16>
      %cst_57 = arith.constant dense<0.000000e+00> : vector<8x128xf32>
      %106 = tpu.matmul %105, %10, %cst_57 {dimension_numbers = #tpu.dot_dimension_numbers<[1], [0], [0], [1], [0, 0, 1, 1], [], []>} : vector<8x128xbf16>, vector<128x128xbf16>, vector<8x128xf32> -> vector<8x128xf32>
      %107 = arith.addf %106, %5 : vector<8x128xf32>
      %cst_58 = arith.constant 0.000000e+00 : f32
      %108 = vector.broadcast %cst_58 : f32 to vector<8x128xf32>
      %109 = arith.maximumf %107, %108 : vector<8x128xf32>
      %110 = arith.truncf %104 : vector<8x128xf32> to vector<8x128xbf16>
      %cst_59 = arith.constant dense<0.000000e+00> : vector<8x128xf32>
      %111 = tpu.matmul %110, %10, %cst_59 {dimension_numbers = #tpu.dot_dimension_numbers<[1], [0], [0], [1], [0, 0, 1, 1], [], []>} : vector<8x128xbf16>, vector<128x128xbf16>, vector<8x128xf32> -> vector<8x128xf32>
      %112 = arith.addf %111, %4 : vector<8x128xf32>
      %cst_60 = arith.constant 0.000000e+00 : f32
      %113 = vector.broadcast %cst_60 : f32 to vector<8x128xf32>
      %114 = arith.maximumf %112, %113 : vector<8x128xf32>
      %115 = arith.truncf %109 : vector<8x128xf32> to vector<8x128xbf16>
      %cst_61 = arith.constant dense<0.000000e+00> : vector<8x128xf32>
      %116 = tpu.matmul %115, %10, %cst_61 {dimension_numbers = #tpu.dot_dimension_numbers<[1], [0], [0], [1], [0, 0, 1, 1], [], []>} : vector<8x128xbf16>, vector<128x128xbf16>, vector<8x128xf32> -> vector<8x128xf32>
      %117 = arith.addf %116, %5 : vector<8x128xf32>
      %cst_62 = arith.constant 0.000000e+00 : f32
      %118 = vector.broadcast %cst_62 : f32 to vector<8x128xf32>
      %119 = arith.maximumf %117, %118 : vector<8x128xf32>
      %120 = arith.truncf %114 : vector<8x128xf32> to vector<8x128xbf16>
      %cst_63 = arith.constant dense<0.000000e+00> : vector<8x128xf32>
      %121 = tpu.matmul %120, %10, %cst_63 {dimension_numbers = #tpu.dot_dimension_numbers<[1], [0], [0], [1], [0, 0, 1, 1], [], []>} : vector<8x128xbf16>, vector<128x128xbf16>, vector<8x128xf32> -> vector<8x128xf32>
      %122 = arith.addf %121, %4 : vector<8x128xf32>
      %cst_64 = arith.constant 0.000000e+00 : f32
      %123 = vector.broadcast %cst_64 : f32 to vector<8x128xf32>
      %124 = arith.maximumf %122, %123 : vector<8x128xf32>
      %125 = arith.truncf %119 : vector<8x128xf32> to vector<8x128xbf16>
      %cst_65 = arith.constant dense<0.000000e+00> : vector<8x128xf32>
      %126 = tpu.matmul %125, %10, %cst_65 {dimension_numbers = #tpu.dot_dimension_numbers<[1], [0], [0], [1], [0, 0, 1, 1], [], []>} : vector<8x128xbf16>, vector<128x128xbf16>, vector<8x128xf32> -> vector<8x128xf32>
      %127 = arith.addf %126, %5 : vector<8x128xf32>
      %cst_66 = arith.constant 0.000000e+00 : f32
      %128 = vector.broadcast %cst_66 : f32 to vector<8x128xf32>
      %129 = arith.maximumf %127, %128 : vector<8x128xf32>
      %130 = arith.truncf %124 : vector<8x128xf32> to vector<8x128xbf16>
      %cst_67 = arith.constant dense<0.000000e+00> : vector<8x128xf32>
      %131 = tpu.matmul %130, %10, %cst_67 {dimension_numbers = #tpu.dot_dimension_numbers<[1], [0], [0], [1], [0, 0, 1, 1], [], []>} : vector<8x128xbf16>, vector<128x128xbf16>, vector<8x128xf32> -> vector<8x128xf32>
      %132 = arith.addf %131, %4 : vector<8x128xf32>
      %cst_68 = arith.constant 0.000000e+00 : f32
      %133 = vector.broadcast %cst_68 : f32 to vector<8x128xf32>
      %134 = arith.maximumf %132, %133 : vector<8x128xf32>
      %135 = arith.truncf %129 : vector<8x128xf32> to vector<8x128xbf16>
      %cst_69 = arith.constant dense<0.000000e+00> : vector<8x128xf32>
      %136 = tpu.matmul %135, %10, %cst_69 {dimension_numbers = #tpu.dot_dimension_numbers<[1], [0], [0], [1], [0, 0, 1, 1], [], []>} : vector<8x128xbf16>, vector<128x128xbf16>, vector<8x128xf32> -> vector<8x128xf32>
      %137 = arith.addf %136, %5 : vector<8x128xf32>
      %cst_70 = arith.constant 0.000000e+00 : f32
      %138 = vector.broadcast %cst_70 : f32 to vector<8x128xf32>
      %139 = arith.maximumf %137, %138 : vector<8x128xf32>
      %140 = arith.truncf %134 : vector<8x128xf32> to vector<8x128xbf16>
      %cst_71 = arith.constant dense<0.000000e+00> : vector<8x128xf32>
      %141 = tpu.matmul %140, %10, %cst_71 {dimension_numbers = #tpu.dot_dimension_numbers<[1], [0], [0], [1], [0, 0, 1, 1], [], []>} : vector<8x128xbf16>, vector<128x128xbf16>, vector<8x128xf32> -> vector<8x128xf32>
      %142 = arith.addf %141, %4 : vector<8x128xf32>
      %cst_72 = arith.constant 0.000000e+00 : f32
      %143 = vector.broadcast %cst_72 : f32 to vector<8x128xf32>
      %144 = arith.maximumf %142, %143 : vector<8x128xf32>
      %145 = arith.truncf %139 : vector<8x128xf32> to vector<8x128xbf16>
      %cst_73 = arith.constant dense<0.000000e+00> : vector<8x128xf32>
      %146 = tpu.matmul %145, %10, %cst_73 {dimension_numbers = #tpu.dot_dimension_numbers<[1], [0], [0], [1], [0, 0, 1, 1], [], []>} : vector<8x128xbf16>, vector<128x128xbf16>, vector<8x128xf32> -> vector<8x128xf32>
      %147 = arith.addf %146, %5 : vector<8x128xf32>
      %cst_74 = arith.constant 0.000000e+00 : f32
      %148 = vector.broadcast %cst_74 : f32 to vector<8x128xf32>
      %149 = arith.maximumf %147, %148 : vector<8x128xf32>
      %150 = arith.subf %144, %134 : vector<8x128xf32>
      %151 = math.absf %150 : vector<8x128xf32>
      %152 = vector.shape_cast %151 : vector<8x128xf32> to vector<1x8x128xf32>
      %cst_75 = arith.constant dense<0xFF800000> : vector<1xf32>
      %153 = vector.multi_reduction <maximumf>, %152, %cst_75 [1, 2] : vector<1x8x128xf32> to vector<1xf32>
      %154 = vector.shape_cast %153 : vector<1xf32> to vector<1x1x1xf32>
      %155 = vector.extract %154[0, 0, 0] : f32 from vector<1x1x1xf32>
      %156 = arith.subf %149, %139 : vector<8x128xf32>
      %157 = math.absf %156 : vector<8x128xf32>
      %158 = vector.shape_cast %157 : vector<8x128xf32> to vector<1x8x128xf32>
      %cst_76 = arith.constant dense<0xFF800000> : vector<1xf32>
      %159 = vector.multi_reduction <maximumf>, %158, %cst_76 [1, 2] : vector<1x8x128xf32> to vector<1xf32>
      %160 = vector.shape_cast %159 : vector<1xf32> to vector<1x1x1xf32>
      %161 = vector.extract %160[0, 0, 0] : f32 from vector<1x1x1xf32>
      %162 = arith.maximumf %155, %161 : f32
      %c1_i32 = arith.constant 1 : i32
      %163 = arith.addi %arg10, %c1_i32 : i32
      scf.yield %144, %149, %163, %162 : vector<8x128xf32>, vector<8x128xf32>, i32, f32
    }
    %cst_13 = arith.constant 3.000000e-06 : f32
    %c0_i32_14 = arith.constant 0 : i32
    %cst_15 = arith.constant 0x7F800000 : f32
    %19:4 = scf.while (%arg8 = %18#0, %arg9 = %18#1, %arg10 = %c0_i32_14, %arg11 = %cst_15) : (vector<8x128xf32>, vector<8x128xf32>, i32, f32) -> (vector<8x128xf32>, vector<8x128xf32>, i32, f32) {
      %c25_i32 = arith.constant 25 : i32
      %30 = arith.cmpi slt, %arg10, %c25_i32 : i32
      %31 = arith.cmpf oge, %arg11, %cst_13 : f32
      %32 = arith.andi %30, %31 : i1
      scf.condition(%32) %arg8, %arg9, %arg10, %arg11 : vector<8x128xf32>, vector<8x128xf32>, i32, f32
    } do {
    ^bb0(%arg8: vector<8x128xf32>, %arg9: vector<8x128xf32>, %arg10: i32, %arg11: f32):
      %cst_27 = arith.constant dense<0.000000e+00> : vector<8x128xf32>
      %30 = tpu.matmul %arg8, %0, %cst_27 {dimension_numbers = #tpu.dot_dimension_numbers<[1], [0], [0], [1], [0, 0, 1, 1], [], []>} : vector<8x128xf32>, vector<128x128xf32>, vector<8x128xf32> -> vector<8x128xf32>
      %31 = arith.addf %30, %4 : vector<8x128xf32>
      %cst_28 = arith.constant 0.000000e+00 : f32
      %32 = vector.broadcast %cst_28 : f32 to vector<8x128xf32>
      %33 = arith.maximumf %31, %32 : vector<8x128xf32>
      %cst_29 = arith.constant dense<0.000000e+00> : vector<8x128xf32>
      %34 = tpu.matmul %arg9, %0, %cst_29 {dimension_numbers = #tpu.dot_dimension_numbers<[1], [0], [0], [1], [0, 0, 1, 1], [], []>} : vector<8x128xf32>, vector<128x128xf32>, vector<8x128xf32> -> vector<8x128xf32>
      %35 = arith.addf %34, %5 : vector<8x128xf32>
      %cst_30 = arith.constant 0.000000e+00 : f32
      %36 = vector.broadcast %cst_30 : f32 to vector<8x128xf32>
      %37 = arith.maximumf %35, %36 : vector<8x128xf32>
      %cst_31 = arith.constant dense<0.000000e+00> : vector<8x128xf32>
      %38 = tpu.matmul %33, %0, %cst_31 {dimension_numbers = #tpu.dot_dimension_numbers<[1], [0], [0], [1], [0, 0, 1, 1], [], []>} : vector<8x128xf32>, vector<128x128xf32>, vector<8x128xf32> -> vector<8x128xf32>
      %39 = arith.addf %38, %4 : vector<8x128xf32>
      %cst_32 = arith.constant 0.000000e+00 : f32
      %40 = vector.broadcast %cst_32 : f32 to vector<8x128xf32>
      %41 = arith.maximumf %39, %40 : vector<8x128xf32>
      %cst_33 = arith.constant dense<0.000000e+00> : vector<8x128xf32>
      %42 = tpu.matmul %37, %0, %cst_33 {dimension_numbers = #tpu.dot_dimension_numbers<[1], [0], [0], [1], [0, 0, 1, 1], [], []>} : vector<8x128xf32>, vector<128x128xf32>, vector<8x128xf32> -> vector<8x128xf32>
      %43 = arith.addf %42, %5 : vector<8x128xf32>
      %cst_34 = arith.constant 0.000000e+00 : f32
      %44 = vector.broadcast %cst_34 : f32 to vector<8x128xf32>
      %45 = arith.maximumf %43, %44 : vector<8x128xf32>
      %cst_35 = arith.constant dense<0.000000e+00> : vector<8x128xf32>
      %46 = tpu.matmul %41, %0, %cst_35 {dimension_numbers = #tpu.dot_dimension_numbers<[1], [0], [0], [1], [0, 0, 1, 1], [], []>} : vector<8x128xf32>, vector<128x128xf32>, vector<8x128xf32> -> vector<8x128xf32>
      %47 = arith.addf %46, %4 : vector<8x128xf32>
      %cst_36 = arith.constant 0.000000e+00 : f32
      %48 = vector.broadcast %cst_36 : f32 to vector<8x128xf32>
      %49 = arith.maximumf %47, %48 : vector<8x128xf32>
      %cst_37 = arith.constant dense<0.000000e+00> : vector<8x128xf32>
      %50 = tpu.matmul %45, %0, %cst_37 {dimension_numbers = #tpu.dot_dimension_numbers<[1], [0], [0], [1], [0, 0, 1, 1], [], []>} : vector<8x128xf32>, vector<128x128xf32>, vector<8x128xf32> -> vector<8x128xf32>
      %51 = arith.addf %50, %5 : vector<8x128xf32>
      %cst_38 = arith.constant 0.000000e+00 : f32
      %52 = vector.broadcast %cst_38 : f32 to vector<8x128xf32>
      %53 = arith.maximumf %51, %52 : vector<8x128xf32>
      %cst_39 = arith.constant dense<0.000000e+00> : vector<8x128xf32>
      %54 = tpu.matmul %49, %0, %cst_39 {dimension_numbers = #tpu.dot_dimension_numbers<[1], [0], [0], [1], [0, 0, 1, 1], [], []>} : vector<8x128xf32>, vector<128x128xf32>, vector<8x128xf32> -> vector<8x128xf32>
      %55 = arith.addf %54, %4 : vector<8x128xf32>
      %cst_40 = arith.constant 0.000000e+00 : f32
      %56 = vector.broadcast %cst_40 : f32 to vector<8x128xf32>
      %57 = arith.maximumf %55, %56 : vector<8x128xf32>
      %cst_41 = arith.constant dense<0.000000e+00> : vector<8x128xf32>
      %58 = tpu.matmul %53, %0, %cst_41 {dimension_numbers = #tpu.dot_dimension_numbers<[1], [0], [0], [1], [0, 0, 1, 1], [], []>} : vector<8x128xf32>, vector<128x128xf32>, vector<8x128xf32> -> vector<8x128xf32>
      %59 = arith.addf %58, %5 : vector<8x128xf32>
      %cst_42 = arith.constant 0.000000e+00 : f32
      %60 = vector.broadcast %cst_42 : f32 to vector<8x128xf32>
      %61 = arith.maximumf %59, %60 : vector<8x128xf32>
      %cst_43 = arith.constant dense<0.000000e+00> : vector<8x128xf32>
      %62 = tpu.matmul %57, %0, %cst_43 {dimension_numbers = #tpu.dot_dimension_numbers<[1], [0], [0], [1], [0, 0, 1, 1], [], []>} : vector<8x128xf32>, vector<128x128xf32>, vector<8x128xf32> -> vector<8x128xf32>
      %63 = arith.addf %62, %4 : vector<8x128xf32>
      %cst_44 = arith.constant 0.000000e+00 : f32
      %64 = vector.broadcast %cst_44 : f32 to vector<8x128xf32>
      %65 = arith.maximumf %63, %64 : vector<8x128xf32>
      %cst_45 = arith.constant dense<0.000000e+00> : vector<8x128xf32>
      %66 = tpu.matmul %61, %0, %cst_45 {dimension_numbers = #tpu.dot_dimension_numbers<[1], [0], [0], [1], [0, 0, 1, 1], [], []>} : vector<8x128xf32>, vector<128x128xf32>, vector<8x128xf32> -> vector<8x128xf32>
      %67 = arith.addf %66, %5 : vector<8x128xf32>
      %cst_46 = arith.constant 0.000000e+00 : f32
      %68 = vector.broadcast %cst_46 : f32 to vector<8x128xf32>
      %69 = arith.maximumf %67, %68 : vector<8x128xf32>
      %cst_47 = arith.constant dense<0.000000e+00> : vector<8x128xf32>
      %70 = tpu.matmul %65, %0, %cst_47 {dimension_numbers = #tpu.dot_dimension_numbers<[1], [0], [0], [1], [0, 0, 1, 1], [], []>} : vector<8x128xf32>, vector<128x128xf32>, vector<8x128xf32> -> vector<8x128xf32>
      %71 = arith.addf %70, %4 : vector<8x128xf32>
      %cst_48 = arith.constant 0.000000e+00 : f32
      %72 = vector.broadcast %cst_48 : f32 to vector<8x128xf32>
      %73 = arith.maximumf %71, %72 : vector<8x128xf32>
      %cst_49 = arith.constant dense<0.000000e+00> : vector<8x128xf32>
      %74 = tpu.matmul %69, %0, %cst_49 {dimension_numbers = #tpu.dot_dimension_numbers<[1], [0], [0], [1], [0, 0, 1, 1], [], []>} : vector<8x128xf32>, vector<128x128xf32>, vector<8x128xf32> -> vector<8x128xf32>
      %75 = arith.addf %74, %5 : vector<8x128xf32>
      %cst_50 = arith.constant 0.000000e+00 : f32
      %76 = vector.broadcast %cst_50 : f32 to vector<8x128xf32>
      %77 = arith.maximumf %75, %76 : vector<8x128xf32>
      %cst_51 = arith.constant dense<0.000000e+00> : vector<8x128xf32>
      %78 = tpu.matmul %73, %0, %cst_51 {dimension_numbers = #tpu.dot_dimension_numbers<[1], [0], [0], [1], [0, 0, 1, 1], [], []>} : vector<8x128xf32>, vector<128x128xf32>, vector<8x128xf32> -> vector<8x128xf32>
      %79 = arith.addf %78, %4 : vector<8x128xf32>
      %cst_52 = arith.constant 0.000000e+00 : f32
      %80 = vector.broadcast %cst_52 : f32 to vector<8x128xf32>
      %81 = arith.maximumf %79, %80 : vector<8x128xf32>
      %cst_53 = arith.constant dense<0.000000e+00> : vector<8x128xf32>
      %82 = tpu.matmul %77, %0, %cst_53 {dimension_numbers = #tpu.dot_dimension_numbers<[1], [0], [0], [1], [0, 0, 1, 1], [], []>} : vector<8x128xf32>, vector<128x128xf32>, vector<8x128xf32> -> vector<8x128xf32>
      %83 = arith.addf %82, %5 : vector<8x128xf32>
      %cst_54 = arith.constant 0.000000e+00 : f32
      %84 = vector.broadcast %cst_54 : f32 to vector<8x128xf32>
      %85 = arith.maximumf %83, %84 : vector<8x128xf32>
      %cst_55 = arith.constant dense<0.000000e+00> : vector<8x128xf32>
      %86 = tpu.matmul %81, %0, %cst_55 {dimension_numbers = #tpu.dot_dimension_numbers<[1], [0], [0], [1], [0, 0, 1, 1], [], []>} : vector<8x128xf32>, vector<128x128xf32>, vector<8x128xf32> -> vector<8x128xf32>
      %87 = arith.addf %86, %4 : vector<8x128xf32>
      %cst_56 = arith.constant 0.000000e+00 : f32
      %88 = vector.broadcast %cst_56 : f32 to vector<8x128xf32>
      %89 = arith.maximumf %87, %88 : vector<8x128xf32>
      %cst_57 = arith.constant dense<0.000000e+00> : vector<8x128xf32>
      %90 = tpu.matmul %85, %0, %cst_57 {dimension_numbers = #tpu.dot_dimension_numbers<[1], [0], [0], [1], [0, 0, 1, 1], [], []>} : vector<8x128xf32>, vector<128x128xf32>, vector<8x128xf32> -> vector<8x128xf32>
      %91 = arith.addf %90, %5 : vector<8x128xf32>
      %cst_58 = arith.constant 0.000000e+00 : f32
      %92 = vector.broadcast %cst_58 : f32 to vector<8x128xf32>
      %93 = arith.maximumf %91, %92 : vector<8x128xf32>
      %cst_59 = arith.constant dense<0.000000e+00> : vector<8x128xf32>
      %94 = tpu.matmul %89, %0, %cst_59 {dimension_numbers = #tpu.dot_dimension_numbers<[1], [0], [0], [1], [0, 0, 1, 1], [], []>} : vector<8x128xf32>, vector<128x128xf32>, vector<8x128xf32> -> vector<8x128xf32>
      %95 = arith.addf %94, %4 : vector<8x128xf32>
      %cst_60 = arith.constant 0.000000e+00 : f32
      %96 = vector.broadcast %cst_60 : f32 to vector<8x128xf32>
      %97 = arith.maximumf %95, %96 : vector<8x128xf32>
      %cst_61 = arith.constant dense<0.000000e+00> : vector<8x128xf32>
      %98 = tpu.matmul %93, %0, %cst_61 {dimension_numbers = #tpu.dot_dimension_numbers<[1], [0], [0], [1], [0, 0, 1, 1], [], []>} : vector<8x128xf32>, vector<128x128xf32>, vector<8x128xf32> -> vector<8x128xf32>
      %99 = arith.addf %98, %5 : vector<8x128xf32>
      %cst_62 = arith.constant 0.000000e+00 : f32
      %100 = vector.broadcast %cst_62 : f32 to vector<8x128xf32>
      %101 = arith.maximumf %99, %100 : vector<8x128xf32>
      %cst_63 = arith.constant dense<0.000000e+00> : vector<8x128xf32>
      %102 = tpu.matmul %97, %0, %cst_63 {dimension_numbers = #tpu.dot_dimension_numbers<[1], [0], [0], [1], [0, 0, 1, 1], [], []>} : vector<8x128xf32>, vector<128x128xf32>, vector<8x128xf32> -> vector<8x128xf32>
      %103 = arith.addf %102, %4 : vector<8x128xf32>
      %cst_64 = arith.constant 0.000000e+00 : f32
      %104 = vector.broadcast %cst_64 : f32 to vector<8x128xf32>
      %105 = arith.maximumf %103, %104 : vector<8x128xf32>
      %cst_65 = arith.constant dense<0.000000e+00> : vector<8x128xf32>
      %106 = tpu.matmul %101, %0, %cst_65 {dimension_numbers = #tpu.dot_dimension_numbers<[1], [0], [0], [1], [0, 0, 1, 1], [], []>} : vector<8x128xf32>, vector<128x128xf32>, vector<8x128xf32> -> vector<8x128xf32>
      %107 = arith.addf %106, %5 : vector<8x128xf32>
      %cst_66 = arith.constant 0.000000e+00 : f32
      %108 = vector.broadcast %cst_66 : f32 to vector<8x128xf32>
      %109 = arith.maximumf %107, %108 : vector<8x128xf32>
      %cst_67 = arith.constant dense<0.000000e+00> : vector<8x128xf32>
      %110 = tpu.matmul %105, %0, %cst_67 {dimension_numbers = #tpu.dot_dimension_numbers<[1], [0], [0], [1], [0, 0, 1, 1], [], []>} : vector<8x128xf32>, vector<128x128xf32>, vector<8x128xf32> -> vector<8x128xf32>
      %111 = arith.addf %110, %4 : vector<8x128xf32>
      %cst_68 = arith.constant 0.000000e+00 : f32
      %112 = vector.broadcast %cst_68 : f32 to vector<8x128xf32>
      %113 = arith.maximumf %111, %112 : vector<8x128xf32>
      %cst_69 = arith.constant dense<0.000000e+00> : vector<8x128xf32>
      %114 = tpu.matmul %109, %0, %cst_69 {dimension_numbers = #tpu.dot_dimension_numbers<[1], [0], [0], [1], [0, 0, 1, 1], [], []>} : vector<8x128xf32>, vector<128x128xf32>, vector<8x128xf32> -> vector<8x128xf32>
      %115 = arith.addf %114, %5 : vector<8x128xf32>
      %cst_70 = arith.constant 0.000000e+00 : f32
      %116 = vector.broadcast %cst_70 : f32 to vector<8x128xf32>
      %117 = arith.maximumf %115, %116 : vector<8x128xf32>
      %cst_71 = arith.constant dense<0.000000e+00> : vector<8x128xf32>
      %118 = tpu.matmul %113, %0, %cst_71 {dimension_numbers = #tpu.dot_dimension_numbers<[1], [0], [0], [1], [0, 0, 1, 1], [], []>} : vector<8x128xf32>, vector<128x128xf32>, vector<8x128xf32> -> vector<8x128xf32>
      %119 = arith.addf %118, %4 : vector<8x128xf32>
      %cst_72 = arith.constant 0.000000e+00 : f32
      %120 = vector.broadcast %cst_72 : f32 to vector<8x128xf32>
      %121 = arith.maximumf %119, %120 : vector<8x128xf32>
      %cst_73 = arith.constant dense<0.000000e+00> : vector<8x128xf32>
      %122 = tpu.matmul %117, %0, %cst_73 {dimension_numbers = #tpu.dot_dimension_numbers<[1], [0], [0], [1], [0, 0, 1, 1], [], []>} : vector<8x128xf32>, vector<128x128xf32>, vector<8x128xf32> -> vector<8x128xf32>
      %123 = arith.addf %122, %5 : vector<8x128xf32>
      %cst_74 = arith.constant 0.000000e+00 : f32
      %124 = vector.broadcast %cst_74 : f32 to vector<8x128xf32>
      %125 = arith.maximumf %123, %124 : vector<8x128xf32>
      %126 = arith.subf %121, %113 : vector<8x128xf32>
      %127 = math.absf %126 : vector<8x128xf32>
      %128 = vector.shape_cast %127 : vector<8x128xf32> to vector<1x8x128xf32>
      %cst_75 = arith.constant dense<0xFF800000> : vector<1xf32>
      %129 = vector.multi_reduction <maximumf>, %128, %cst_75 [1, 2] : vector<1x8x128xf32> to vector<1xf32>
      %130 = vector.shape_cast %129 : vector<1xf32> to vector<1x1x1xf32>
      %131 = vector.extract %130[0, 0, 0] : f32 from vector<1x1x1xf32>
      %132 = arith.subf %125, %117 : vector<8x128xf32>
      %133 = math.absf %132 : vector<8x128xf32>
      %134 = vector.shape_cast %133 : vector<8x128xf32> to vector<1x8x128xf32>
      %cst_76 = arith.constant dense<0xFF800000> : vector<1xf32>
      %135 = vector.multi_reduction <maximumf>, %134, %cst_76 [1, 2] : vector<1x8x128xf32> to vector<1xf32>
      %136 = vector.shape_cast %135 : vector<1xf32> to vector<1x1x1xf32>
      %137 = vector.extract %136[0, 0, 0] : f32 from vector<1x1x1xf32>
      %138 = arith.maximumf %131, %137 : f32
      %c1_i32 = arith.constant 1 : i32
      %139 = arith.addi %arg10, %c1_i32 : i32
      scf.yield %121, %125, %139, %138 : vector<8x128xf32>, vector<8x128xf32>, i32, f32
    }
    %c0_16 = arith.constant 0 : index
    %c0_17 = arith.constant 0 : index
    %20 = vector.load %arg4[%c0_16, %c0_17] : memref<128x128xf32, #tpu.memory_space<vmem>>, vector<128x128xf32>
    %c0_18 = arith.constant 0 : index
    %c0_19 = arith.constant 0 : index
    %21 = vector.load %arg5[%c0_18, %c0_19] : memref<128x128xf32, #tpu.memory_space<vmem>>, vector<128x128xf32>
    %cst_20 = arith.constant dense<0.000000e+00> : vector<8x128xf32>
    %22 = tpu.matmul %19#0, %20, %cst_20 {dimension_numbers = #tpu.dot_dimension_numbers<[1], [0], [0], [1], [0, 0, 1, 1], [], []>} : vector<8x128xf32>, vector<128x128xf32>, vector<8x128xf32> -> vector<8x128xf32>
    %cst_21 = arith.constant dense<0.000000e+00> : vector<8x128xf32>
    %23 = tpu.matmul %6, %21, %cst_21 {dimension_numbers = #tpu.dot_dimension_numbers<[1], [0], [0], [1], [0, 0, 1, 1], [], []>} : vector<8x128xf32>, vector<128x128xf32>, vector<8x128xf32> -> vector<8x128xf32>
    %24 = arith.addf %22, %23 : vector<8x128xf32>
    %c0_22 = arith.constant 0 : index
    %c0_23 = arith.constant 0 : index
    %25 = vector.load %arg7[%c0_22, %c0_23] : memref<16x128xf32, #tpu.memory_space<vmem>>, vector<8x128xf32>
    tpu.vector_store %arg7[%c0_22, %c0_23], %24 {strides = array<i32>} : memref<16x128xf32, #tpu.memory_space<vmem>>, vector<8x128xf32>,
    %cst_24 = arith.constant dense<0.000000e+00> : vector<8x128xf32>
    %26 = tpu.matmul %19#1, %20, %cst_24 {dimension_numbers = #tpu.dot_dimension_numbers<[1], [0], [0], [1], [0, 0, 1, 1], [], []>} : vector<8x128xf32>, vector<128x128xf32>, vector<8x128xf32> -> vector<8x128xf32>
    %cst_25 = arith.constant dense<0.000000e+00> : vector<8x128xf32>
    %27 = tpu.matmul %7, %21, %cst_25 {dimension_numbers = #tpu.dot_dimension_numbers<[1], [0], [0], [1], [0, 0, 1, 1], [], []>} : vector<8x128xf32>, vector<128x128xf32>, vector<8x128xf32> -> vector<8x128xf32>
    %28 = arith.addf %26, %27 : vector<8x128xf32>
    %c8 = arith.constant 8 : index
    %c0_26 = arith.constant 0 : index
    %29 = vector.load %arg7[%c8, %c0_26] : memref<16x128xf32, #tpu.memory_space<vmem>>, vector<8x128xf32>
    tpu.vector_store %arg7[%c8, %c0_26], %28 {strides = array<i32>} : memref<16x128xf32, #tpu.memory_space<vmem>>, vector<8x128xf32>,
    return
  }
  func.func @transform_0(%arg0: i32) -> (i32, i32) {
    %c0_i32 = arith.constant 0 : i32
    %c0_i32_0 = arith.constant 0 : i32
    %c0_i32_1 = arith.constant 0 : i32
    return %c0_i32, %c0_i32_0 : i32, i32
  }
  func.func @transform_1(%arg0: i32) -> (i32, i32) {
    %c0_i32 = arith.constant 0 : i32
    %c0_i32_0 = arith.constant 0 : i32
    %c0_i32_1 = arith.constant 0 : i32
    return %c0_i32, %c0_i32_0 : i32, i32
  }
  func.func @transform_2(%arg0: i32) -> (i32, i32) {
    %c0_i32 = arith.constant 0 : i32
    %c0_i32_0 = arith.constant 0 : i32
    %c0_i32_1 = arith.constant 0 : i32
    return %c0_i32, %c0_i32_0 : i32, i32
  }
  func.func @transform_3(%arg0: i32) -> (i32, i32) {
    %c0_i32 = arith.constant 0 : i32
    %c0_i32_0 = arith.constant 0 : i32
    %c0_i32_1 = arith.constant 0 : i32
    return %c0_i32, %c0_i32_0 : i32, i32
  }
  func.func @transform_4(%arg0: i32) -> (i32, i32) {
    %c0_i32 = arith.constant 0 : i32
    %c0_i32_0 = arith.constant 0 : i32
    %c0_i32_1 = arith.constant 0 : i32
    return %c0_i32, %c0_i32_0 : i32, i32
  }
  func.func @transform_5(%arg0: i32) -> (i32, i32) {
    %c0_i32 = arith.constant 0 : i32
    %c0_i32_0 = arith.constant 0 : i32
    return %arg0, %c0_i32 : i32, i32
  }
  func.func @transform_6(%arg0: i32) -> (i32, i32) {
    %c0_i32 = arith.constant 0 : i32
    %c0_i32_0 = arith.constant 0 : i32
    return %arg0, %c0_i32 : i32, i32
  }
}

module attributes {stable_mosaic.version = 11 : i64} {
  func.func @_implicit_kernel(%arg0: i32, %arg1: memref<128x128xf32, #tpu.memory_space<vmem>>, %arg2: memref<128x128xbf16, #tpu.memory_space<vmem>>, %arg3: memref<128x128xf32, #tpu.memory_space<vmem>>, %arg4: memref<128x128xf32, #tpu.memory_space<vmem>>, %arg5: memref<128x128xf32, #tpu.memory_space<vmem>>, %arg6: memref<16x128xf32, #tpu.memory_space<vmem>>, %arg7: memref<16x128xf32, #tpu.memory_space<vmem>>) attributes {dimension_semantics = [#tpu.dimension_semantics<parallel>], iteration_bounds = array<i64: 1>, scalar_prefetch = 0 : i64, scratch_operands = 0 : i64, tpu.core_type = #tpu.core_type<tc>, window_params = [{pipeline_mode = #tpu.pipeline_mode<synchronous>, transform_indices = @transform_0, window_bounds = array<i64: 128, 128>}, {pipeline_mode = #tpu.pipeline_mode<synchronous>, transform_indices = @transform_1, window_bounds = array<i64: 128, 128>}, {pipeline_mode = #tpu.pipeline_mode<synchronous>, transform_indices = @transform_2, window_bounds = array<i64: 128, 128>}, {pipeline_mode = #tpu.pipeline_mode<synchronous>, transform_indices = @transform_3, window_bounds = array<i64: 128, 128>}, {pipeline_mode = #tpu.pipeline_mode<synchronous>, transform_indices = @transform_4, window_bounds = array<i64: 128, 128>}, {transform_indices = @transform_5, window_bounds = array<i64: 16, 128>}, {transform_indices = @transform_6, window_bounds = array<i64: 16, 128>}]} {
    %c0 = arith.constant 0 : index
    %c0_0 = arith.constant 0 : index
    %0 = vector.load %arg1[%c0, %c0_0] : memref<128x128xf32, #tpu.memory_space<vmem>>, vector<128x128xf32>
    %c0_1 = arith.constant 0 : index
    %c0_2 = arith.constant 0 : index
    %1 = vector.load %arg6[%c0_1, %c0_2] : memref<16x128xf32, #tpu.memory_space<vmem>>, vector<16x128xf32>
    %c0_3 = arith.constant 0 : index
    %c0_4 = arith.constant 0 : index
    %2 = vector.load %arg3[%c0_3, %c0_4] : memref<128x128xf32, #tpu.memory_space<vmem>>, vector<128x128xf32>
    %cst = arith.constant dense<0.000000e+00> : vector<16x128xf32>
    %3 = tpu.matmul %1, %2, %cst {dimension_numbers = #tpu.dot_dimension_numbers<[1], [0], [0], [1], [0, 0, 1, 1], [], []>} : vector<16x128xf32>, vector<128x128xf32>, vector<16x128xf32> -> vector<16x128xf32>
    %4 = vector.extract_strided_slice %3 {offsets = [0, 0], sizes = [8, 128], strides = [1, 1]} : vector<16x128xf32> to vector<8x128xf32>
    %5 = vector.extract_strided_slice %3 {offsets = [8, 0], sizes = [8, 128], strides = [1, 1]} : vector<16x128xf32> to vector<8x128xf32>
    %6 = vector.extract_strided_slice %1 {offsets = [0, 0], sizes = [8, 128], strides = [1, 1]} : vector<16x128xf32> to vector<8x128xf32>
    %7 = vector.extract_strided_slice %1 {offsets = [8, 0], sizes = [8, 128], strides = [1, 1]} : vector<16x128xf32> to vector<8x128xf32>
    %cst_5 = arith.constant 0.000000e+00 : f32
    %8 = vector.broadcast %cst_5 : f32 to vector<8x128xf32>
    %cst_6 = arith.constant 0.000000e+00 : f32
    %9 = vector.broadcast %cst_6 : f32 to vector<8x128xf32>
    %c0_7 = arith.constant 0 : index
    %c0_8 = arith.constant 0 : index
    %10 = vector.load %arg2[%c0_7, %c0_8] : memref<128x128xbf16, #tpu.memory_space<vmem>>, vector<128x128xbf16>
    %11 = math.absf %3 : vector<16x128xf32>
    %12 = vector.shape_cast %11 : vector<16x128xf32> to vector<1x16x128xf32>
    %cst_9 = arith.constant dense<0xFF800000> : vector<1xf32>
    %13 = vector.multi_reduction <maximumf>, %12, %cst_9 [1, 2] : vector<1x16x128xf32> to vector<1xf32>
    %14 = vector.shape_cast %13 : vector<1xf32> to vector<1x1x1xf32>
    %15 = vector.extract %14[0, 0, 0] : f32 from vector<1x1x1xf32>
    %cst_10 = arith.constant 1.562500e-02 : f32
    %16 = arith.mulf %cst_10, %15 : f32
    %cst_11 = arith.constant 3.000000e-06 : f32
    %17 = arith.maximumf %cst_11, %16 : f32
    %c0_i32 = arith.constant 0 : i32
    %cst_12 = arith.constant 0x7F800000 : f32
    %18:4 = scf.while (%arg8 = %8, %arg9 = %9, %arg10 = %c0_i32, %arg11 = %cst_12) : (vector<8x128xf32>, vector<8x128xf32>, i32, f32) -> (vector<8x128xf32>, vector<8x128xf32>, i32, f32) {
      %c25_i32 = arith.constant 25 : i32
      %30 = arith.cmpi slt, %arg10, %c25_i32 : i32
      %31 = arith.cmpf oge, %arg11, %17 : f32
      %32 = arith.andi %30, %31 : i1
      scf.condition(%32) %arg8, %arg9, %arg10, %arg11 : vector<8x128xf32>, vector<8x128xf32>, i32, f32
    } do {
    ^bb0(%arg8: vector<8x128xf32>, %arg9: vector<8x128xf32>, %arg10: i32, %arg11: f32):
      %30 = arith.truncf %arg8 : vector<8x128xf32> to vector<8x128xbf16>
      %cst_27 = arith.constant dense<0.000000e+00> : vector<8x128xf32>
      %31 = tpu.matmul %30, %10, %cst_27 {dimension_numbers = #tpu.dot_dimension_numbers<[1], [0], [0], [1], [0, 0, 1, 1], [], []>} : vector<8x128xbf16>, vector<128x128xbf16>, vector<8x128xf32> -> vector<8x128xf32>
      %32 = arith.addf %31, %4 : vector<8x128xf32>
      %cst_28 = arith.constant 0.000000e+00 : f32
      %33 = vector.broadcast %cst_28 : f32 to vector<8x128xf32>
      %34 = arith.maximumf %32, %33 : vector<8x128xf32>
      %35 = arith.truncf %arg9 : vector<8x128xf32> to vector<8x128xbf16>
      %cst_29 = arith.constant dense<0.000000e+00> : vector<8x128xf32>
      %36 = tpu.matmul %35, %10, %cst_29 {dimension_numbers = #tpu.dot_dimension_numbers<[1], [0], [0], [1], [0, 0, 1, 1], [], []>} : vector<8x128xbf16>, vector<128x128xbf16>, vector<8x128xf32> -> vector<8x128xf32>
      %37 = arith.addf %36, %5 : vector<8x128xf32>
      %cst_30 = arith.constant 0.000000e+00 : f32
      %38 = vector.broadcast %cst_30 : f32 to vector<8x128xf32>
      %39 = arith.maximumf %37, %38 : vector<8x128xf32>
      %40 = arith.truncf %34 : vector<8x128xf32> to vector<8x128xbf16>
      %cst_31 = arith.constant dense<0.000000e+00> : vector<8x128xf32>
      %41 = tpu.matmul %40, %10, %cst_31 {dimension_numbers = #tpu.dot_dimension_numbers<[1], [0], [0], [1], [0, 0, 1, 1], [], []>} : vector<8x128xbf16>, vector<128x128xbf16>, vector<8x128xf32> -> vector<8x128xf32>
      %42 = arith.addf %41, %4 : vector<8x128xf32>
      %cst_32 = arith.constant 0.000000e+00 : f32
      %43 = vector.broadcast %cst_32 : f32 to vector<8x128xf32>
      %44 = arith.maximumf %42, %43 : vector<8x128xf32>
      %45 = arith.truncf %39 : vector<8x128xf32> to vector<8x128xbf16>
      %cst_33 = arith.constant dense<0.000000e+00> : vector<8x128xf32>
      %46 = tpu.matmul %45, %10, %cst_33 {dimension_numbers = #tpu.dot_dimension_numbers<[1], [0], [0], [1], [0, 0, 1, 1], [], []>} : vector<8x128xbf16>, vector<128x128xbf16>, vector<8x128xf32> -> vector<8x128xf32>
      %47 = arith.addf %46, %5 : vector<8x128xf32>
      %cst_34 = arith.constant 0.000000e+00 : f32
      %48 = vector.broadcast %cst_34 : f32 to vector<8x128xf32>
      %49 = arith.maximumf %47, %48 : vector<8x128xf32>
      %50 = arith.truncf %44 : vector<8x128xf32> to vector<8x128xbf16>
      %cst_35 = arith.constant dense<0.000000e+00> : vector<8x128xf32>
      %51 = tpu.matmul %50, %10, %cst_35 {dimension_numbers = #tpu.dot_dimension_numbers<[1], [0], [0], [1], [0, 0, 1, 1], [], []>} : vector<8x128xbf16>, vector<128x128xbf16>, vector<8x128xf32> -> vector<8x128xf32>
      %52 = arith.addf %51, %4 : vector<8x128xf32>
      %cst_36 = arith.constant 0.000000e+00 : f32
      %53 = vector.broadcast %cst_36 : f32 to vector<8x128xf32>
      %54 = arith.maximumf %52, %53 : vector<8x128xf32>
      %55 = arith.truncf %49 : vector<8x128xf32> to vector<8x128xbf16>
      %cst_37 = arith.constant dense<0.000000e+00> : vector<8x128xf32>
      %56 = tpu.matmul %55, %10, %cst_37 {dimension_numbers = #tpu.dot_dimension_numbers<[1], [0], [0], [1], [0, 0, 1, 1], [], []>} : vector<8x128xbf16>, vector<128x128xbf16>, vector<8x128xf32> -> vector<8x128xf32>
      %57 = arith.addf %56, %5 : vector<8x128xf32>
      %cst_38 = arith.constant 0.000000e+00 : f32
      %58 = vector.broadcast %cst_38 : f32 to vector<8x128xf32>
      %59 = arith.maximumf %57, %58 : vector<8x128xf32>
      %60 = arith.truncf %54 : vector<8x128xf32> to vector<8x128xbf16>
      %cst_39 = arith.constant dense<0.000000e+00> : vector<8x128xf32>
      %61 = tpu.matmul %60, %10, %cst_39 {dimension_numbers = #tpu.dot_dimension_numbers<[1], [0], [0], [1], [0, 0, 1, 1], [], []>} : vector<8x128xbf16>, vector<128x128xbf16>, vector<8x128xf32> -> vector<8x128xf32>
      %62 = arith.addf %61, %4 : vector<8x128xf32>
      %cst_40 = arith.constant 0.000000e+00 : f32
      %63 = vector.broadcast %cst_40 : f32 to vector<8x128xf32>
      %64 = arith.maximumf %62, %63 : vector<8x128xf32>
      %65 = arith.truncf %59 : vector<8x128xf32> to vector<8x128xbf16>
      %cst_41 = arith.constant dense<0.000000e+00> : vector<8x128xf32>
      %66 = tpu.matmul %65, %10, %cst_41 {dimension_numbers = #tpu.dot_dimension_numbers<[1], [0], [0], [1], [0, 0, 1, 1], [], []>} : vector<8x128xbf16>, vector<128x128xbf16>, vector<8x128xf32> -> vector<8x128xf32>
      %67 = arith.addf %66, %5 : vector<8x128xf32>
      %cst_42 = arith.constant 0.000000e+00 : f32
      %68 = vector.broadcast %cst_42 : f32 to vector<8x128xf32>
      %69 = arith.maximumf %67, %68 : vector<8x128xf32>
      %70 = arith.truncf %64 : vector<8x128xf32> to vector<8x128xbf16>
      %cst_43 = arith.constant dense<0.000000e+00> : vector<8x128xf32>
      %71 = tpu.matmul %70, %10, %cst_43 {dimension_numbers = #tpu.dot_dimension_numbers<[1], [0], [0], [1], [0, 0, 1, 1], [], []>} : vector<8x128xbf16>, vector<128x128xbf16>, vector<8x128xf32> -> vector<8x128xf32>
      %72 = arith.addf %71, %4 : vector<8x128xf32>
      %cst_44 = arith.constant 0.000000e+00 : f32
      %73 = vector.broadcast %cst_44 : f32 to vector<8x128xf32>
      %74 = arith.maximumf %72, %73 : vector<8x128xf32>
      %75 = arith.truncf %69 : vector<8x128xf32> to vector<8x128xbf16>
      %cst_45 = arith.constant dense<0.000000e+00> : vector<8x128xf32>
      %76 = tpu.matmul %75, %10, %cst_45 {dimension_numbers = #tpu.dot_dimension_numbers<[1], [0], [0], [1], [0, 0, 1, 1], [], []>} : vector<8x128xbf16>, vector<128x128xbf16>, vector<8x128xf32> -> vector<8x128xf32>
      %77 = arith.addf %76, %5 : vector<8x128xf32>
      %cst_46 = arith.constant 0.000000e+00 : f32
      %78 = vector.broadcast %cst_46 : f32 to vector<8x128xf32>
      %79 = arith.maximumf %77, %78 : vector<8x128xf32>
      %80 = arith.truncf %74 : vector<8x128xf32> to vector<8x128xbf16>
      %cst_47 = arith.constant dense<0.000000e+00> : vector<8x128xf32>
      %81 = tpu.matmul %80, %10, %cst_47 {dimension_numbers = #tpu.dot_dimension_numbers<[1], [0], [0], [1], [0, 0, 1, 1], [], []>} : vector<8x128xbf16>, vector<128x128xbf16>, vector<8x128xf32> -> vector<8x128xf32>
      %82 = arith.addf %81, %4 : vector<8x128xf32>
      %cst_48 = arith.constant 0.000000e+00 : f32
      %83 = vector.broadcast %cst_48 : f32 to vector<8x128xf32>
      %84 = arith.maximumf %82, %83 : vector<8x128xf32>
      %85 = arith.truncf %79 : vector<8x128xf32> to vector<8x128xbf16>
      %cst_49 = arith.constant dense<0.000000e+00> : vector<8x128xf32>
      %86 = tpu.matmul %85, %10, %cst_49 {dimension_numbers = #tpu.dot_dimension_numbers<[1], [0], [0], [1], [0, 0, 1, 1], [], []>} : vector<8x128xbf16>, vector<128x128xbf16>, vector<8x128xf32> -> vector<8x128xf32>
      %87 = arith.addf %86, %5 : vector<8x128xf32>
      %cst_50 = arith.constant 0.000000e+00 : f32
      %88 = vector.broadcast %cst_50 : f32 to vector<8x128xf32>
      %89 = arith.maximumf %87, %88 : vector<8x128xf32>
      %90 = arith.truncf %84 : vector<8x128xf32> to vector<8x128xbf16>
      %cst_51 = arith.constant dense<0.000000e+00> : vector<8x128xf32>
      %91 = tpu.matmul %90, %10, %cst_51 {dimension_numbers = #tpu.dot_dimension_numbers<[1], [0], [0], [1], [0, 0, 1, 1], [], []>} : vector<8x128xbf16>, vector<128x128xbf16>, vector<8x128xf32> -> vector<8x128xf32>
      %92 = arith.addf %91, %4 : vector<8x128xf32>
      %cst_52 = arith.constant 0.000000e+00 : f32
      %93 = vector.broadcast %cst_52 : f32 to vector<8x128xf32>
      %94 = arith.maximumf %92, %93 : vector<8x128xf32>
      %95 = arith.truncf %89 : vector<8x128xf32> to vector<8x128xbf16>
      %cst_53 = arith.constant dense<0.000000e+00> : vector<8x128xf32>
      %96 = tpu.matmul %95, %10, %cst_53 {dimension_numbers = #tpu.dot_dimension_numbers<[1], [0], [0], [1], [0, 0, 1, 1], [], []>} : vector<8x128xbf16>, vector<128x128xbf16>, vector<8x128xf32> -> vector<8x128xf32>
      %97 = arith.addf %96, %5 : vector<8x128xf32>
      %cst_54 = arith.constant 0.000000e+00 : f32
      %98 = vector.broadcast %cst_54 : f32 to vector<8x128xf32>
      %99 = arith.maximumf %97, %98 : vector<8x128xf32>
      %100 = arith.truncf %94 : vector<8x128xf32> to vector<8x128xbf16>
      %cst_55 = arith.constant dense<0.000000e+00> : vector<8x128xf32>
      %101 = tpu.matmul %100, %10, %cst_55 {dimension_numbers = #tpu.dot_dimension_numbers<[1], [0], [0], [1], [0, 0, 1, 1], [], []>} : vector<8x128xbf16>, vector<128x128xbf16>, vector<8x128xf32> -> vector<8x128xf32>
      %102 = arith.addf %101, %4 : vector<8x128xf32>
      %cst_56 = arith.constant 0.000000e+00 : f32
      %103 = vector.broadcast %cst_56 : f32 to vector<8x128xf32>
      %104 = arith.maximumf %102, %103 : vector<8x128xf32>
      %105 = arith.truncf %99 : vector<8x128xf32> to vector<8x128xbf16>
      %cst_57 = arith.constant dense<0.000000e+00> : vector<8x128xf32>
      %106 = tpu.matmul %105, %10, %cst_57 {dimension_numbers = #tpu.dot_dimension_numbers<[1], [0], [0], [1], [0, 0, 1, 1], [], []>} : vector<8x128xbf16>, vector<128x128xbf16>, vector<8x128xf32> -> vector<8x128xf32>
      %107 = arith.addf %106, %5 : vector<8x128xf32>
      %cst_58 = arith.constant 0.000000e+00 : f32
      %108 = vector.broadcast %cst_58 : f32 to vector<8x128xf32>
      %109 = arith.maximumf %107, %108 : vector<8x128xf32>
      %110 = arith.truncf %104 : vector<8x128xf32> to vector<8x128xbf16>
      %cst_59 = arith.constant dense<0.000000e+00> : vector<8x128xf32>
      %111 = tpu.matmul %110, %10, %cst_59 {dimension_numbers = #tpu.dot_dimension_numbers<[1], [0], [0], [1], [0, 0, 1, 1], [], []>} : vector<8x128xbf16>, vector<128x128xbf16>, vector<8x128xf32> -> vector<8x128xf32>
      %112 = arith.addf %111, %4 : vector<8x128xf32>
      %cst_60 = arith.constant 0.000000e+00 : f32
      %113 = vector.broadcast %cst_60 : f32 to vector<8x128xf32>
      %114 = arith.maximumf %112, %113 : vector<8x128xf32>
      %115 = arith.truncf %109 : vector<8x128xf32> to vector<8x128xbf16>
      %cst_61 = arith.constant dense<0.000000e+00> : vector<8x128xf32>
      %116 = tpu.matmul %115, %10, %cst_61 {dimension_numbers = #tpu.dot_dimension_numbers<[1], [0], [0], [1], [0, 0, 1, 1], [], []>} : vector<8x128xbf16>, vector<128x128xbf16>, vector<8x128xf32> -> vector<8x128xf32>
      %117 = arith.addf %116, %5 : vector<8x128xf32>
      %cst_62 = arith.constant 0.000000e+00 : f32
      %118 = vector.broadcast %cst_62 : f32 to vector<8x128xf32>
      %119 = arith.maximumf %117, %118 : vector<8x128xf32>
      %120 = arith.truncf %114 : vector<8x128xf32> to vector<8x128xbf16>
      %cst_63 = arith.constant dense<0.000000e+00> : vector<8x128xf32>
      %121 = tpu.matmul %120, %10, %cst_63 {dimension_numbers = #tpu.dot_dimension_numbers<[1], [0], [0], [1], [0, 0, 1, 1], [], []>} : vector<8x128xbf16>, vector<128x128xbf16>, vector<8x128xf32> -> vector<8x128xf32>
      %122 = arith.addf %121, %4 : vector<8x128xf32>
      %cst_64 = arith.constant 0.000000e+00 : f32
      %123 = vector.broadcast %cst_64 : f32 to vector<8x128xf32>
      %124 = arith.maximumf %122, %123 : vector<8x128xf32>
      %125 = arith.truncf %119 : vector<8x128xf32> to vector<8x128xbf16>
      %cst_65 = arith.constant dense<0.000000e+00> : vector<8x128xf32>
      %126 = tpu.matmul %125, %10, %cst_65 {dimension_numbers = #tpu.dot_dimension_numbers<[1], [0], [0], [1], [0, 0, 1, 1], [], []>} : vector<8x128xbf16>, vector<128x128xbf16>, vector<8x128xf32> -> vector<8x128xf32>
      %127 = arith.addf %126, %5 : vector<8x128xf32>
      %cst_66 = arith.constant 0.000000e+00 : f32
      %128 = vector.broadcast %cst_66 : f32 to vector<8x128xf32>
      %129 = arith.maximumf %127, %128 : vector<8x128xf32>
      %130 = arith.truncf %124 : vector<8x128xf32> to vector<8x128xbf16>
      %cst_67 = arith.constant dense<0.000000e+00> : vector<8x128xf32>
      %131 = tpu.matmul %130, %10, %cst_67 {dimension_numbers = #tpu.dot_dimension_numbers<[1], [0], [0], [1], [0, 0, 1, 1], [], []>} : vector<8x128xbf16>, vector<128x128xbf16>, vector<8x128xf32> -> vector<8x128xf32>
      %132 = arith.addf %131, %4 : vector<8x128xf32>
      %cst_68 = arith.constant 0.000000e+00 : f32
      %133 = vector.broadcast %cst_68 : f32 to vector<8x128xf32>
      %134 = arith.maximumf %132, %133 : vector<8x128xf32>
      %135 = arith.truncf %129 : vector<8x128xf32> to vector<8x128xbf16>
      %cst_69 = arith.constant dense<0.000000e+00> : vector<8x128xf32>
      %136 = tpu.matmul %135, %10, %cst_69 {dimension_numbers = #tpu.dot_dimension_numbers<[1], [0], [0], [1], [0, 0, 1, 1], [], []>} : vector<8x128xbf16>, vector<128x128xbf16>, vector<8x128xf32> -> vector<8x128xf32>
      %137 = arith.addf %136, %5 : vector<8x128xf32>
      %cst_70 = arith.constant 0.000000e+00 : f32
      %138 = vector.broadcast %cst_70 : f32 to vector<8x128xf32>
      %139 = arith.maximumf %137, %138 : vector<8x128xf32>
      %140 = arith.truncf %134 : vector<8x128xf32> to vector<8x128xbf16>
      %cst_71 = arith.constant dense<0.000000e+00> : vector<8x128xf32>
      %141 = tpu.matmul %140, %10, %cst_71 {dimension_numbers = #tpu.dot_dimension_numbers<[1], [0], [0], [1], [0, 0, 1, 1], [], []>} : vector<8x128xbf16>, vector<128x128xbf16>, vector<8x128xf32> -> vector<8x128xf32>
      %142 = arith.addf %141, %4 : vector<8x128xf32>
      %cst_72 = arith.constant 0.000000e+00 : f32
      %143 = vector.broadcast %cst_72 : f32 to vector<8x128xf32>
      %144 = arith.maximumf %142, %143 : vector<8x128xf32>
      %145 = arith.truncf %139 : vector<8x128xf32> to vector<8x128xbf16>
      %cst_73 = arith.constant dense<0.000000e+00> : vector<8x128xf32>
      %146 = tpu.matmul %145, %10, %cst_73 {dimension_numbers = #tpu.dot_dimension_numbers<[1], [0], [0], [1], [0, 0, 1, 1], [], []>} : vector<8x128xbf16>, vector<128x128xbf16>, vector<8x128xf32> -> vector<8x128xf32>
      %147 = arith.addf %146, %5 : vector<8x128xf32>
      %cst_74 = arith.constant 0.000000e+00 : f32
      %148 = vector.broadcast %cst_74 : f32 to vector<8x128xf32>
      %149 = arith.maximumf %147, %148 : vector<8x128xf32>
      %150 = arith.subf %144, %134 : vector<8x128xf32>
      %151 = math.absf %150 : vector<8x128xf32>
      %152 = vector.shape_cast %151 : vector<8x128xf32> to vector<1x8x128xf32>
      %cst_75 = arith.constant dense<0xFF800000> : vector<1xf32>
      %153 = vector.multi_reduction <maximumf>, %152, %cst_75 [1, 2] : vector<1x8x128xf32> to vector<1xf32>
      %154 = vector.shape_cast %153 : vector<1xf32> to vector<1x1x1xf32>
      %155 = vector.extract %154[0, 0, 0] : f32 from vector<1x1x1xf32>
      %156 = arith.subf %149, %139 : vector<8x128xf32>
      %157 = math.absf %156 : vector<8x128xf32>
      %158 = vector.shape_cast %157 : vector<8x128xf32> to vector<1x8x128xf32>
      %cst_76 = arith.constant dense<0xFF800000> : vector<1xf32>
      %159 = vector.multi_reduction <maximumf>, %158, %cst_76 [1, 2] : vector<1x8x128xf32> to vector<1xf32>
      %160 = vector.shape_cast %159 : vector<1xf32> to vector<1x1x1xf32>
      %161 = vector.extract %160[0, 0, 0] : f32 from vector<1x1x1xf32>
      %162 = arith.maximumf %155, %161 : f32
      %c1_i32 = arith.constant 1 : i32
      %163 = arith.addi %arg10, %c1_i32 : i32
      scf.yield %144, %149, %163, %162 : vector<8x128xf32>, vector<8x128xf32>, i32, f32
    }
    %cst_13 = arith.constant 3.000000e-06 : f32
    %c0_i32_14 = arith.constant 0 : i32
    %cst_15 = arith.constant 0x7F800000 : f32
    %19:4 = scf.while (%arg8 = %18#0, %arg9 = %18#1, %arg10 = %c0_i32_14, %arg11 = %cst_15) : (vector<8x128xf32>, vector<8x128xf32>, i32, f32) -> (vector<8x128xf32>, vector<8x128xf32>, i32, f32) {
      %c25_i32 = arith.constant 25 : i32
      %30 = arith.cmpi slt, %arg10, %c25_i32 : i32
      %31 = arith.cmpf oge, %arg11, %cst_13 : f32
      %32 = arith.andi %30, %31 : i1
      scf.condition(%32) %arg8, %arg9, %arg10, %arg11 : vector<8x128xf32>, vector<8x128xf32>, i32, f32
    } do {
    ^bb0(%arg8: vector<8x128xf32>, %arg9: vector<8x128xf32>, %arg10: i32, %arg11: f32):
      %cst_27 = arith.constant dense<0.000000e+00> : vector<8x128xf32>
      %30 = tpu.matmul %arg8, %0, %cst_27 {dimension_numbers = #tpu.dot_dimension_numbers<[1], [0], [0], [1], [0, 0, 1, 1], [], []>} : vector<8x128xf32>, vector<128x128xf32>, vector<8x128xf32> -> vector<8x128xf32>
      %31 = arith.addf %30, %4 : vector<8x128xf32>
      %cst_28 = arith.constant 0.000000e+00 : f32
      %32 = vector.broadcast %cst_28 : f32 to vector<8x128xf32>
      %33 = arith.maximumf %31, %32 : vector<8x128xf32>
      %cst_29 = arith.constant dense<0.000000e+00> : vector<8x128xf32>
      %34 = tpu.matmul %arg9, %0, %cst_29 {dimension_numbers = #tpu.dot_dimension_numbers<[1], [0], [0], [1], [0, 0, 1, 1], [], []>} : vector<8x128xf32>, vector<128x128xf32>, vector<8x128xf32> -> vector<8x128xf32>
      %35 = arith.addf %34, %5 : vector<8x128xf32>
      %cst_30 = arith.constant 0.000000e+00 : f32
      %36 = vector.broadcast %cst_30 : f32 to vector<8x128xf32>
      %37 = arith.maximumf %35, %36 : vector<8x128xf32>
      %cst_31 = arith.constant dense<0.000000e+00> : vector<8x128xf32>
      %38 = tpu.matmul %33, %0, %cst_31 {dimension_numbers = #tpu.dot_dimension_numbers<[1], [0], [0], [1], [0, 0, 1, 1], [], []>} : vector<8x128xf32>, vector<128x128xf32>, vector<8x128xf32> -> vector<8x128xf32>
      %39 = arith.addf %38, %4 : vector<8x128xf32>
      %cst_32 = arith.constant 0.000000e+00 : f32
      %40 = vector.broadcast %cst_32 : f32 to vector<8x128xf32>
      %41 = arith.maximumf %39, %40 : vector<8x128xf32>
      %cst_33 = arith.constant dense<0.000000e+00> : vector<8x128xf32>
      %42 = tpu.matmul %37, %0, %cst_33 {dimension_numbers = #tpu.dot_dimension_numbers<[1], [0], [0], [1], [0, 0, 1, 1], [], []>} : vector<8x128xf32>, vector<128x128xf32>, vector<8x128xf32> -> vector<8x128xf32>
      %43 = arith.addf %42, %5 : vector<8x128xf32>
      %cst_34 = arith.constant 0.000000e+00 : f32
      %44 = vector.broadcast %cst_34 : f32 to vector<8x128xf32>
      %45 = arith.maximumf %43, %44 : vector<8x128xf32>
      %cst_35 = arith.constant dense<0.000000e+00> : vector<8x128xf32>
      %46 = tpu.matmul %41, %0, %cst_35 {dimension_numbers = #tpu.dot_dimension_numbers<[1], [0], [0], [1], [0, 0, 1, 1], [], []>} : vector<8x128xf32>, vector<128x128xf32>, vector<8x128xf32> -> vector<8x128xf32>
      %47 = arith.addf %46, %4 : vector<8x128xf32>
      %cst_36 = arith.constant 0.000000e+00 : f32
      %48 = vector.broadcast %cst_36 : f32 to vector<8x128xf32>
      %49 = arith.maximumf %47, %48 : vector<8x128xf32>
      %cst_37 = arith.constant dense<0.000000e+00> : vector<8x128xf32>
      %50 = tpu.matmul %45, %0, %cst_37 {dimension_numbers = #tpu.dot_dimension_numbers<[1], [0], [0], [1], [0, 0, 1, 1], [], []>} : vector<8x128xf32>, vector<128x128xf32>, vector<8x128xf32> -> vector<8x128xf32>
      %51 = arith.addf %50, %5 : vector<8x128xf32>
      %cst_38 = arith.constant 0.000000e+00 : f32
      %52 = vector.broadcast %cst_38 : f32 to vector<8x128xf32>
      %53 = arith.maximumf %51, %52 : vector<8x128xf32>
      %cst_39 = arith.constant dense<0.000000e+00> : vector<8x128xf32>
      %54 = tpu.matmul %49, %0, %cst_39 {dimension_numbers = #tpu.dot_dimension_numbers<[1], [0], [0], [1], [0, 0, 1, 1], [], []>} : vector<8x128xf32>, vector<128x128xf32>, vector<8x128xf32> -> vector<8x128xf32>
      %55 = arith.addf %54, %4 : vector<8x128xf32>
      %cst_40 = arith.constant 0.000000e+00 : f32
      %56 = vector.broadcast %cst_40 : f32 to vector<8x128xf32>
      %57 = arith.maximumf %55, %56 : vector<8x128xf32>
      %cst_41 = arith.constant dense<0.000000e+00> : vector<8x128xf32>
      %58 = tpu.matmul %53, %0, %cst_41 {dimension_numbers = #tpu.dot_dimension_numbers<[1], [0], [0], [1], [0, 0, 1, 1], [], []>} : vector<8x128xf32>, vector<128x128xf32>, vector<8x128xf32> -> vector<8x128xf32>
      %59 = arith.addf %58, %5 : vector<8x128xf32>
      %cst_42 = arith.constant 0.000000e+00 : f32
      %60 = vector.broadcast %cst_42 : f32 to vector<8x128xf32>
      %61 = arith.maximumf %59, %60 : vector<8x128xf32>
      %cst_43 = arith.constant dense<0.000000e+00> : vector<8x128xf32>
      %62 = tpu.matmul %57, %0, %cst_43 {dimension_numbers = #tpu.dot_dimension_numbers<[1], [0], [0], [1], [0, 0, 1, 1], [], []>} : vector<8x128xf32>, vector<128x128xf32>, vector<8x128xf32> -> vector<8x128xf32>
      %63 = arith.addf %62, %4 : vector<8x128xf32>
      %cst_44 = arith.constant 0.000000e+00 : f32
      %64 = vector.broadcast %cst_44 : f32 to vector<8x128xf32>
      %65 = arith.maximumf %63, %64 : vector<8x128xf32>
      %cst_45 = arith.constant dense<0.000000e+00> : vector<8x128xf32>
      %66 = tpu.matmul %61, %0, %cst_45 {dimension_numbers = #tpu.dot_dimension_numbers<[1], [0], [0], [1], [0, 0, 1, 1], [], []>} : vector<8x128xf32>, vector<128x128xf32>, vector<8x128xf32> -> vector<8x128xf32>
      %67 = arith.addf %66, %5 : vector<8x128xf32>
      %cst_46 = arith.constant 0.000000e+00 : f32
      %68 = vector.broadcast %cst_46 : f32 to vector<8x128xf32>
      %69 = arith.maximumf %67, %68 : vector<8x128xf32>
      %cst_47 = arith.constant dense<0.000000e+00> : vector<8x128xf32>
      %70 = tpu.matmul %65, %0, %cst_47 {dimension_numbers = #tpu.dot_dimension_numbers<[1], [0], [0], [1], [0, 0, 1, 1], [], []>} : vector<8x128xf32>, vector<128x128xf32>, vector<8x128xf32> -> vector<8x128xf32>
      %71 = arith.addf %70, %4 : vector<8x128xf32>
      %cst_48 = arith.constant 0.000000e+00 : f32
      %72 = vector.broadcast %cst_48 : f32 to vector<8x128xf32>
      %73 = arith.maximumf %71, %72 : vector<8x128xf32>
      %cst_49 = arith.constant dense<0.000000e+00> : vector<8x128xf32>
      %74 = tpu.matmul %69, %0, %cst_49 {dimension_numbers = #tpu.dot_dimension_numbers<[1], [0], [0], [1], [0, 0, 1, 1], [], []>} : vector<8x128xf32>, vector<128x128xf32>, vector<8x128xf32> -> vector<8x128xf32>
      %75 = arith.addf %74, %5 : vector<8x128xf32>
      %cst_50 = arith.constant 0.000000e+00 : f32
      %76 = vector.broadcast %cst_50 : f32 to vector<8x128xf32>
      %77 = arith.maximumf %75, %76 : vector<8x128xf32>
      %cst_51 = arith.constant dense<0.000000e+00> : vector<8x128xf32>
      %78 = tpu.matmul %73, %0, %cst_51 {dimension_numbers = #tpu.dot_dimension_numbers<[1], [0], [0], [1], [0, 0, 1, 1], [], []>} : vector<8x128xf32>, vector<128x128xf32>, vector<8x128xf32> -> vector<8x128xf32>
      %79 = arith.addf %78, %4 : vector<8x128xf32>
      %cst_52 = arith.constant 0.000000e+00 : f32
      %80 = vector.broadcast %cst_52 : f32 to vector<8x128xf32>
      %81 = arith.maximumf %79, %80 : vector<8x128xf32>
      %cst_53 = arith.constant dense<0.000000e+00> : vector<8x128xf32>
      %82 = tpu.matmul %77, %0, %cst_53 {dimension_numbers = #tpu.dot_dimension_numbers<[1], [0], [0], [1], [0, 0, 1, 1], [], []>} : vector<8x128xf32>, vector<128x128xf32>, vector<8x128xf32> -> vector<8x128xf32>
      %83 = arith.addf %82, %5 : vector<8x128xf32>
      %cst_54 = arith.constant 0.000000e+00 : f32
      %84 = vector.broadcast %cst_54 : f32 to vector<8x128xf32>
      %85 = arith.maximumf %83, %84 : vector<8x128xf32>
      %cst_55 = arith.constant dense<0.000000e+00> : vector<8x128xf32>
      %86 = tpu.matmul %81, %0, %cst_55 {dimension_numbers = #tpu.dot_dimension_numbers<[1], [0], [0], [1], [0, 0, 1, 1], [], []>} : vector<8x128xf32>, vector<128x128xf32>, vector<8x128xf32> -> vector<8x128xf32>
      %87 = arith.addf %86, %4 : vector<8x128xf32>
      %cst_56 = arith.constant 0.000000e+00 : f32
      %88 = vector.broadcast %cst_56 : f32 to vector<8x128xf32>
      %89 = arith.maximumf %87, %88 : vector<8x128xf32>
      %cst_57 = arith.constant dense<0.000000e+00> : vector<8x128xf32>
      %90 = tpu.matmul %85, %0, %cst_57 {dimension_numbers = #tpu.dot_dimension_numbers<[1], [0], [0], [1], [0, 0, 1, 1], [], []>} : vector<8x128xf32>, vector<128x128xf32>, vector<8x128xf32> -> vector<8x128xf32>
      %91 = arith.addf %90, %5 : vector<8x128xf32>
      %cst_58 = arith.constant 0.000000e+00 : f32
      %92 = vector.broadcast %cst_58 : f32 to vector<8x128xf32>
      %93 = arith.maximumf %91, %92 : vector<8x128xf32>
      %cst_59 = arith.constant dense<0.000000e+00> : vector<8x128xf32>
      %94 = tpu.matmul %89, %0, %cst_59 {dimension_numbers = #tpu.dot_dimension_numbers<[1], [0], [0], [1], [0, 0, 1, 1], [], []>} : vector<8x128xf32>, vector<128x128xf32>, vector<8x128xf32> -> vector<8x128xf32>
      %95 = arith.addf %94, %4 : vector<8x128xf32>
      %cst_60 = arith.constant 0.000000e+00 : f32
      %96 = vector.broadcast %cst_60 : f32 to vector<8x128xf32>
      %97 = arith.maximumf %95, %96 : vector<8x128xf32>
      %cst_61 = arith.constant dense<0.000000e+00> : vector<8x128xf32>
      %98 = tpu.matmul %93, %0, %cst_61 {dimension_numbers = #tpu.dot_dimension_numbers<[1], [0], [0], [1], [0, 0, 1, 1], [], []>} : vector<8x128xf32>, vector<128x128xf32>, vector<8x128xf32> -> vector<8x128xf32>
      %99 = arith.addf %98, %5 : vector<8x128xf32>
      %cst_62 = arith.constant 0.000000e+00 : f32
      %100 = vector.broadcast %cst_62 : f32 to vector<8x128xf32>
      %101 = arith.maximumf %99, %100 : vector<8x128xf32>
      %cst_63 = arith.constant dense<0.000000e+00> : vector<8x128xf32>
      %102 = tpu.matmul %97, %0, %cst_63 {dimension_numbers = #tpu.dot_dimension_numbers<[1], [0], [0], [1], [0, 0, 1, 1], [], []>} : vector<8x128xf32>, vector<128x128xf32>, vector<8x128xf32> -> vector<8x128xf32>
      %103 = arith.addf %102, %4 : vector<8x128xf32>
      %cst_64 = arith.constant 0.000000e+00 : f32
      %104 = vector.broadcast %cst_64 : f32 to vector<8x128xf32>
      %105 = arith.maximumf %103, %104 : vector<8x128xf32>
      %cst_65 = arith.constant dense<0.000000e+00> : vector<8x128xf32>
      %106 = tpu.matmul %101, %0, %cst_65 {dimension_numbers = #tpu.dot_dimension_numbers<[1], [0], [0], [1], [0, 0, 1, 1], [], []>} : vector<8x128xf32>, vector<128x128xf32>, vector<8x128xf32> -> vector<8x128xf32>
      %107 = arith.addf %106, %5 : vector<8x128xf32>
      %cst_66 = arith.constant 0.000000e+00 : f32
      %108 = vector.broadcast %cst_66 : f32 to vector<8x128xf32>
      %109 = arith.maximumf %107, %108 : vector<8x128xf32>
      %cst_67 = arith.constant dense<0.000000e+00> : vector<8x128xf32>
      %110 = tpu.matmul %105, %0, %cst_67 {dimension_numbers = #tpu.dot_dimension_numbers<[1], [0], [0], [1], [0, 0, 1, 1], [], []>} : vector<8x128xf32>, vector<128x128xf32>, vector<8x128xf32> -> vector<8x128xf32>
      %111 = arith.addf %110, %4 : vector<8x128xf32>
      %cst_68 = arith.constant 0.000000e+00 : f32
      %112 = vector.broadcast %cst_68 : f32 to vector<8x128xf32>
      %113 = arith.maximumf %111, %112 : vector<8x128xf32>
      %cst_69 = arith.constant dense<0.000000e+00> : vector<8x128xf32>
      %114 = tpu.matmul %109, %0, %cst_69 {dimension_numbers = #tpu.dot_dimension_numbers<[1], [0], [0], [1], [0, 0, 1, 1], [], []>} : vector<8x128xf32>, vector<128x128xf32>, vector<8x128xf32> -> vector<8x128xf32>
      %115 = arith.addf %114, %5 : vector<8x128xf32>
      %cst_70 = arith.constant 0.000000e+00 : f32
      %116 = vector.broadcast %cst_70 : f32 to vector<8x128xf32>
      %117 = arith.maximumf %115, %116 : vector<8x128xf32>
      %cst_71 = arith.constant dense<0.000000e+00> : vector<8x128xf32>
      %118 = tpu.matmul %113, %0, %cst_71 {dimension_numbers = #tpu.dot_dimension_numbers<[1], [0], [0], [1], [0, 0, 1, 1], [], []>} : vector<8x128xf32>, vector<128x128xf32>, vector<8x128xf32> -> vector<8x128xf32>
      %119 = arith.addf %118, %4 : vector<8x128xf32>
      %cst_72 = arith.constant 0.000000e+00 : f32
      %120 = vector.broadcast %cst_72 : f32 to vector<8x128xf32>
      %121 = arith.maximumf %119, %120 : vector<8x128xf32>
      %cst_73 = arith.constant dense<0.000000e+00> : vector<8x128xf32>
      %122 = tpu.matmul %117, %0, %cst_73 {dimension_numbers = #tpu.dot_dimension_numbers<[1], [0], [0], [1], [0, 0, 1, 1], [], []>} : vector<8x128xf32>, vector<128x128xf32>, vector<8x128xf32> -> vector<8x128xf32>
      %123 = arith.addf %122, %5 : vector<8x128xf32>
      %cst_74 = arith.constant 0.000000e+00 : f32
      %124 = vector.broadcast %cst_74 : f32 to vector<8x128xf32>
      %125 = arith.maximumf %123, %124 : vector<8x128xf32>
      %126 = arith.subf %121, %113 : vector<8x128xf32>
      %127 = math.absf %126 : vector<8x128xf32>
      %128 = vector.shape_cast %127 : vector<8x128xf32> to vector<1x8x128xf32>
      %cst_75 = arith.constant dense<0xFF800000> : vector<1xf32>
      %129 = vector.multi_reduction <maximumf>, %128, %cst_75 [1, 2] : vector<1x8x128xf32> to vector<1xf32>
      %130 = vector.shape_cast %129 : vector<1xf32> to vector<1x1x1xf32>
      %131 = vector.extract %130[0, 0, 0] : f32 from vector<1x1x1xf32>
      %132 = arith.subf %125, %117 : vector<8x128xf32>
      %133 = math.absf %132 : vector<8x128xf32>
      %134 = vector.shape_cast %133 : vector<8x128xf32> to vector<1x8x128xf32>
      %cst_76 = arith.constant dense<0xFF800000> : vector<1xf32>
      %135 = vector.multi_reduction <maximumf>, %134, %cst_76 [1, 2] : vector<1x8x128xf32> to vector<1xf32>
      %136 = vector.shape_cast %135 : vector<1xf32> to vector<1x1x1xf32>
      %137 = vector.extract %136[0, 0, 0] : f32 from vector<1x1x1xf32>
      %138 = arith.maximumf %131, %137 : f32
      %c1_i32 = arith.constant 1 : i32
      %139 = arith.addi %arg10, %c1_i32 : i32
      scf.yield %121, %125, %139, %138 : vector<8x128xf32>, vector<8x128xf32>, i32, f32
    }
    %c0_16 = arith.constant 0 : index
    %c0_17 = arith.constant 0 : index
    %20 = vector.load %arg4[%c0_16, %c0_17] : memref<128x128xf32, #tpu.memory_space<vmem>>, vector<128x128xf32>
    %c0_18 = arith.constant 0 : index
    %c0_19 = arith.constant 0 : index
    %21 = vector.load %arg5[%c0_18, %c0_19] : memref<128x128xf32, #tpu.memory_space<vmem>>, vector<128x128xf32>
    %cst_20 = arith.constant dense<0.000000e+00> : vector<8x128xf32>
    %22 = tpu.matmul %19#0, %20, %cst_20 {dimension_numbers = #tpu.dot_dimension_numbers<[1], [0], [0], [1], [0, 0, 1, 1], [], []>} : vector<8x128xf32>, vector<128x128xf32>, vector<8x128xf32> -> vector<8x128xf32>
    %cst_21 = arith.constant dense<0.000000e+00> : vector<8x128xf32>
    %23 = tpu.matmul %6, %21, %cst_21 {dimension_numbers = #tpu.dot_dimension_numbers<[1], [0], [0], [1], [0, 0, 1, 1], [], []>} : vector<8x128xf32>, vector<128x128xf32>, vector<8x128xf32> -> vector<8x128xf32>
    %24 = arith.addf %22, %23 : vector<8x128xf32>
    %c0_22 = arith.constant 0 : index
    %c0_23 = arith.constant 0 : index
    %25 = vector.load %arg7[%c0_22, %c0_23] : memref<16x128xf32, #tpu.memory_space<vmem>>, vector<8x128xf32>
    tpu.vector_store %arg7[%c0_22, %c0_23], %24 {strides = array<i32>} : memref<16x128xf32, #tpu.memory_space<vmem>>, vector<8x128xf32>,
    %cst_24 = arith.constant dense<0.000000e+00> : vector<8x128xf32>
    %26 = tpu.matmul %19#1, %20, %cst_24 {dimension_numbers = #tpu.dot_dimension_numbers<[1], [0], [0], [1], [0, 0, 1, 1], [], []>} : vector<8x128xf32>, vector<128x128xf32>, vector<8x128xf32> -> vector<8x128xf32>
    %cst_25 = arith.constant dense<0.000000e+00> : vector<8x128xf32>
    %27 = tpu.matmul %7, %21, %cst_25 {dimension_numbers = #tpu.dot_dimension_numbers<[1], [0], [0], [1], [0, 0, 1, 1], [], []>} : vector<8x128xf32>, vector<128x128xf32>, vector<8x128xf32> -> vector<8x128xf32>
    %28 = arith.addf %26, %27 : vector<8x128xf32>
    %c8 = arith.constant 8 : index
    %c0_26 = arith.constant 0 : index
    %29 = vector.load %arg7[%c8, %c0_26] : memref<16x128xf32, #tpu.memory_space<vmem>>, vector<8x128xf32>
    tpu.vector_store %arg7[%c8, %c0_26], %28 {strides = array<i32>} : memref<16x128xf32, #tpu.memory_space<vmem>>, vector<8x128xf32>,
    return
  }
  func.func @transform_0(%arg0: i32) -> (i32, i32) {
    %c0_i32 = arith.constant 0 : i32
    %c0_i32_0 = arith.constant 0 : i32
    %c0_i32_1 = arith.constant 0 : i32
    return %c0_i32, %c0_i32_0 : i32, i32
  }
  func.func @transform_1(%arg0: i32) -> (i32, i32) {
    %c0_i32 = arith.constant 0 : i32
    %c0_i32_0 = arith.constant 0 : i32
    %c0_i32_1 = arith.constant 0 : i32
    return %c0_i32, %c0_i32_0 : i32, i32
  }
  func.func @transform_2(%arg0: i32) -> (i32, i32) {
    %c0_i32 = arith.constant 0 : i32
    %c0_i32_0 = arith.constant 0 : i32
    %c0_i32_1 = arith.constant 0 : i32
    return %c0_i32, %c0_i32_0 : i32, i32
  }
  func.func @transform_3(%arg0: i32) -> (i32, i32) {
    %c0_i32 = arith.constant 0 : i32
    %c0_i32_0 = arith.constant 0 : i32
    %c0_i32_1 = arith.constant 0 : i32
    return %c0_i32, %c0_i32_0 : i32, i32
  }
  func.func @transform_4(%arg0: i32) -> (i32, i32) {
    %c0_i32 = arith.constant 0 : i32
    %c0_i32_0 = arith.constant 0 : i32
    %c0_i32_1 = arith.constant 0 : i32
    return %c0_i32, %c0_i32_0 : i32, i32
  }
  func.func @transform_5(%arg0: i32) -> (i32, i32) {
    %c0_i32 = arith.constant 0 : i32
    %c0_i32_0 = arith.constant 0 : i32
    return %arg0, %c0_i32 : i32, i32
  }
  func.func @transform_6(%arg0: i32) -> (i32, i32) {
    %c0_i32 = arith.constant 0 : i32
    %c0_i32_0 = arith.constant 0 : i32
    return %arg0, %c0_i32 : i32, i32
  }
}

</mosaic_0001>

<bundles_post_ra>
// kernel: tpu_custom_call.1
= control target key start
LH: loop header
LB: loop body
LE: loop exit
PB: predicated region body
PF: predicated region fallthrough
CT: control target
= control target key end

     0   :  { %11 = vsyncpa [#allocation3], 0  ;;  %s2620_s0 = inlined_call_operand.hbm [shape: f32[128,128], index: 0, kind: input, shape index: {}]   ;;  %s2621_s1 = inlined_call_operand.hbm [shape: bf16[128,128], index: 1, kind: input, shape index: {}]   ;;  %s2622_s2 = inlined_call_operand.hbm [shape: f32[128,128], index: 2, kind: input, shape index: {}]   ;;  %s2623_s3 = inlined_call_operand.hbm [shape: f32[128,128], index: 3, kind: input, shape index: {}]   ;;  %s2624_s4 = inlined_call_operand.hbm [shape: f32[128,128], index: 4, kind: input, shape index: {}]   ;;  %s2625_s5 = inlined_call_operand.hbm [shape: f32[16,128], index: 5, kind: input, shape index: {}]   ;;  %s2626_s6 = inlined_call_operand.hbm [shape: f32[16,128], index: 6, kind: output, shape index: {}]  }
   0x1   :  { %12 = vsyncpa [#allocation6], 0 }
   0x2   :  { %13 = vsyncpa [#allocation9], 0 }
   0x3   :  { %14 = vsyncpa [#allocation12], 0  ;;  %s33_s23 = sshll.u32 %s2621_s1, 4  ;;  %s34_s23 = int_to_ptr.hbm [resolvable:$true] %s33_s23 }
   0x4   :  { %15 = vsyncpa [#allocation4], 0  ;;  %s1737_s24 = smov [#allocation5]   ;;  %s1738_s26 = smov 64  }
   0x5   :  { %s35_s25 = sshll.u32 %s1737_s24, 4  ;;  %s1739_s27 = smov 4   ;;  %s36_s25 = int_to_ptr.vmem [resolvable:$true] %s35_s25 }
   0x6   :  { %41 = dma.hbm_to_vmem [thread:$0]  %s34_s23, 1024, %s36_s25, [#allocation6], %s1738_s26, %s1738_s26, %s1739_s27  }
   0x7   :  { %s59_s30 = sshll.u32 %s2623_s3, 4  ;;  %s1740_s7 = smov [#allocation8]   ;;  %s60_s30 = int_to_ptr.hbm [resolvable:$true] %s59_s30 }
   0x8   :  { %s61_s8 = sshll.u32 %s1740_s7, 4  ;;  %s20_s11 = sshll.u32 %s2620_s0, 4  ;;  %s62_s8 = int_to_ptr.vmem [resolvable:$true] %s61_s8  ;;  %s21_s11 = int_to_ptr.hbm [resolvable:$true] %s20_s11 }
   0x9   :  { %s1741_s1 = smov 128   ;;  %s1742_s12 = smov 8  }
   0xa   :  { %67 = dma.hbm_to_vmem [thread:$0]  %s60_s30, 2048, %s62_s8, [#allocation9], %s1741_s1, %s1741_s1, %s1742_s12  }
   0xb   :  { %s46_s15 = sshll.u32 %s2622_s2, 4  ;;  %s1743_s3 = smov [#allocation2]   ;;  %s47_s15 = int_to_ptr.hbm [resolvable:$true] %s46_s15 }
   0xc   :  { %s22_s16 = sshll.u32 %s1743_s3, 4  ;;  %s1744_s0 = smov [#allocation7]   ;;  %s23_s16 = int_to_ptr.vmem [resolvable:$true] %s22_s16 }
   0xd   :  { %28 = dma.hbm_to_vmem [thread:$0]  %s21_s11, 2048, %s23_s16, [#allocation3], %s1741_s1, %s1741_s1, %s1742_s12  }
   0xe   :  { %s48_s17 = sshll.u32 %s1744_s0, 4  ;;  %s72_s20 = sshll.u32 %s2624_s4, 4  ;;  %s49_s17 = int_to_ptr.vmem [resolvable:$true] %s48_s17  ;;  %s73_s20 = int_to_ptr.hbm [resolvable:$true] %s72_s20 }
   0xf   :  { %54 = dma.hbm_to_vmem [thread:$0]  %s47_s15, 2048, %s49_s17, [#allocation6], %s1741_s1, %s1741_s1, %s1742_s12  }
  0x10   :  { %s85_s22 = sshll.u32 %s2625_s5, 4  ;;  %s1745_s23 = smov [#allocation10]   ;;  %s86_s22 = int_to_ptr.hbm [resolvable:$true] %s85_s22 }
  0x11   :  { %s74_s24 = sshll.u32 %s1745_s23, 4  ;;  %s1746_s25 = smov [#allocation11]   ;;  %s75_s24 = int_to_ptr.vmem [resolvable:$true] %s74_s24 }
  0x12   :  { %80 = dma.hbm_to_vmem [thread:$0]  %s73_s20, 2048, %s75_s24, [#allocation9], %s1741_s1, %s1741_s1, %s1742_s12  }
  0x13   :  { %s87_s4 = sshll.u32 %s1746_s25, 4  ;;  %s88_s4 = int_to_ptr.vmem [resolvable:$true] %s87_s4 }
  0x14   :  { %93 = dma.hbm_to_vmem [thread:$0]  %s86_s22, 256, %s88_s4, [#allocation12], %s1741_s1, %s1741_s1, %s1742_s12  }
  0x15   :  { %1695 = dma.done.wait [#allocation3], 2048  }
  0x16   :  { %1696 = vsyncadd [#allocation3], 4294965248 }
  0x17   :  { %1697 = dma.done.wait [#allocation6], 3072  }
  0x18   :  { %1698 = vsyncadd [#allocation6], 4294964224 }
  0x19   :  { %1699 = dma.done.wait [#allocation9], 4096  }
  0x1a   :  { %1700 = vsyncadd [#allocation9], 4294963200 }
  0x1b   :  { %1701 = dma.done.wait [#allocation12], 256  }
  0x1c   :  { %1702 = vsyncadd [#allocation12], 4294967040  ;;  %v1817_v0 = vld [vmem:[#allocation2] sm:$0xff]  ;;  %v1819_v1 = vld [vmem:[#allocation2 + $0x8] sm:$0xff]  ;;  %s1747_s27 = smov 3e-06  }
  0x1d   :  { %v1821_v2 = vld [vmem:[#allocation2 + $0x10] sm:$0xff]  ;;  %v1823_v3 = vld [vmem:[#allocation2 + $0x18] sm:$0xff]  ;;  %v1825_v4 = vld [vmem:[#allocation2 + $0x20] sm:$0xff]  ;;  %v1896_v62 = vmov 0.0   ;;  %v1898_v63 = vmov 0.0  }
  0x1e   :  { %v1827_v5 = vld [vmem:[#allocation2 + $0x28] sm:$0xff]  ;;  %v1829_v6 = vld [vmem:[#allocation2 + $0x30] sm:$0xff]  ;;  %v1831_v7 = vld [vmem:[#allocation2 + $0x38] sm:$0xff] }
  0x1f   :  { %v1833_v8 = vld [vmem:[#allocation2 + $0x40] sm:$0xff]  ;;  %v1835_v9 = vld [vmem:[#allocation2 + $0x48] sm:$0xff]  ;;  %v1837_v10 = vld [vmem:[#allocation2 + $0x50] sm:$0xff] }
  0x20   :  { %v1839_v11 = vld [vmem:[#allocation2 + $0x58] sm:$0xff]  ;;  %v1841_v12 = vld [vmem:[#allocation2 + $0x60] sm:$0xff]  ;;  %v1843_v13 = vld [vmem:[#allocation2 + $0x68] sm:$0xff] }
  0x21   :  { %v1845_v14 = vld [vmem:[#allocation2 + $0x70] sm:$0xff]  ;;  %v1847_v15 = vld [vmem:[#allocation2 + $0x78] sm:$0xff]  ;;  %v1849_v16 = vld [vmem:[#allocation5] sm:$0xf] }
  0x22   :  { %v1851_v17 = vld [vmem:[#allocation5] sm:$0xf0]  ;;  %v1853_v18 = vld [vmem:[#allocation5 + $0x8] sm:$0xf]  ;;  %v1855_v19 = vld [vmem:[#allocation5 + $0x8] sm:$0xf0] }
  0x23   :  { %v1857_v20 = vld [vmem:[#allocation5 + $0x10] sm:$0xf]  ;;  %v1859_v21 = vld [vmem:[#allocation5 + $0x10] sm:$0xf0]  ;;  %v1861_v22 = vld [vmem:[#allocation5 + $0x18] sm:$0xf] }
  0x24   :  { %v1863_v23 = vld [vmem:[#allocation5 + $0x18] sm:$0xf0]  ;;  %v1865_v24 = vld [vmem:[#allocation5 + $0x20] sm:$0xf]  ;;  %v1867_v25 = vld [vmem:[#allocation5 + $0x20] sm:$0xf0] }
  0x25   :  { %v1869_v26 = vld [vmem:[#allocation5 + $0x28] sm:$0xf]  ;;  %v1871_v27 = vld [vmem:[#allocation5 + $0x28] sm:$0xf0]  ;;  %v1873_v28 = vld [vmem:[#allocation5 + $0x30] sm:$0xf] }
  0x26   :  { %v1875_v29 = vld [vmem:[#allocation5 + $0x30] sm:$0xf0]  ;;  %v1877_v30 = vld [vmem:[#allocation5 + $0x38] sm:$0xf]  ;;  %v1879_v31 = vld [vmem:[#allocation5 + $0x38] sm:$0xf0] }
  0x27   :  { %v151_v32 = vld [vmem:[#allocation7 + $0x78] sm:$0xff]  ;;  %v150_v33 = vld [vmem:[#allocation7 + $0x70] sm:$0xff]  ;;  %v149_v34 = vld [vmem:[#allocation7 + $0x68] sm:$0xff] }
  0x28   :  { %152 = vmatpush.msra.mxu0 %v151_v32  ;;  %1393 = vmatpush.msra.mxu1 %v151_v32  ;;  %v148_v35 = vld [vmem:[#allocation7 + $0x60] sm:$0xff]  ;;  %v147_v36 = vld [vmem:[#allocation7 + $0x58] sm:$0xff]  ;;  %v146_v37 = vld [vmem:[#allocation7 + $0x50] sm:$0xff] }
  0x29   :  { %v145_v38 = vld [vmem:[#allocation7 + $0x48] sm:$0xff]  ;;  %v144_v39 = vld [vmem:[#allocation7 + $0x40] sm:$0xff]  ;;  %v143_v40 = vld [vmem:[#allocation7 + $0x38] sm:$0xff] }
  0x2a   :  { %153 = vmatpush.msra.mxu0 %v150_v33  ;;  %1394 = vmatpush.msra.mxu1 %v150_v33  ;;  %v142_v41 = vld [vmem:[#allocation7 + $0x30] sm:$0xff]  ;;  %v141_v42 = vld [vmem:[#allocation7 + $0x28] sm:$0xff]  ;;  %v140_v43 = vld [vmem:[#allocation7 + $0x20] sm:$0xff] }
  0x2b   :  { %v139_v44 = vld [vmem:[#allocation7 + $0x18] sm:$0xff]  ;;  %v138_v45 = vld [vmem:[#allocation7 + $0x10] sm:$0xff]  ;;  %v137_v46 = vld [vmem:[#allocation7 + $0x8] sm:$0xff] }
  0x2c   :  { %154 = vmatpush.msra.mxu0 %v149_v34  ;;  %1395 = vmatpush.msra.mxu1 %v149_v34  ;;  %v136_v47 = vld [vmem:[#allocation7] sm:$0xff]  ;;  %v1883_v49 = vld [vmem:[#allocation11 + $0x8] sm:$0xff] }
  0x2d   :  { %v1881_v48 = vld [vmem:[#allocation11] sm:$0xff] }
  0x2e   :  { %155 = vmatpush.msra.mxu0 %v148_v35  ;;  %1396 = vmatpush.msra.mxu1 %v148_v35 }
  0x30   :  { %156 = vmatpush.msra.mxu0 %v147_v36  ;;  %1397 = vmatpush.msra.mxu1 %v147_v36 }
  0x32   :  { %157 = vmatpush.msra.mxu0 %v146_v37  ;;  %1398 = vmatpush.msra.mxu1 %v146_v37 }
  0x34   :  { %158 = vmatpush.msra.mxu0 %v145_v38  ;;  %1399 = vmatpush.msra.mxu1 %v145_v38 }
  0x36   :  { %159 = vmatpush.msra.mxu0 %v144_v39  ;;  %1400 = vmatpush.msra.mxu1 %v144_v39 }
  0x38   :  { %160 = vmatpush.msra.mxu0 %v143_v40  ;;  %1401 = vmatpush.msra.mxu1 %v143_v40 }
  0x3a   :  { %161 = vmatpush.msra.mxu0 %v142_v41  ;;  %1402 = vmatpush.msra.mxu1 %v142_v41 }
  0x3c   :  { %162 = vmatpush.msra.mxu0 %v141_v42  ;;  %1403 = vmatpush.msra.mxu1 %v141_v42 }
  0x3e   :  { %163 = vmatpush.msra.mxu0 %v140_v43  ;;  %1404 = vmatpush.msra.mxu1 %v140_v43 }
  0x40   :  { %164 = vmatpush.msra.mxu0 %v139_v44  ;;  %1405 = vmatpush.msra.mxu1 %v139_v44 }
  0x42   :  { %165 = vmatpush.msra.mxu0 %v138_v45  ;;  %1406 = vmatpush.msra.mxu1 %v138_v45 }
  0x44   :  { %166 = vmatpush.msra.mxu0 %v137_v46  ;;  %1407 = vmatpush.msra.mxu1 %v137_v46 }
  0x46   :  { %167 = vmatpush.msra.mxu0 %v136_v47  ;;  %1408 = vmatpush.msra.mxu1 %v136_v47 }
  0x47   :  { %168 = vmatmul.f32.vlgmr.msra.gmra.mxu0 %v1881_v48  ;;  %171 = vmatmul.f32.vlgmr.msra.gmra.mxu1 %v1883_v49 }
  0xc4   :  { %v1887_v50 = vpop.f32.mrf.mxu0  ;;  %v1889_v51 = vpop.f32.mrf.mxu1 }
  0xc5   :  { %v191_v52 = vand.u32 2147483647, %v1887_v50  ;;  %v192_v53 = vand.u32 2147483647, %v1889_v51 }
  0xc7   :  { %v193_v54 = vmax.f32 %v191_v52, %v192_v53 }
  0xc9   :  { %194 = vmax.xlane.f32.xlu0 %v193_v54 }
 0x13c   :  { %v195_v55 = vpop.xlane.xlu0 %194 }
 0x13d   :  { %v196_v56 = vrot.slane %v195_v55, 4 }
 0x13f   :  { %v197_v57 = vmax.f32 %v195_v55, %v196_v56 }
 0x141   :  { %v198_v58 = vrot.slane %v197_v57, 2 }
 0x143   :  { %v199_v59 = vmax.f32 %v197_v57, %v198_v58 }
 0x145   :  { %v200_v60 = vrot.slane %v199_v59, 1 }
 0x147   :  { %v201_v61 = vmax.f32 %v199_v59, %v200_v60 }
 0x149   :  { %1409 = vpush %v201_v61 }
 0x17a   :  { %s1410_s5 = spop %1409 }
 0x17b   :  { %s203_s26 = smul.f32 0.015625, %s1410_s5 }
 0x17d   :  { %s1893_s28 = smax.f32 %s1747_s27, %s203_s26 }
 0x17e   :  { %p1351_p0 = scmp.le.f32.partialorder %s1893_s28, inf }
 0x17f   :  { %s1900_s29 = smov (%p1351_p0), 0   ;;  %v1902_v32 = vmov (%p1351_p0), 0.0   ;;  %v1904_v33 = vmov (%p1351_p0), 0.0  }
 0x180   :  { %1330 = sbr.rel (!%p1351_p0) target bundleno = 2240 (0x8c0), region = 76 }
 0x185 LB: > { %v1913_v34 = vor.u32 %v1879_v31, %v1877_v30  ;;  %v1919_v35 = vor.u32 %v1875_v29, %v1873_v28  ;;  %v1927_v36 = vor.u32 %v1871_v27, %v1869_v26  ;;  %v1935_v37 = vor.u32 %v1867_v25, %v1865_v24  ;;  %s647_s29 = sadd.s32 1, %s1707_s29   ;;  %v1715_v33 = vphi %v1904_v33, %v2628_v33   ;;  %v1711_v32 = vphi %v1902_v32, %v2627_v32   ;;  %s1707_s29 = sphi %s1900_s29, %s647_s29  }
 0x186   : > { %v1943_v38 = vor.u32 %v1863_v23, %v1861_v22  ;;  %v1951_v39 = vor.u32 %v1859_v21, %v1857_v20  ;;  %v1959_v40 = vor.u32 %v1855_v19, %v1853_v18  ;;  %v1967_v41 = vor.u32 %v1851_v17, %v1849_v16  ;;  %p210_p1 = scmp.lt.s32.totalorder %s647_s29, 25 }
 0x187   : > { %265 = vmatpush.bf16.msra.mxu0 %v1913_v34  ;;  %280 = vmatpush.bf16.msra.mxu1 %v1913_v34  ;;  %v216_v42 = vpack.c.bf16 %v1715_v33, %v1715_v33  ;;  %v279_v43 = vpack.c.bf16 %v1711_v32, %v1711_v32 }
 0x188   : > { %295 = vmatpush.bf16.msra.mxu2 %v1913_v34  ;;  %310 = vmatpush.bf16.msra.mxu3 %v1913_v34 }
 0x18b   : > { %266 = vmatpush.bf16.msra.mxu0 %v1919_v35  ;;  %281 = vmatpush.bf16.msra.mxu1 %v1919_v35 }
 0x18c   : > { %296 = vmatpush.bf16.msra.mxu2 %v1919_v35  ;;  %311 = vmatpush.bf16.msra.mxu3 %v1919_v35 }
 0x18f   : > { %267 = vmatpush.bf16.msra.mxu0 %v1927_v36  ;;  %282 = vmatpush.bf16.msra.mxu1 %v1927_v36 }
 0x190   : > { %297 = vmatpush.bf16.msra.mxu2 %v1927_v36  ;;  %312 = vmatpush.bf16.msra.mxu3 %v1927_v36 }
 0x193   : > { %268 = vmatpush.bf16.msra.mxu0 %v1935_v37  ;;  %283 = vmatpush.bf16.msra.mxu1 %v1935_v37 }
 0x194   : > { %298 = vmatpush.bf16.msra.mxu2 %v1935_v37  ;;  %313 = vmatpush.bf16.msra.mxu3 %v1935_v37 }
 0x197   : > { %269 = vmatpush.bf16.msra.mxu0 %v1943_v38  ;;  %284 = vmatpush.bf16.msra.mxu1 %v1943_v38 }
 0x198   : > { %299 = vmatpush.bf16.msra.mxu2 %v1943_v38  ;;  %314 = vmatpush.bf16.msra.mxu3 %v1943_v38 }
 0x19b   : > { %270 = vmatpush.bf16.msra.mxu0 %v1951_v39  ;;  %285 = vmatpush.bf16.msra.mxu1 %v1951_v39 }
 0x19c   : > { %300 = vmatpush.bf16.msra.mxu2 %v1951_v39  ;;  %315 = vmatpush.bf16.msra.mxu3 %v1951_v39 }
 0x19f   : > { %271 = vmatpush.bf16.msra.mxu0 %v1959_v40  ;;  %286 = vmatpush.bf16.msra.mxu1 %v1959_v40 }
 0x1a0   : > { %301 = vmatpush.bf16.msra.mxu2 %v1959_v40  ;;  %316 = vmatpush.bf16.msra.mxu3 %v1959_v40 }
 0x1a3   : > { %272 = vmatpush.bf16.msra.mxu0 %v1967_v41  ;;  %287 = vmatpush.bf16.msra.mxu1 %v1967_v41 }
 0x1a4   : > { %302 = vmatpush.bf16.msra.mxu2 %v1967_v41  ;;  %317 = vmatpush.bf16.msra.mxu3 %v1967_v41 }
 0x1a6   : > { %273 = vmatmul.bf16.vlgmr.msra.gmra.mxu0 %v216_v42  ;;  %288 = vmatmul.bf16.vlgmr.msra.gmra.mxu1 %v279_v43 }
 0x1a7   : > { %325 = vmatpush.bf16.msrb.mxu0 %v1913_v34  ;;  %340 = vmatpush.bf16.msrb.mxu1 %v1913_v34 }
 0x1a8   : > { %355 = vmatpush.bf16.msrb.mxu2 %v1913_v34  ;;  %370 = vmatpush.bf16.msrb.mxu3 %v1913_v34 }
 0x1ab   : > { %326 = vmatpush.bf16.msrb.mxu0 %v1919_v35  ;;  %341 = vmatpush.bf16.msrb.mxu1 %v1919_v35 }
 0x1ac   : > { %356 = vmatpush.bf16.msrb.mxu2 %v1919_v35  ;;  %371 = vmatpush.bf16.msrb.mxu3 %v1919_v35 }
 0x1af   : > { %327 = vmatpush.bf16.msrb.mxu0 %v1927_v36  ;;  %342 = vmatpush.bf16.msrb.mxu1 %v1927_v36 }
 0x1b0   : > { %357 = vmatpush.bf16.msrb.mxu2 %v1927_v36  ;;  %372 = vmatpush.bf16.msrb.mxu3 %v1927_v36 }
 0x1b3   : > { %328 = vmatpush.bf16.msrb.mxu0 %v1935_v37  ;;  %343 = vmatpush.bf16.msrb.mxu1 %v1935_v37 }
 0x1b4   : > { %358 = vmatpush.bf16.msrb.mxu2 %v1935_v37  ;;  %373 = vmatpush.bf16.msrb.mxu3 %v1935_v37 }
 0x1b7   : > { %329 = vmatpush.bf16.msrb.mxu0 %v1943_v38  ;;  %344 = vmatpush.bf16.msrb.mxu1 %v1943_v38 }
 0x1b8   : > { %359 = vmatpush.bf16.msrb.mxu2 %v1943_v38  ;;  %374 = vmatpush.bf16.msrb.mxu3 %v1943_v38 }
 0x1bb   : > { %330 = vmatpush.bf16.msrb.mxu0 %v1951_v39  ;;  %345 = vmatpush.bf16.msrb.mxu1 %v1951_v39 }
 0x1bc   : > { %360 = vmatpush.bf16.msrb.mxu2 %v1951_v39  ;;  %375 = vmatpush.bf16.msrb.mxu3 %v1951_v39 }
 0x1bf   : > { %331 = vmatpush.bf16.msrb.mxu0 %v1959_v40  ;;  %346 = vmatpush.bf16.msrb.mxu1 %v1959_v40 }
 0x1c0   : > { %361 = vmatpush.bf16.msrb.mxu2 %v1959_v40  ;;  %376 = vmatpush.bf16.msrb.mxu3 %v1959_v40 }
 0x1c3   : > { %332 = vmatpush.bf16.msrb.mxu0 %v1967_v41  ;;  %347 = vmatpush.bf16.msrb.mxu1 %v1967_v41 }
 0x1c4   : > { %362 = vmatpush.bf16.msrb.mxu2 %v1967_v41  ;;  %377 = vmatpush.bf16.msrb.mxu3 %v1967_v41 }
 0x1c7   : > { %385 = vmatpush.bf16.msra.mxu0 %v1913_v34  ;;  %400 = vmatpush.bf16.msra.mxu1 %v1913_v34 }
 0x1cb   : > { %386 = vmatpush.bf16.msra.mxu0 %v1919_v35  ;;  %401 = vmatpush.bf16.msra.mxu1 %v1919_v35 }
 0x1cf   : > { %387 = vmatpush.bf16.msra.mxu0 %v1927_v36  ;;  %402 = vmatpush.bf16.msra.mxu1 %v1927_v36 }
 0x1d3   : > { %388 = vmatpush.bf16.msra.mxu0 %v1935_v37  ;;  %403 = vmatpush.bf16.msra.mxu1 %v1935_v37 }
 0x1d7   : > { %389 = vmatpush.bf16.msra.mxu0 %v1943_v38  ;;  %404 = vmatpush.bf16.msra.mxu1 %v1943_v38 }
 0x1db   : > { %390 = vmatpush.bf16.msra.mxu0 %v1951_v39  ;;  %405 = vmatpush.bf16.msra.mxu1 %v1951_v39 }
 0x1df   : > { %391 = vmatpush.bf16.msra.mxu0 %v1959_v40  ;;  %406 = vmatpush.bf16.msra.mxu1 %v1959_v40 }
 0x1e3   : > { %392 = vmatpush.bf16.msra.mxu0 %v1967_v41  ;;  %407 = vmatpush.bf16.msra.mxu1 %v1967_v41 }
 0x223   : > { %v274_v44 = vpop.f32.mrf.mxu0  ;;  %v289_v45 = vpop.f32.mrf.mxu1 }
 0x224   : > { %v275_v46 = vadd.f32 %v274_v44, %v1887_v50  ;;  %v290_v47 = vadd.f32 %v289_v45, %v1889_v51 }
 0x226   : > { %v278_v52 = vmax.f32 %v275_v46, 0.0  ;;  %v293_v53 = vmax.f32 %v290_v47, 0.0 }
 0x228   : > { %v294_v54 = vpack.c.bf16 %v278_v52, %v278_v52  ;;  %v309_v55 = vpack.c.bf16 %v293_v53, %v293_v53 }
 0x22a   : > { %303 = vmatmul.bf16.vlgmr.msra.gmra.mxu2 %v294_v54  ;;  %318 = vmatmul.bf16.vlgmr.msra.gmra.mxu3 %v309_v55 }
 0x22b   : > { %v276_v56 = vpop.f32.mrf.mxu0  ;;  %v291_v57 = vpop.f32.mrf.mxu1  ;;  %415 = vmatpush.bf16.msra.mxu2 %v1913_v34  ;;  %430 = vmatpush.bf16.msra.mxu3 %v1913_v34 }
 0x22f   : > { %416 = vmatpush.bf16.msra.mxu2 %v1919_v35  ;;  %431 = vmatpush.bf16.msra.mxu3 %v1919_v35 }
 0x233   : > { %417 = vmatpush.bf16.msra.mxu2 %v1927_v36  ;;  %432 = vmatpush.bf16.msra.mxu3 %v1927_v36 }
 0x237   : > { %418 = vmatpush.bf16.msra.mxu2 %v1935_v37  ;;  %433 = vmatpush.bf16.msra.mxu3 %v1935_v37 }
 0x23b   : > { %419 = vmatpush.bf16.msra.mxu2 %v1943_v38  ;;  %434 = vmatpush.bf16.msra.mxu3 %v1943_v38 }
 0x23f   : > { %420 = vmatpush.bf16.msra.mxu2 %v1951_v39  ;;  %435 = vmatpush.bf16.msra.mxu3 %v1951_v39 }
 0x243   : > { %421 = vmatpush.bf16.msra.mxu2 %v1959_v40  ;;  %436 = vmatpush.bf16.msra.mxu3 %v1959_v40 }
 0x247   : > { %422 = vmatpush.bf16.msra.mxu2 %v1967_v41  ;;  %437 = vmatpush.bf16.msra.mxu3 %v1967_v41 }
 0x2ad   : > { %v304_v58 = vpop.f32.mrf.mxu2  ;;  %v319_v59 = vpop.f32.mrf.mxu3 }
 0x2ae   : > { %v305_v60 = vadd.f32 %v304_v58, %v1887_v50  ;;  %v320_v61 = vadd.f32 %v319_v59, %v1889_v51 }
 0x2b0   : > { %v308_v62 = vmax.f32 %v305_v60, 0.0  ;;  %v323_v63 = vmax.f32 %v320_v61, 0.0 }
 0x2b2   : > { %v324_v32 = vpack.c.bf16 %v308_v62, %v308_v62  ;;  %v339_v33 = vpack.c.bf16 %v323_v63, %v323_v63 }
 0x2b4   : > { %333 = vmatmul.bf16.vlgmr.msrb.gmra.mxu0 %v324_v32  ;;  %348 = vmatmul.bf16.vlgmr.msrb.gmra.mxu1 %v339_v33 }
 0x2b5   : > { %v306_v42 = vpop.f32.mrf.mxu2  ;;  %v321_v43 = vpop.f32.mrf.mxu3  ;;  %445 = vmatpush.bf16.msrb.mxu0 %v1913_v34  ;;  %460 = vmatpush.bf16.msrb.mxu1 %v1913_v34 }
 0x2b9   : > { %446 = vmatpush.bf16.msrb.mxu0 %v1919_v35  ;;  %461 = vmatpush.bf16.msrb.mxu1 %v1919_v35 }
 0x2bd   : > { %447 = vmatpush.bf16.msrb.mxu0 %v1927_v36  ;;  %462 = vmatpush.bf16.msrb.mxu1 %v1927_v36 }
 0x2c1   : > { %448 = vmatpush.bf16.msrb.mxu0 %v1935_v37  ;;  %463 = vmatpush.bf16.msrb.mxu1 %v1935_v37 }
 0x2c5   : > { %449 = vmatpush.bf16.msrb.mxu0 %v1943_v38  ;;  %464 = vmatpush.bf16.msrb.mxu1 %v1943_v38 }
 0x2c9   : > { %450 = vmatpush.bf16.msrb.mxu0 %v1951_v39  ;;  %465 = vmatpush.bf16.msrb.mxu1 %v1951_v39 }
 0x2cd   : > { %451 = vmatpush.bf16.msrb.mxu0 %v1959_v40  ;;  %466 = vmatpush.bf16.msrb.mxu1 %v1959_v40 }
 0x2d1   : > { %452 = vmatpush.bf16.msrb.mxu0 %v1967_v41  ;;  %467 = vmatpush.bf16.msrb.mxu1 %v1967_v41 }
 0x331   : > { %v334_v44 = vpop.f32.mrf.mxu0  ;;  %v349_v45 = vpop.f32.mrf.mxu1 }
 0x332   : > { %v335_v46 = vadd.f32 %v334_v44, %v1887_v50  ;;  %v350_v47 = vadd.f32 %v349_v45, %v1889_v51 }
 0x334   : > { %v338_v52 = vmax.f32 %v335_v46, 0.0  ;;  %v353_v53 = vmax.f32 %v350_v47, 0.0 }
 0x336   : > { %v354_v54 = vpack.c.bf16 %v338_v52, %v338_v52  ;;  %v369_v55 = vpack.c.bf16 %v353_v53, %v353_v53 }
 0x338   : > { %363 = vmatmul.bf16.vlgmr.msrb.gmra.mxu2 %v354_v54  ;;  %378 = vmatmul.bf16.vlgmr.msrb.gmra.mxu3 %v369_v55 }
 0x339   : > { %v336_v56 = vpop.f32.mrf.mxu0  ;;  %v351_v57 = vpop.f32.mrf.mxu1  ;;  %475 = vmatpush.bf16.msrb.mxu2 %v1913_v34  ;;  %490 = vmatpush.bf16.msrb.mxu3 %v1913_v34 }
 0x33d   : > { %476 = vmatpush.bf16.msrb.mxu2 %v1919_v35  ;;  %491 = vmatpush.bf16.msrb.mxu3 %v1919_v35 }
 0x341   : > { %477 = vmatpush.bf16.msrb.mxu2 %v1927_v36  ;;  %492 = vmatpush.bf16.msrb.mxu3 %v1927_v36 }
 0x345   : > { %478 = vmatpush.bf16.msrb.mxu2 %v1935_v37  ;;  %493 = vmatpush.bf16.msrb.mxu3 %v1935_v37 }
 0x349   : > { %479 = vmatpush.bf16.msrb.mxu2 %v1943_v38  ;;  %494 = vmatpush.bf16.msrb.mxu3 %v1943_v38 }
 0x34d   : > { %480 = vmatpush.bf16.msrb.mxu2 %v1951_v39  ;;  %495 = vmatpush.bf16.msrb.mxu3 %v1951_v39 }
 0x351   : > { %481 = vmatpush.bf16.msrb.mxu2 %v1959_v40  ;;  %496 = vmatpush.bf16.msrb.mxu3 %v1959_v40 }
 0x355   : > { %482 = vmatpush.bf16.msrb.mxu2 %v1967_v41  ;;  %497 = vmatpush.bf16.msrb.mxu3 %v1967_v41 }
 0x3bb   : > { %v364_v58 = vpop.f32.mrf.mxu2  ;;  %v379_v59 = vpop.f32.mrf.mxu3 }
 0x3bc   : > { %v365_v60 = vadd.f32 %v364_v58, %v1887_v50  ;;  %v380_v61 = vadd.f32 %v379_v59, %v1889_v51 }
 0x3be   : > { %v368_v62 = vmax.f32 %v365_v60, 0.0  ;;  %v383_v63 = vmax.f32 %v380_v61, 0.0 }
 0x3c0   : > { %v384_v32 = vpack.c.bf16 %v368_v62, %v368_v62  ;;  %v399_v33 = vpack.c.bf16 %v383_v63, %v383_v63 }
 0x3c2   : > { %393 = vmatmul.bf16.vlgmr.msra.gmra.mxu0 %v384_v32  ;;  %408 = vmatmul.bf16.vlgmr.msra.gmra.mxu1 %v399_v33 }
 0x3c3   : > { %v366_v42 = vpop.f32.mrf.mxu2  ;;  %v381_v43 = vpop.f32.mrf.mxu3  ;;  %505 = vmatpush.bf16.msra.mxu0 %v1913_v34  ;;  %520 = vmatpush.bf16.msra.mxu1 %v1913_v34 }
 0x3c7   : > { %506 = vmatpush.bf16.msra.mxu0 %v1919_v35  ;;  %521 = vmatpush.bf16.msra.mxu1 %v1919_v35 }
 0x3cb   : > { %507 = vmatpush.bf16.msra.mxu0 %v1927_v36  ;;  %522 = vmatpush.bf16.msra.mxu1 %v1927_v36 }
 0x3cf   : > { %508 = vmatpush.bf16.msra.mxu0 %v1935_v37  ;;  %523 = vmatpush.bf16.msra.mxu1 %v1935_v37 }
 0x3d3   : > { %509 = vmatpush.bf16.msra.mxu0 %v1943_v38  ;;  %524 = vmatpush.bf16.msra.mxu1 %v1943_v38 }
 0x3d7   : > { %510 = vmatpush.bf16.msra.mxu0 %v1951_v39  ;;  %525 = vmatpush.bf16.msra.mxu1 %v1951_v39 }
 0x3db   : > { %511 = vmatpush.bf16.msra.mxu0 %v1959_v40  ;;  %526 = vmatpush.bf16.msra.mxu1 %v1959_v40 }
 0x3df   : > { %512 = vmatpush.bf16.msra.mxu0 %v1967_v41  ;;  %527 = vmatpush.bf16.msra.mxu1 %v1967_v41 }
 0x43f   : > { %v394_v44 = vpop.f32.mrf.mxu0  ;;  %v409_v45 = vpop.f32.mrf.mxu1 }
 0x440   : > { %v395_v46 = vadd.f32 %v394_v44, %v1887_v50  ;;  %v410_v47 = vadd.f32 %v409_v45, %v1889_v51 }
 0x442   : > { %v398_v52 = vmax.f32 %v395_v46, 0.0  ;;  %v413_v53 = vmax.f32 %v410_v47, 0.0 }
 0x444   : > { %v414_v54 = vpack.c.bf16 %v398_v52, %v398_v52  ;;  %v429_v55 = vpack.c.bf16 %v413_v53, %v413_v53 }
 0x446   : > { %423 = vmatmul.bf16.vlgmr.msra.gmra.mxu2 %v414_v54  ;;  %438 = vmatmul.bf16.vlgmr.msra.gmra.mxu3 %v429_v55 }
 0x447   : > { %v396_v56 = vpop.f32.mrf.mxu0  ;;  %v411_v57 = vpop.f32.mrf.mxu1  ;;  %535 = vmatpush.bf16.msra.mxu2 %v1913_v34  ;;  %550 = vmatpush.bf16.msra.mxu3 %v1913_v34 }
 0x44b   : > { %536 = vmatpush.bf16.msra.mxu2 %v1919_v35  ;;  %551 = vmatpush.bf16.msra.mxu3 %v1919_v35 }
 0x44f   : > { %537 = vmatpush.bf16.msra.mxu2 %v1927_v36  ;;  %552 = vmatpush.bf16.msra.mxu3 %v1927_v36 }
 0x453   : > { %538 = vmatpush.bf16.msra.mxu2 %v1935_v37  ;;  %553 = vmatpush.bf16.msra.mxu3 %v1935_v37 }
 0x457   : > { %539 = vmatpush.bf16.msra.mxu2 %v1943_v38  ;;  %554 = vmatpush.bf16.msra.mxu3 %v1943_v38 }
 0x45b   : > { %540 = vmatpush.bf16.msra.mxu2 %v1951_v39  ;;  %555 = vmatpush.bf16.msra.mxu3 %v1951_v39 }
 0x45f   : > { %541 = vmatpush.bf16.msra.mxu2 %v1959_v40  ;;  %556 = vmatpush.bf16.msra.mxu3 %v1959_v40 }
 0x463   : > { %542 = vmatpush.bf16.msra.mxu2 %v1967_v41  ;;  %557 = vmatpush.bf16.msra.mxu3 %v1967_v41 }
 0x4c9   : > { %v424_v58 = vpop.f32.mrf.mxu2  ;;  %v439_v59 = vpop.f32.mrf.mxu3 }
 0x4ca   : > { %v425_v60 = vadd.f32 %v424_v58, %v1887_v50  ;;  %v440_v61 = vadd.f32 %v439_v59, %v1889_v51 }
 0x4cc   : > { %v428_v62 = vmax.f32 %v425_v60, 0.0  ;;  %v443_v63 = vmax.f32 %v440_v61, 0.0 }
 0x4ce   : > { %v444_v32 = vpack.c.bf16 %v428_v62, %v428_v62  ;;  %v459_v33 = vpack.c.bf16 %v443_v63, %v443_v63 }
 0x4d0   : > { %453 = vmatmul.bf16.vlgmr.msrb.gmra.mxu0 %v444_v32  ;;  %468 = vmatmul.bf16.vlgmr.msrb.gmra.mxu1 %v459_v33 }
 0x4d1   : > { %v426_v42 = vpop.f32.mrf.mxu2  ;;  %v441_v43 = vpop.f32.mrf.mxu3  ;;  %565 = vmatpush.bf16.msrb.mxu0 %v1913_v34  ;;  %580 = vmatpush.bf16.msrb.mxu1 %v1913_v34 }
 0x4d5   : > { %566 = vmatpush.bf16.msrb.mxu0 %v1919_v35  ;;  %581 = vmatpush.bf16.msrb.mxu1 %v1919_v35 }
 0x4d9   : > { %567 = vmatpush.bf16.msrb.mxu0 %v1927_v36  ;;  %582 = vmatpush.bf16.msrb.mxu1 %v1927_v36 }
 0x4dd   : > { %568 = vmatpush.bf16.msrb.mxu0 %v1935_v37  ;;  %583 = vmatpush.bf16.msrb.mxu1 %v1935_v37 }
 0x4e1   : > { %569 = vmatpush.bf16.msrb.mxu0 %v1943_v38  ;;  %584 = vmatpush.bf16.msrb.mxu1 %v1943_v38 }
 0x4e5   : > { %570 = vmatpush.bf16.msrb.mxu0 %v1951_v39  ;;  %585 = vmatpush.bf16.msrb.mxu1 %v1951_v39 }
 0x4e9   : > { %571 = vmatpush.bf16.msrb.mxu0 %v1959_v40  ;;  %586 = vmatpush.bf16.msrb.mxu1 %v1959_v40 }
 0x4ed   : > { %572 = vmatpush.bf16.msrb.mxu0 %v1967_v41  ;;  %587 = vmatpush.bf16.msrb.mxu1 %v1967_v41 }
 0x54d   : > { %v454_v44 = vpop.f32.mrf.mxu0  ;;  %v469_v45 = vpop.f32.mrf.mxu1 }
 0x54e   : > { %v455_v46 = vadd.f32 %v454_v44, %v1887_v50  ;;  %v470_v47 = vadd.f32 %v469_v45, %v1889_v51 }
 0x550   : > { %v458_v52 = vmax.f32 %v455_v46, 0.0  ;;  %v473_v53 = vmax.f32 %v470_v47, 0.0 }
 0x552   : > { %v474_v54 = vpack.c.bf16 %v458_v52, %v458_v52  ;;  %v489_v55 = vpack.c.bf16 %v473_v53, %v473_v53 }
 0x554   : > { %483 = vmatmul.bf16.vlgmr.msrb.gmra.mxu2 %v474_v54  ;;  %498 = vmatmul.bf16.vlgmr.msrb.gmra.mxu3 %v489_v55 }
 0x555   : > { %v456_v56 = vpop.f32.mrf.mxu0  ;;  %v471_v57 = vpop.f32.mrf.mxu1  ;;  %595 = vmatpush.bf16.msrb.mxu2 %v1913_v34  ;;  %610 = vmatpush.bf16.msrb.mxu3 %v1913_v34 }
 0x559   : > { %596 = vmatpush.bf16.msrb.mxu2 %v1919_v35  ;;  %611 = vmatpush.bf16.msrb.mxu3 %v1919_v35 }
 0x55d   : > { %597 = vmatpush.bf16.msrb.mxu2 %v1927_v36  ;;  %612 = vmatpush.bf16.msrb.mxu3 %v1927_v36 }
 0x561   : > { %598 = vmatpush.bf16.msrb.mxu2 %v1935_v37  ;;  %613 = vmatpush.bf16.msrb.mxu3 %v1935_v37 }
 0x565   : > { %599 = vmatpush.bf16.msrb.mxu2 %v1943_v38  ;;  %614 = vmatpush.bf16.msrb.mxu3 %v1943_v38 }
 0x569   : > { %600 = vmatpush.bf16.msrb.mxu2 %v1951_v39  ;;  %615 = vmatpush.bf16.msrb.mxu3 %v1951_v39 }
 0x56d   : > { %601 = vmatpush.bf16.msrb.mxu2 %v1959_v40  ;;  %616 = vmatpush.bf16.msrb.mxu3 %v1959_v40 }
 0x571   : > { %602 = vmatpush.bf16.msrb.mxu2 %v1967_v41  ;;  %617 = vmatpush.bf16.msrb.mxu3 %v1967_v41 }
 0x5d7   : > { %v484_v34 = vpop.f32.mrf.mxu2  ;;  %v499_v35 = vpop.f32.mrf.mxu3 }
 0x5d8   : > { %v485_v36 = vadd.f32 %v484_v34, %v1887_v50  ;;  %v500_v37 = vadd.f32 %v499_v35, %v1889_v51 }
 0x5da   : > { %v488_v58 = vmax.f32 %v485_v36, 0.0  ;;  %v503_v38 = vmax.f32 %v500_v37, 0.0 }
 0x5dc   : > { %v504_v59 = vpack.c.bf16 %v488_v58, %v488_v58  ;;  %v519_v60 = vpack.c.bf16 %v503_v38, %v503_v38 }
 0x5de   : > { %513 = vmatmul.bf16.vlgmr.msra.gmra.mxu0 %v504_v59  ;;  %528 = vmatmul.bf16.vlgmr.msra.gmra.mxu1 %v519_v60 }
 0x5df   : > { %v486_v39 = vpop.f32.mrf.mxu2  ;;  %v501_v61 = vpop.f32.mrf.mxu3 }
 0x65b   : > { %v514_v62 = vpop.f32.mrf.mxu0  ;;  %v529_v40 = vpop.f32.mrf.mxu1 }
 0x65c   : > { %v515_v63 = vadd.f32 %v514_v62, %v1887_v50  ;;  %v530_v41 = vadd.f32 %v529_v40, %v1889_v51 }
 0x65e   : > { %v518_v32 = vmax.f32 %v515_v63, 0.0  ;;  %v533_v33 = vmax.f32 %v530_v41, 0.0 }
 0x660   : > { %v534_v42 = vpack.c.bf16 %v518_v32, %v518_v32  ;;  %v549_v43 = vpack.c.bf16 %v533_v33, %v533_v33 }
 0x662   : > { %543 = vmatmul.bf16.vlgmr.msra.gmra.mxu2 %v534_v42  ;;  %558 = vmatmul.bf16.vlgmr.msra.gmra.mxu3 %v549_v43 }
 0x663   : > { %v516_v44 = vpop.f32.mrf.mxu0  ;;  %v531_v45 = vpop.f32.mrf.mxu1 }
 0x6e5   : > { %v544_v46 = vpop.f32.mrf.mxu2  ;;  %v559_v47 = vpop.f32.mrf.mxu3 }
 0x6e6   : > { %v545_v52 = vadd.f32 %v544_v46, %v1887_v50  ;;  %v560_v53 = vadd.f32 %v559_v47, %v1889_v51 }
 0x6e8   : > { %v548_v54 = vmax.f32 %v545_v52, 0.0  ;;  %v563_v55 = vmax.f32 %v560_v53, 0.0 }
 0x6ea   : > { %v564_v56 = vpack.c.bf16 %v548_v54, %v548_v54  ;;  %v579_v57 = vpack.c.bf16 %v563_v55, %v563_v55 }
 0x6ec   : > { %573 = vmatmul.bf16.vlgmr.msrb.gmra.mxu0 %v564_v56  ;;  %588 = vmatmul.bf16.vlgmr.msrb.gmra.mxu1 %v579_v57 }
 0x6ed   : > { %v546_v34 = vpop.f32.mrf.mxu2  ;;  %v561_v35 = vpop.f32.mrf.mxu3 }
 0x769   : > { %v574_v36 = vpop.f32.mrf.mxu0  ;;  %v589_v37 = vpop.f32.mrf.mxu1 }
 0x76a   : > { %v575_v58 = vadd.f32 %v574_v36, %v1887_v50  ;;  %v590_v38 = vadd.f32 %v589_v37, %v1889_v51 }
 0x76c   : > { %v578_v59 = vmax.f32 %v575_v58, 0.0  ;;  %v593_v60 = vmax.f32 %v590_v38, 0.0 }
 0x76e   : > { %v594_v39 = vpack.c.bf16 %v578_v59, %v578_v59  ;;  %v609_v61 = vpack.c.bf16 %v593_v60, %v593_v60 }
 0x770   : > { %603 = vmatmul.bf16.vlgmr.msrb.gmra.mxu2 %v594_v39  ;;  %618 = vmatmul.bf16.vlgmr.msrb.gmra.mxu3 %v609_v61 }
 0x771   : > { %v576_v62 = vpop.f32.mrf.mxu0  ;;  %v591_v40 = vpop.f32.mrf.mxu1 }
 0x7f3   : > { %v604_v63 = vpop.f32.mrf.mxu2  ;;  %v619_v41 = vpop.f32.mrf.mxu3 }
 0x7f4   : > { %v605_v32 = vadd.f32 %v604_v63, %v1887_v50  ;;  %v620_v33 = vadd.f32 %v619_v41, %v1889_v51 }
 0x7f6   : > { %v608_v42 = vmax.f32 %v605_v32, 0.0   ;;  %v623_v44 = vmax.f32 %v620_v33, 0.0  }
 0x7f8   : > { %v624_v43 = vsub.f32 %v608_v42, %v578_v59  ;;  %v635_v52 = vsub.f32 %v623_v44, %v593_v60  ;;  %v2627_v32 = vmov %v623_v44  ;;  %v2628_v33 = vmov %v608_v42 }
 0x7fa   : > { %v625_v45 = vand.u32 2147483647, %v624_v43  ;;  %v636_v53 = vand.u32 2147483647, %v635_v52 }
 0x7fb   : > { %v606_v46 = vpop.f32.mrf.mxu2  ;;  %v621_v47 = vpop.f32.mrf.mxu3 }
 0x7fc   : > { %626 = vmax.xlane.f32.xlu0 %v625_v45 }
 0x804   : > { %637 = vmax.xlane.f32.xlu0 %v636_v53 }
 0x86f   : > { %v627_v54 = vpop.xlane.xlu0 %626 }
 0x870   : > { %v628_v55 = vrot.slane %v627_v54, 4 }
 0x872   : > { %v629_v56 = vmax.f32 %v627_v54, %v628_v55 }
 0x874   : > { %v630_v57 = vrot.slane %v629_v56, 2 }
 0x876   : > { %v631_v34 = vmax.f32 %v629_v56, %v630_v57 }
 0x877   : > { %v638_v35 = vpop.xlane.xlu0 %637 }
 0x878   : > { %v639_v36 = vrot.slane %v638_v35, 4  ;;  %v632_v37 = vrot.slane %v631_v34, 1 }
 0x87a   : > { %v640_v58 = vmax.f32 %v638_v35, %v639_v36  ;;  %v633_v38 = vmax.f32 %v631_v34, %v632_v37 }
 0x87c   : > { %v641_v59 = vrot.slane %v640_v58, 2  ;;  %1411 = vpush %v633_v38 }
 0x87e   : > { %v642_v39 = vmax.f32 %v640_v58, %v641_v59 }
 0x880   : > { %v643_v61 = vrot.slane %v642_v39, 1 }
 0x882   : > { %v644_v62 = vmax.f32 %v642_v39, %v643_v61 }
 0x884   : > { %1413 = vpush %v644_v62 }
 0x8ad   : > { %s1412_s30 = spop %1411 }
 0x8b5   : > { %s1414_s7 = spop %1413 }
 0x8b6   : > { %s646_s8 = smax.f32 %s1414_s7, %s1412_s30 }
 0x8b7   : > { %p211_p2 = scmp.ge.f32.partialorder %s646_s8, %s1893_s28 }
 0x8b9   : > { %p212_p3 = pnand %p211_p2, %p210_p1 }
 0x8ba   :  { %v2629_v62 = vmov (%p212_p3), %v623_v44  ;;  %v2630_v63 = vmov (%p212_p3), %v608_v42 }
 0x8bb   :  { %215 = sbr.rel (!%p212_p3) target bundleno = 389 (0x185), region = 82 }
 0x8c0 PF:  { %s2173_s9 = smov 0   ;;  %v1723_v63 = vphi %v1898_v63, %v2630_v63   ;;  %v1719_v62 = vphi %v1896_v62, %v2629_v62  }
 0x8c1 LB: > { %659 = vmatpush.msra.mxu0 %v1847_v15  ;;  %680 = vmatpush.msra.mxu1 %v1847_v15  ;;  %s1186_s9 = sadd.s32 1, %s1727_s9   ;;  %v1735_v63 = vphi %v1723_v63, %v2634_v63   ;;  %v1731_v62 = vphi %v1719_v62, %v2633_v62   ;;  %s1727_s9 = sphi %s2173_s9, %s1186_s9  }
 0x8c2   : > { %701 = vmatpush.msra.mxu2 %v1847_v15  ;;  %722 = vmatpush.msra.mxu3 %v1847_v15  ;;  %p653_p4 = scmp.lt.s32.totalorder %s1186_s9, 25 }
 0x8c3   : > { %660 = vmatpush.msra.mxu0 %v1845_v14  ;;  %681 = vmatpush.msra.mxu1 %v1845_v14 }
 0x8c4   : > { %702 = vmatpush.msra.mxu2 %v1845_v14  ;;  %723 = vmatpush.msra.mxu3 %v1845_v14 }
 0x8c5   : > { %661 = vmatpush.msra.mxu0 %v1843_v13  ;;  %682 = vmatpush.msra.mxu1 %v1843_v13 }
 0x8c6   : > { %703 = vmatpush.msra.mxu2 %v1843_v13  ;;  %724 = vmatpush.msra.mxu3 %v1843_v13 }
 0x8c7   : > { %662 = vmatpush.msra.mxu0 %v1841_v12  ;;  %683 = vmatpush.msra.mxu1 %v1841_v12 }
 0x8c8   : > { %704 = vmatpush.msra.mxu2 %v1841_v12  ;;  %725 = vmatpush.msra.mxu3 %v1841_v12 }
 0x8c9   : > { %663 = vmatpush.msra.mxu0 %v1839_v11  ;;  %684 = vmatpush.msra.mxu1 %v1839_v11 }
 0x8ca   : > { %705 = vmatpush.msra.mxu2 %v1839_v11  ;;  %726 = vmatpush.msra.mxu3 %v1839_v11 }
 0x8cb   : > { %664 = vmatpush.msra.mxu0 %v1837_v10  ;;  %685 = vmatpush.msra.mxu1 %v1837_v10 }
 0x8cc   : > { %706 = vmatpush.msra.mxu2 %v1837_v10  ;;  %727 = vmatpush.msra.mxu3 %v1837_v10 }
 0x8cd   : > { %665 = vmatpush.msra.mxu0 %v1835_v9  ;;  %686 = vmatpush.msra.mxu1 %v1835_v9 }
 0x8ce   : > { %707 = vmatpush.msra.mxu2 %v1835_v9  ;;  %728 = vmatpush.msra.mxu3 %v1835_v9 }
 0x8cf   : > { %666 = vmatpush.msra.mxu0 %v1833_v8  ;;  %687 = vmatpush.msra.mxu1 %v1833_v8 }
 0x8d0   : > { %708 = vmatpush.msra.mxu2 %v1833_v8  ;;  %729 = vmatpush.msra.mxu3 %v1833_v8 }
 0x8d1   : > { %667 = vmatpush.msra.mxu0 %v1831_v7  ;;  %688 = vmatpush.msra.mxu1 %v1831_v7 }
 0x8d2   : > { %709 = vmatpush.msra.mxu2 %v1831_v7  ;;  %730 = vmatpush.msra.mxu3 %v1831_v7 }
 0x8d3   : > { %668 = vmatpush.msra.mxu0 %v1829_v6  ;;  %689 = vmatpush.msra.mxu1 %v1829_v6 }
 0x8d4   : > { %710 = vmatpush.msra.mxu2 %v1829_v6  ;;  %731 = vmatpush.msra.mxu3 %v1829_v6 }
 0x8d5   : > { %669 = vmatpush.msra.mxu0 %v1827_v5  ;;  %690 = vmatpush.msra.mxu1 %v1827_v5 }
 0x8d6   : > { %711 = vmatpush.msra.mxu2 %v1827_v5  ;;  %732 = vmatpush.msra.mxu3 %v1827_v5 }
 0x8d7   : > { %670 = vmatpush.msra.mxu0 %v1825_v4  ;;  %691 = vmatpush.msra.mxu1 %v1825_v4 }
 0x8d8   : > { %712 = vmatpush.msra.mxu2 %v1825_v4  ;;  %733 = vmatpush.msra.mxu3 %v1825_v4 }
 0x8d9   : > { %671 = vmatpush.msra.mxu0 %v1823_v3  ;;  %692 = vmatpush.msra.mxu1 %v1823_v3 }
 0x8da   : > { %713 = vmatpush.msra.mxu2 %v1823_v3  ;;  %734 = vmatpush.msra.mxu3 %v1823_v3 }
 0x8db   : > { %672 = vmatpush.msra.mxu0 %v1821_v2  ;;  %693 = vmatpush.msra.mxu1 %v1821_v2 }
 0x8dc   : > { %714 = vmatpush.msra.mxu2 %v1821_v2  ;;  %735 = vmatpush.msra.mxu3 %v1821_v2 }
 0x8dd   : > { %673 = vmatpush.msra.mxu0 %v1819_v1  ;;  %694 = vmatpush.msra.mxu1 %v1819_v1 }
 0x8de   : > { %715 = vmatpush.msra.mxu2 %v1819_v1  ;;  %736 = vmatpush.msra.mxu3 %v1819_v1 }
 0x8df   : > { %674 = vmatpush.msra.mxu0 %v1817_v0  ;;  %695 = vmatpush.msra.mxu1 %v1817_v0 }
 0x8e0   : > { %675 = vmatmul.f32.vlgmr.msra.gmra.mxu0 %v1735_v63  ;;  %696 = vmatmul.f32.vlgmr.msra.gmra.mxu1 %v1731_v62 }
 0x8e1   : > { %716 = vmatpush.msra.mxu2 %v1817_v0  ;;  %737 = vmatpush.msra.mxu3 %v1817_v0 }
 0x8e2   : > { %743 = vmatpush.msrb.mxu0 %v1847_v15  ;;  %764 = vmatpush.msrb.mxu1 %v1847_v15 }
 0x8e3   : > { %785 = vmatpush.msrb.mxu2 %v1847_v15  ;;  %806 = vmatpush.msrb.mxu3 %v1847_v15 }
 0x8e4   : > { %744 = vmatpush.msrb.mxu0 %v1845_v14  ;;  %765 = vmatpush.msrb.mxu1 %v1845_v14 }
 0x8e5   : > { %786 = vmatpush.msrb.mxu2 %v1845_v14  ;;  %807 = vmatpush.msrb.mxu3 %v1845_v14 }
 0x8e6   : > { %745 = vmatpush.msrb.mxu0 %v1843_v13  ;;  %766 = vmatpush.msrb.mxu1 %v1843_v13 }
 0x8e7   : > { %787 = vmatpush.msrb.mxu2 %v1843_v13  ;;  %808 = vmatpush.msrb.mxu3 %v1843_v13 }
 0x8e8   : > { %746 = vmatpush.msrb.mxu0 %v1841_v12  ;;  %767 = vmatpush.msrb.mxu1 %v1841_v12 }
 0x8e9   : > { %788 = vmatpush.msrb.mxu2 %v1841_v12  ;;  %809 = vmatpush.msrb.mxu3 %v1841_v12 }
 0x8ea   : > { %747 = vmatpush.msrb.mxu0 %v1839_v11  ;;  %768 = vmatpush.msrb.mxu1 %v1839_v11 }
 0x8eb   : > { %789 = vmatpush.msrb.mxu2 %v1839_v11  ;;  %810 = vmatpush.msrb.mxu3 %v1839_v11 }
 0x8ec   : > { %748 = vmatpush.msrb.mxu0 %v1837_v10  ;;  %769 = vmatpush.msrb.mxu1 %v1837_v10 }
 0x8ed   : > { %790 = vmatpush.msrb.mxu2 %v1837_v10  ;;  %811 = vmatpush.msrb.mxu3 %v1837_v10 }
 0x8ee   : > { %749 = vmatpush.msrb.mxu0 %v1835_v9  ;;  %770 = vmatpush.msrb.mxu1 %v1835_v9 }
 0x8ef   : > { %791 = vmatpush.msrb.mxu2 %v1835_v9  ;;  %812 = vmatpush.msrb.mxu3 %v1835_v9 }
 0x8f0   : > { %750 = vmatpush.msrb.mxu0 %v1833_v8  ;;  %771 = vmatpush.msrb.mxu1 %v1833_v8 }
 0x8f1   : > { %792 = vmatpush.msrb.mxu2 %v1833_v8  ;;  %813 = vmatpush.msrb.mxu3 %v1833_v8 }
 0x8f2   : > { %751 = vmatpush.msrb.mxu0 %v1831_v7  ;;  %772 = vmatpush.msrb.mxu1 %v1831_v7 }
 0x8f3   : > { %793 = vmatpush.msrb.mxu2 %v1831_v7  ;;  %814 = vmatpush.msrb.mxu3 %v1831_v7 }
 0x8f4   : > { %752 = vmatpush.msrb.mxu0 %v1829_v6  ;;  %773 = vmatpush.msrb.mxu1 %v1829_v6 }
 0x8f5   : > { %794 = vmatpush.msrb.mxu2 %v1829_v6  ;;  %815 = vmatpush.msrb.mxu3 %v1829_v6 }
 0x8f6   : > { %753 = vmatpush.msrb.mxu0 %v1827_v5  ;;  %774 = vmatpush.msrb.mxu1 %v1827_v5 }
 0x8f7   : > { %795 = vmatpush.msrb.mxu2 %v1827_v5  ;;  %816 = vmatpush.msrb.mxu3 %v1827_v5 }
 0x8f8   : > { %754 = vmatpush.msrb.mxu0 %v1825_v4  ;;  %775 = vmatpush.msrb.mxu1 %v1825_v4 }
 0x8f9   : > { %796 = vmatpush.msrb.mxu2 %v1825_v4  ;;  %817 = vmatpush.msrb.mxu3 %v1825_v4 }
 0x8fa   : > { %755 = vmatpush.msrb.mxu0 %v1823_v3  ;;  %776 = vmatpush.msrb.mxu1 %v1823_v3 }
 0x8fb   : > { %797 = vmatpush.msrb.mxu2 %v1823_v3  ;;  %818 = vmatpush.msrb.mxu3 %v1823_v3 }
 0x8fc   : > { %756 = vmatpush.msrb.mxu0 %v1821_v2  ;;  %777 = vmatpush.msrb.mxu1 %v1821_v2 }
 0x8fd   : > { %798 = vmatpush.msrb.mxu2 %v1821_v2  ;;  %819 = vmatpush.msrb.mxu3 %v1821_v2 }
 0x8fe   : > { %757 = vmatpush.msrb.mxu0 %v1819_v1  ;;  %778 = vmatpush.msrb.mxu1 %v1819_v1 }
 0x8ff   : > { %799 = vmatpush.msrb.mxu2 %v1819_v1  ;;  %820 = vmatpush.msrb.mxu3 %v1819_v1 }
 0x900   : > { %758 = vmatpush.msrb.mxu0 %v1817_v0  ;;  %779 = vmatpush.msrb.mxu1 %v1817_v0 }
 0x901   : > { %800 = vmatpush.msrb.mxu2 %v1817_v0  ;;  %821 = vmatpush.msrb.mxu3 %v1817_v0 }
 0x902   : > { %827 = vmatpush.msra.mxu0 %v1847_v15  ;;  %848 = vmatpush.msra.mxu1 %v1847_v15 }
 0x904   : > { %828 = vmatpush.msra.mxu0 %v1845_v14  ;;  %849 = vmatpush.msra.mxu1 %v1845_v14 }
 0x906   : > { %829 = vmatpush.msra.mxu0 %v1843_v13  ;;  %850 = vmatpush.msra.mxu1 %v1843_v13 }
 0x908   : > { %830 = vmatpush.msra.mxu0 %v1841_v12  ;;  %851 = vmatpush.msra.mxu1 %v1841_v12 }
 0x90a   : > { %831 = vmatpush.msra.mxu0 %v1839_v11  ;;  %852 = vmatpush.msra.mxu1 %v1839_v11 }
 0x90c   : > { %832 = vmatpush.msra.mxu0 %v1837_v10  ;;  %853 = vmatpush.msra.mxu1 %v1837_v10 }
 0x90e   : > { %833 = vmatpush.msra.mxu0 %v1835_v9  ;;  %854 = vmatpush.msra.mxu1 %v1835_v9 }
 0x910   : > { %834 = vmatpush.msra.mxu0 %v1833_v8  ;;  %855 = vmatpush.msra.mxu1 %v1833_v8 }
 0x912   : > { %835 = vmatpush.msra.mxu0 %v1831_v7  ;;  %856 = vmatpush.msra.mxu1 %v1831_v7 }
 0x914   : > { %836 = vmatpush.msra.mxu0 %v1829_v6  ;;  %857 = vmatpush.msra.mxu1 %v1829_v6 }
 0x916   : > { %837 = vmatpush.msra.mxu0 %v1827_v5  ;;  %858 = vmatpush.msra.mxu1 %v1827_v5 }
 0x918   : > { %838 = vmatpush.msra.mxu0 %v1825_v4  ;;  %859 = vmatpush.msra.mxu1 %v1825_v4 }
 0x91a   : > { %839 = vmatpush.msra.mxu0 %v1823_v3  ;;  %860 = vmatpush.msra.mxu1 %v1823_v3 }
 0x91c   : > { %840 = vmatpush.msra.mxu0 %v1821_v2  ;;  %861 = vmatpush.msra.mxu1 %v1821_v2 }
 0x91e   : > { %841 = vmatpush.msra.mxu0 %v1819_v1  ;;  %862 = vmatpush.msra.mxu1 %v1819_v1 }
 0x920   : > { %842 = vmatpush.msra.mxu0 %v1817_v0  ;;  %863 = vmatpush.msra.mxu1 %v1817_v0 }
 0x95d   : > { %v676_v16 = vpop.f32.mrf.mxu0  ;;  %v697_v17 = vpop.f32.mrf.mxu1 }
 0x95e   : > { %v677_v18 = vadd.f32 %v676_v16, %v1887_v50  ;;  %v698_v19 = vadd.f32 %v697_v17, %v1889_v51 }
 0x960   : > { %v679_v20 = vmax.f32 %v677_v18, 0.0  ;;  %v700_v21 = vmax.f32 %v698_v19, 0.0 }
 0x962   : > { %717 = vmatmul.f32.vlgmr.msra.gmra.mxu2 %v679_v20  ;;  %738 = vmatmul.f32.vlgmr.msra.gmra.mxu3 %v700_v21 }
 0x963   : > { %869 = vmatpush.msra.mxu2 %v1847_v15  ;;  %890 = vmatpush.msra.mxu3 %v1847_v15 }
 0x965   : > { %870 = vmatpush.msra.mxu2 %v1845_v14  ;;  %891 = vmatpush.msra.mxu3 %v1845_v14 }
 0x967   : > { %871 = vmatpush.msra.mxu2 %v1843_v13  ;;  %892 = vmatpush.msra.mxu3 %v1843_v13 }
 0x969   : > { %872 = vmatpush.msra.mxu2 %v1841_v12  ;;  %893 = vmatpush.msra.mxu3 %v1841_v12 }
 0x96b   : > { %873 = vmatpush.msra.mxu2 %v1839_v11  ;;  %894 = vmatpush.msra.mxu3 %v1839_v11 }
 0x96d   : > { %874 = vmatpush.msra.mxu2 %v1837_v10  ;;  %895 = vmatpush.msra.mxu3 %v1837_v10 }
 0x96f   : > { %875 = vmatpush.msra.mxu2 %v1835_v9  ;;  %896 = vmatpush.msra.mxu3 %v1835_v9 }
 0x971   : > { %876 = vmatpush.msra.mxu2 %v1833_v8  ;;  %897 = vmatpush.msra.mxu3 %v1833_v8 }
 0x973   : > { %877 = vmatpush.msra.mxu2 %v1831_v7  ;;  %898 = vmatpush.msra.mxu3 %v1831_v7 }
 0x975   : > { %878 = vmatpush.msra.mxu2 %v1829_v6  ;;  %899 = vmatpush.msra.mxu3 %v1829_v6 }
 0x977   : > { %879 = vmatpush.msra.mxu2 %v1827_v5  ;;  %900 = vmatpush.msra.mxu3 %v1827_v5 }
 0x979   : > { %880 = vmatpush.msra.mxu2 %v1825_v4  ;;  %901 = vmatpush.msra.mxu3 %v1825_v4 }
 0x97b   : > { %881 = vmatpush.msra.mxu2 %v1823_v3  ;;  %902 = vmatpush.msra.mxu3 %v1823_v3 }
 0x97d   : > { %882 = vmatpush.msra.mxu2 %v1821_v2  ;;  %903 = vmatpush.msra.mxu3 %v1821_v2 }
 0x97f   : > { %883 = vmatpush.msra.mxu2 %v1819_v1  ;;  %904 = vmatpush.msra.mxu3 %v1819_v1 }
 0x981   : > { %884 = vmatpush.msra.mxu2 %v1817_v0  ;;  %905 = vmatpush.msra.mxu3 %v1817_v0 }
 0x9e5   : > { %v718_v22 = vpop.f32.mrf.mxu2  ;;  %v739_v23 = vpop.f32.mrf.mxu3 }
 0x9e6   : > { %v719_v24 = vadd.f32 %v718_v22, %v1887_v50  ;;  %v740_v25 = vadd.f32 %v739_v23, %v1889_v51 }
 0x9e8   : > { %v721_v26 = vmax.f32 %v719_v24, 0.0  ;;  %v742_v27 = vmax.f32 %v740_v25, 0.0 }
 0x9ea   : > { %759 = vmatmul.f32.vlgmr.msrb.gmra.mxu0 %v721_v26  ;;  %780 = vmatmul.f32.vlgmr.msrb.gmra.mxu1 %v742_v27 }
 0x9eb   : > { %911 = vmatpush.msrb.mxu0 %v1847_v15  ;;  %932 = vmatpush.msrb.mxu1 %v1847_v15 }
 0x9ed   : > { %912 = vmatpush.msrb.mxu0 %v1845_v14  ;;  %933 = vmatpush.msrb.mxu1 %v1845_v14 }
 0x9ef   : > { %913 = vmatpush.msrb.mxu0 %v1843_v13  ;;  %934 = vmatpush.msrb.mxu1 %v1843_v13 }
 0x9f1   : > { %914 = vmatpush.msrb.mxu0 %v1841_v12  ;;  %935 = vmatpush.msrb.mxu1 %v1841_v12 }
 0x9f3   : > { %915 = vmatpush.msrb.mxu0 %v1839_v11  ;;  %936 = vmatpush.msrb.mxu1 %v1839_v11 }
 0x9f5   : > { %916 = vmatpush.msrb.mxu0 %v1837_v10  ;;  %937 = vmatpush.msrb.mxu1 %v1837_v10 }
 0x9f7   : > { %917 = vmatpush.msrb.mxu0 %v1835_v9  ;;  %938 = vmatpush.msrb.mxu1 %v1835_v9 }
 0x9f9   : > { %918 = vmatpush.msrb.mxu0 %v1833_v8  ;;  %939 = vmatpush.msrb.mxu1 %v1833_v8 }
 0x9fb   : > { %919 = vmatpush.msrb.mxu0 %v1831_v7  ;;  %940 = vmatpush.msrb.mxu1 %v1831_v7 }
 0x9fd   : > { %920 = vmatpush.msrb.mxu0 %v1829_v6  ;;  %941 = vmatpush.msrb.mxu1 %v1829_v6 }
 0x9ff   : > { %921 = vmatpush.msrb.mxu0 %v1827_v5  ;;  %942 = vmatpush.msrb.mxu1 %v1827_v5 }
 0xa01   : > { %922 = vmatpush.msrb.mxu0 %v1825_v4  ;;  %943 = vmatpush.msrb.mxu1 %v1825_v4 }
 0xa03   : > { %923 = vmatpush.msrb.mxu0 %v1823_v3  ;;  %944 = vmatpush.msrb.mxu1 %v1823_v3 }
 0xa05   : > { %924 = vmatpush.msrb.mxu0 %v1821_v2  ;;  %945 = vmatpush.msrb.mxu1 %v1821_v2 }
 0xa07   : > { %925 = vmatpush.msrb.mxu0 %v1819_v1  ;;  %946 = vmatpush.msrb.mxu1 %v1819_v1 }
 0xa09   : > { %926 = vmatpush.msrb.mxu0 %v1817_v0  ;;  %947 = vmatpush.msrb.mxu1 %v1817_v0 }
 0xa67   : > { %v760_v28 = vpop.f32.mrf.mxu0  ;;  %v781_v29 = vpop.f32.mrf.mxu1 }
 0xa68   : > { %v761_v30 = vadd.f32 %v760_v28, %v1887_v50  ;;  %v782_v31 = vadd.f32 %v781_v29, %v1889_v51 }
 0xa6a   : > { %v763_v60 = vmax.f32 %v761_v30, 0.0  ;;  %v784_v40 = vmax.f32 %v782_v31, 0.0 }
 0xa6c   : > { %801 = vmatmul.f32.vlgmr.msrb.gmra.mxu2 %v763_v60  ;;  %822 = vmatmul.f32.vlgmr.msrb.gmra.mxu3 %v784_v40 }
 0xa6d   : > { %953 = vmatpush.msrb.mxu2 %v1847_v15  ;;  %974 = vmatpush.msrb.mxu3 %v1847_v15 }
 0xa6f   : > { %954 = vmatpush.msrb.mxu2 %v1845_v14  ;;  %975 = vmatpush.msrb.mxu3 %v1845_v14 }
 0xa71   : > { %955 = vmatpush.msrb.mxu2 %v1843_v13  ;;  %976 = vmatpush.msrb.mxu3 %v1843_v13 }
 0xa73   : > { %956 = vmatpush.msrb.mxu2 %v1841_v12  ;;  %977 = vmatpush.msrb.mxu3 %v1841_v12 }
 0xa75   : > { %957 = vmatpush.msrb.mxu2 %v1839_v11  ;;  %978 = vmatpush.msrb.mxu3 %v1839_v11 }
 0xa77   : > { %958 = vmatpush.msrb.mxu2 %v1837_v10  ;;  %979 = vmatpush.msrb.mxu3 %v1837_v10 }
 0xa79   : > { %959 = vmatpush.msrb.mxu2 %v1835_v9  ;;  %980 = vmatpush.msrb.mxu3 %v1835_v9 }
 0xa7b   : > { %960 = vmatpush.msrb.mxu2 %v1833_v8  ;;  %981 = vmatpush.msrb.mxu3 %v1833_v8 }
 0xa7d   : > { %961 = vmatpush.msrb.mxu2 %v1831_v7  ;;  %982 = vmatpush.msrb.mxu3 %v1831_v7 }
 0xa7f   : > { %962 = vmatpush.msrb.mxu2 %v1829_v6  ;;  %983 = vmatpush.msrb.mxu3 %v1829_v6 }
 0xa81   : > { %963 = vmatpush.msrb.mxu2 %v1827_v5  ;;  %984 = vmatpush.msrb.mxu3 %v1827_v5 }
 0xa83   : > { %964 = vmatpush.msrb.mxu2 %v1825_v4  ;;  %985 = vmatpush.msrb.mxu3 %v1825_v4 }
 0xa85   : > { %965 = vmatpush.msrb.mxu2 %v1823_v3  ;;  %986 = vmatpush.msrb.mxu3 %v1823_v3 }
 0xa87   : > { %966 = vmatpush.msrb.mxu2 %v1821_v2  ;;  %987 = vmatpush.msrb.mxu3 %v1821_v2 }
 0xa89   : > { %967 = vmatpush.msrb.mxu2 %v1819_v1  ;;  %988 = vmatpush.msrb.mxu3 %v1819_v1 }
 0xa8b   : > { %968 = vmatpush.msrb.mxu2 %v1817_v0  ;;  %989 = vmatpush.msrb.mxu3 %v1817_v0 }
 0xaef   : > { %v802_v63 = vpop.f32.mrf.mxu2  ;;  %v823_v41 = vpop.f32.mrf.mxu3 }
 0xaf0   : > { %v803_v32 = vadd.f32 %v802_v63, %v1887_v50  ;;  %v824_v42 = vadd.f32 %v823_v41, %v1889_v51 }
 0xaf2   : > { %v805_v33 = vmax.f32 %v803_v32, 0.0  ;;  %v826_v43 = vmax.f32 %v824_v42, 0.0 }
 0xaf4   : > { %843 = vmatmul.f32.vlgmr.msra.gmra.mxu0 %v805_v33  ;;  %864 = vmatmul.f32.vlgmr.msra.gmra.mxu1 %v826_v43 }
 0xaf5   : > { %995 = vmatpush.msra.mxu0 %v1847_v15  ;;  %1016 = vmatpush.msra.mxu1 %v1847_v15 }
 0xaf7   : > { %996 = vmatpush.msra.mxu0 %v1845_v14  ;;  %1017 = vmatpush.msra.mxu1 %v1845_v14 }
 0xaf9   : > { %997 = vmatpush.msra.mxu0 %v1843_v13  ;;  %1018 = vmatpush.msra.mxu1 %v1843_v13 }
 0xafb   : > { %998 = vmatpush.msra.mxu0 %v1841_v12  ;;  %1019 = vmatpush.msra.mxu1 %v1841_v12 }
 0xafd   : > { %999 = vmatpush.msra.mxu0 %v1839_v11  ;;  %1020 = vmatpush.msra.mxu1 %v1839_v11 }
 0xaff   : > { %1000 = vmatpush.msra.mxu0 %v1837_v10  ;;  %1021 = vmatpush.msra.mxu1 %v1837_v10 }
 0xb01   : > { %1001 = vmatpush.msra.mxu0 %v1835_v9  ;;  %1022 = vmatpush.msra.mxu1 %v1835_v9 }
 0xb03   : > { %1002 = vmatpush.msra.mxu0 %v1833_v8  ;;  %1023 = vmatpush.msra.mxu1 %v1833_v8 }
 0xb05   : > { %1003 = vmatpush.msra.mxu0 %v1831_v7  ;;  %1024 = vmatpush.msra.mxu1 %v1831_v7 }
 0xb07   : > { %1004 = vmatpush.msra.mxu0 %v1829_v6  ;;  %1025 = vmatpush.msra.mxu1 %v1829_v6 }
 0xb09   : > { %1005 = vmatpush.msra.mxu0 %v1827_v5  ;;  %1026 = vmatpush.msra.mxu1 %v1827_v5 }
 0xb0b   : > { %1006 = vmatpush.msra.mxu0 %v1825_v4  ;;  %1027 = vmatpush.msra.mxu1 %v1825_v4 }
 0xb0d   : > { %1007 = vmatpush.msra.mxu0 %v1823_v3  ;;  %1028 = vmatpush.msra.mxu1 %v1823_v3 }
 0xb0f   : > { %1008 = vmatpush.msra.mxu0 %v1821_v2  ;;  %1029 = vmatpush.msra.mxu1 %v1821_v2 }
 0xb11   : > { %1009 = vmatpush.msra.mxu0 %v1819_v1  ;;  %1030 = vmatpush.msra.mxu1 %v1819_v1 }
 0xb13   : > { %1010 = vmatpush.msra.mxu0 %v1817_v0  ;;  %1031 = vmatpush.msra.mxu1 %v1817_v0 }
 0xb71   : > { %v844_v44 = vpop.f32.mrf.mxu0  ;;  %v865_v45 = vpop.f32.mrf.mxu1 }
 0xb72   : > { %v845_v46 = vadd.f32 %v844_v44, %v1887_v50  ;;  %v866_v47 = vadd.f32 %v865_v45, %v1889_v51 }
 0xb74   : > { %v847_v52 = vmax.f32 %v845_v46, 0.0  ;;  %v868_v53 = vmax.f32 %v866_v47, 0.0 }
 0xb76   : > { %885 = vmatmul.f32.vlgmr.msra.gmra.mxu2 %v847_v52  ;;  %906 = vmatmul.f32.vlgmr.msra.gmra.mxu3 %v868_v53 }
 0xb77   : > { %1037 = vmatpush.msra.mxu2 %v1847_v15  ;;  %1058 = vmatpush.msra.mxu3 %v1847_v15 }
 0xb79   : > { %1038 = vmatpush.msra.mxu2 %v1845_v14  ;;  %1059 = vmatpush.msra.mxu3 %v1845_v14 }
 0xb7b   : > { %1039 = vmatpush.msra.mxu2 %v1843_v13  ;;  %1060 = vmatpush.msra.mxu3 %v1843_v13 }
 0xb7d   : > { %1040 = vmatpush.msra.mxu2 %v1841_v12  ;;  %1061 = vmatpush.msra.mxu3 %v1841_v12 }
 0xb7f   : > { %1041 = vmatpush.msra.mxu2 %v1839_v11  ;;  %1062 = vmatpush.msra.mxu3 %v1839_v11 }
 0xb81   : > { %1042 = vmatpush.msra.mxu2 %v1837_v10  ;;  %1063 = vmatpush.msra.mxu3 %v1837_v10 }
 0xb83   : > { %1043 = vmatpush.msra.mxu2 %v1835_v9  ;;  %1064 = vmatpush.msra.mxu3 %v1835_v9 }
 0xb85   : > { %1044 = vmatpush.msra.mxu2 %v1833_v8  ;;  %1065 = vmatpush.msra.mxu3 %v1833_v8 }
 0xb87   : > { %1045 = vmatpush.msra.mxu2 %v1831_v7  ;;  %1066 = vmatpush.msra.mxu3 %v1831_v7 }
 0xb89   : > { %1046 = vmatpush.msra.mxu2 %v1829_v6  ;;  %1067 = vmatpush.msra.mxu3 %v1829_v6 }
 0xb8b   : > { %1047 = vmatpush.msra.mxu2 %v1827_v5  ;;  %1068 = vmatpush.msra.mxu3 %v1827_v5 }
 0xb8d   : > { %1048 = vmatpush.msra.mxu2 %v1825_v4  ;;  %1069 = vmatpush.msra.mxu3 %v1825_v4 }
 0xb8f   : > { %1049 = vmatpush.msra.mxu2 %v1823_v3  ;;  %1070 = vmatpush.msra.mxu3 %v1823_v3 }
 0xb91   : > { %1050 = vmatpush.msra.mxu2 %v1821_v2  ;;  %1071 = vmatpush.msra.mxu3 %v1821_v2 }
 0xb93   : > { %1051 = vmatpush.msra.mxu2 %v1819_v1  ;;  %1072 = vmatpush.msra.mxu3 %v1819_v1 }
 0xb95   : > { %1052 = vmatpush.msra.mxu2 %v1817_v0  ;;  %1073 = vmatpush.msra.mxu3 %v1817_v0 }
 0xbf9   : > { %v886_v54 = vpop.f32.mrf.mxu2  ;;  %v907_v55 = vpop.f32.mrf.mxu3 }
 0xbfa   : > { %v887_v56 = vadd.f32 %v886_v54, %v1887_v50  ;;  %v908_v57 = vadd.f32 %v907_v55, %v1889_v51 }
 0xbfc   : > { %v889_v34 = vmax.f32 %v887_v56, 0.0  ;;  %v910_v35 = vmax.f32 %v908_v57, 0.0 }
 0xbfe   : > { %927 = vmatmul.f32.vlgmr.msrb.gmra.mxu0 %v889_v34  ;;  %948 = vmatmul.f32.vlgmr.msrb.gmra.mxu1 %v910_v35 }
 0xbff   : > { %1079 = vmatpush.msrb.mxu0 %v1847_v15  ;;  %1100 = vmatpush.msrb.mxu1 %v1847_v15 }
 0xc01   : > { %1080 = vmatpush.msrb.mxu0 %v1845_v14  ;;  %1101 = vmatpush.msrb.mxu1 %v1845_v14 }
 0xc03   : > { %1081 = vmatpush.msrb.mxu0 %v1843_v13  ;;  %1102 = vmatpush.msrb.mxu1 %v1843_v13 }
 0xc05   : > { %1082 = vmatpush.msrb.mxu0 %v1841_v12  ;;  %1103 = vmatpush.msrb.mxu1 %v1841_v12 }
 0xc07   : > { %1083 = vmatpush.msrb.mxu0 %v1839_v11  ;;  %1104 = vmatpush.msrb.mxu1 %v1839_v11 }
 0xc09   : > { %1084 = vmatpush.msrb.mxu0 %v1837_v10  ;;  %1105 = vmatpush.msrb.mxu1 %v1837_v10 }
 0xc0b   : > { %1085 = vmatpush.msrb.mxu0 %v1835_v9  ;;  %1106 = vmatpush.msrb.mxu1 %v1835_v9 }
 0xc0d   : > { %1086 = vmatpush.msrb.mxu0 %v1833_v8  ;;  %1107 = vmatpush.msrb.mxu1 %v1833_v8 }
 0xc0f   : > { %1087 = vmatpush.msrb.mxu0 %v1831_v7  ;;  %1108 = vmatpush.msrb.mxu1 %v1831_v7 }
 0xc11   : > { %1088 = vmatpush.msrb.mxu0 %v1829_v6  ;;  %1109 = vmatpush.msrb.mxu1 %v1829_v6 }
 0xc13   : > { %1089 = vmatpush.msrb.mxu0 %v1827_v5  ;;  %1110 = vmatpush.msrb.mxu1 %v1827_v5 }
 0xc15   : > { %1090 = vmatpush.msrb.mxu0 %v1825_v4  ;;  %1111 = vmatpush.msrb.mxu1 %v1825_v4 }
 0xc17   : > { %1091 = vmatpush.msrb.mxu0 %v1823_v3  ;;  %1112 = vmatpush.msrb.mxu1 %v1823_v3 }
 0xc19   : > { %1092 = vmatpush.msrb.mxu0 %v1821_v2  ;;  %1113 = vmatpush.msrb.mxu1 %v1821_v2 }
 0xc1b   : > { %1093 = vmatpush.msrb.mxu0 %v1819_v1  ;;  %1114 = vmatpush.msrb.mxu1 %v1819_v1 }
 0xc1d   : > { %1094 = vmatpush.msrb.mxu0 %v1817_v0  ;;  %1115 = vmatpush.msrb.mxu1 %v1817_v0 }
 0xc7b   : > { %v928_v36 = vpop.f32.mrf.mxu0  ;;  %v949_v37 = vpop.f32.mrf.mxu1 }
 0xc7c   : > { %v929_v58 = vadd.f32 %v928_v36, %v1887_v50  ;;  %v950_v38 = vadd.f32 %v949_v37, %v1889_v51 }
 0xc7e   : > { %v931_v59 = vmax.f32 %v929_v58, 0.0  ;;  %v952_v39 = vmax.f32 %v950_v38, 0.0 }
 0xc80   : > { %969 = vmatmul.f32.vlgmr.msrb.gmra.mxu2 %v931_v59  ;;  %990 = vmatmul.f32.vlgmr.msrb.gmra.mxu3 %v952_v39 }
 0xc81   : > { %1121 = vmatpush.msrb.mxu2 %v1847_v15  ;;  %1142 = vmatpush.msrb.mxu3 %v1847_v15 }
 0xc83   : > { %1122 = vmatpush.msrb.mxu2 %v1845_v14  ;;  %1143 = vmatpush.msrb.mxu3 %v1845_v14 }
 0xc85   : > { %1123 = vmatpush.msrb.mxu2 %v1843_v13  ;;  %1144 = vmatpush.msrb.mxu3 %v1843_v13 }
 0xc87   : > { %1124 = vmatpush.msrb.mxu2 %v1841_v12  ;;  %1145 = vmatpush.msrb.mxu3 %v1841_v12 }
 0xc89   : > { %1125 = vmatpush.msrb.mxu2 %v1839_v11  ;;  %1146 = vmatpush.msrb.mxu3 %v1839_v11 }
 0xc8b   : > { %1126 = vmatpush.msrb.mxu2 %v1837_v10  ;;  %1147 = vmatpush.msrb.mxu3 %v1837_v10 }
 0xc8d   : > { %1127 = vmatpush.msrb.mxu2 %v1835_v9  ;;  %1148 = vmatpush.msrb.mxu3 %v1835_v9 }
 0xc8f   : > { %1128 = vmatpush.msrb.mxu2 %v1833_v8  ;;  %1149 = vmatpush.msrb.mxu3 %v1833_v8 }
 0xc91   : > { %1129 = vmatpush.msrb.mxu2 %v1831_v7  ;;  %1150 = vmatpush.msrb.mxu3 %v1831_v7 }
 0xc93   : > { %1130 = vmatpush.msrb.mxu2 %v1829_v6  ;;  %1151 = vmatpush.msrb.mxu3 %v1829_v6 }
 0xc95   : > { %1131 = vmatpush.msrb.mxu2 %v1827_v5  ;;  %1152 = vmatpush.msrb.mxu3 %v1827_v5 }
 0xc97   : > { %1132 = vmatpush.msrb.mxu2 %v1825_v4  ;;  %1153 = vmatpush.msrb.mxu3 %v1825_v4 }
 0xc99   : > { %1133 = vmatpush.msrb.mxu2 %v1823_v3  ;;  %1154 = vmatpush.msrb.mxu3 %v1823_v3 }
 0xc9b   : > { %1134 = vmatpush.msrb.mxu2 %v1821_v2  ;;  %1155 = vmatpush.msrb.mxu3 %v1821_v2 }
 0xc9d   : > { %1135 = vmatpush.msrb.mxu2 %v1819_v1  ;;  %1156 = vmatpush.msrb.mxu3 %v1819_v1 }
 0xc9f   : > { %1136 = vmatpush.msrb.mxu2 %v1817_v0  ;;  %1157 = vmatpush.msrb.mxu3 %v1817_v0 }
 0xd03   : > { %v970_v61 = vpop.f32.mrf.mxu2  ;;  %v991_v62 = vpop.f32.mrf.mxu3 }
 0xd04   : > { %v971_v16 = vadd.f32 %v970_v61, %v1887_v50  ;;  %v992_v17 = vadd.f32 %v991_v62, %v1889_v51 }
 0xd06   : > { %v973_v18 = vmax.f32 %v971_v16, 0.0  ;;  %v994_v19 = vmax.f32 %v992_v17, 0.0 }
 0xd08   : > { %1011 = vmatmul.f32.vlgmr.msra.gmra.mxu0 %v973_v18  ;;  %1032 = vmatmul.f32.vlgmr.msra.gmra.mxu1 %v994_v19 }
 0xd85   : > { %v1012_v20 = vpop.f32.mrf.mxu0  ;;  %v1033_v21 = vpop.f32.mrf.mxu1 }
 0xd86   : > { %v1013_v22 = vadd.f32 %v1012_v20, %v1887_v50  ;;  %v1034_v23 = vadd.f32 %v1033_v21, %v1889_v51 }
 0xd88   : > { %v1015_v24 = vmax.f32 %v1013_v22, 0.0  ;;  %v1036_v25 = vmax.f32 %v1034_v23, 0.0 }
 0xd8a   : > { %1053 = vmatmul.f32.vlgmr.msra.gmra.mxu2 %v1015_v24  ;;  %1074 = vmatmul.f32.vlgmr.msra.gmra.mxu3 %v1036_v25 }
 0xe0d   : > { %v1054_v26 = vpop.f32.mrf.mxu2  ;;  %v1075_v27 = vpop.f32.mrf.mxu3 }
 0xe0e   : > { %v1055_v28 = vadd.f32 %v1054_v26, %v1887_v50  ;;  %v1076_v29 = vadd.f32 %v1075_v27, %v1889_v51 }
 0xe10   : > { %v1057_v30 = vmax.f32 %v1055_v28, 0.0  ;;  %v1078_v31 = vmax.f32 %v1076_v29, 0.0 }
 0xe12   : > { %1095 = vmatmul.f32.vlgmr.msrb.gmra.mxu0 %v1057_v30  ;;  %1116 = vmatmul.f32.vlgmr.msrb.gmra.mxu1 %v1078_v31 }
 0xe8f   : > { %v1096_v60 = vpop.f32.mrf.mxu0  ;;  %v1117_v40 = vpop.f32.mrf.mxu1 }
 0xe90   : > { %v1097_v63 = vadd.f32 %v1096_v60, %v1887_v50  ;;  %v1118_v41 = vadd.f32 %v1117_v40, %v1889_v51 }
 0xe92   : > { %v1099_v32 = vmax.f32 %v1097_v63, 0.0  ;;  %v1120_v42 = vmax.f32 %v1118_v41, 0.0 }
 0xe94   : > { %1137 = vmatmul.f32.vlgmr.msrb.gmra.mxu2 %v1099_v32  ;;  %1158 = vmatmul.f32.vlgmr.msrb.gmra.mxu3 %v1120_v42 }
 0xf17   : > { %v1138_v33 = vpop.f32.mrf.mxu2  ;;  %v1159_v43 = vpop.f32.mrf.mxu3 }
 0xf18   : > { %v1139_v44 = vadd.f32 %v1138_v33, %v1887_v50  ;;  %v1160_v46 = vadd.f32 %v1159_v43, %v1889_v51 }
 0xf1a   : > { %v2594_v63 = vmax.f32 %v1139_v44, 0.0   ;;  %v2598_v62 = vmax.f32 %v1160_v46, 0.0  }
 0xf1c   : > { %v2631_v45 = vmov %v2594_v63  ;;  %v2632_v52 = vmov %v2598_v62 }
 0xf1d   : > { %v1163_v47 = vsub.f32 %v2631_v45, %v1099_v32  ;;  %v1174_v54 = vsub.f32 %v2632_v52, %v1120_v42  ;;  %v2634_v63 = vmov %v2631_v45 }
 0xf1f   : > { %v1164_v53 = vand.u32 2147483647, %v1163_v47  ;;  %v1175_v55 = vand.u32 2147483647, %v1174_v54 }
 0xf21   : > { %1165 = vmax.xlane.f32.xlu0 %v1164_v53 }
 0xf29   : > { %1176 = vmax.xlane.f32.xlu0 %v1175_v55 }
 0xf94   : > { %v1166_v56 = vpop.xlane.xlu0 %1165 }
 0xf95   : > { %v1167_v57 = vrot.slane %v1166_v56, 4 }
 0xf97   : > { %v1168_v34 = vmax.f32 %v1166_v56, %v1167_v57 }
 0xf99   : > { %v1169_v35 = vrot.slane %v1168_v34, 2 }
 0xf9b   : > { %v1170_v36 = vmax.f32 %v1168_v34, %v1169_v35 }
 0xf9c   : > { %v1177_v37 = vpop.xlane.xlu0 %1176 }
 0xf9d   : > { %v1178_v58 = vrot.slane %v1177_v37, 4  ;;  %v1171_v38 = vrot.slane %v1170_v36, 1 }
 0xf9f   : > { %v1179_v59 = vmax.f32 %v1177_v37, %v1178_v58  ;;  %v1172_v39 = vmax.f32 %v1170_v36, %v1171_v38 }
 0xfa1   : > { %v1180_v61 = vrot.slane %v1179_v59, 2  ;;  %1415 = vpush %v1172_v39 }
 0xfa3   : > { %v1181_v62 = vmax.f32 %v1179_v59, %v1180_v61 }
 0xfa5   : > { %v1182_v16 = vrot.slane %v1181_v62, 1 }
 0xfa7   : > { %v1183_v17 = vmax.f32 %v1181_v62, %v1182_v16  ;;  %v2633_v62 = vmov %v2632_v52 }
 0xfa9   : > { %1417 = vpush %v1183_v17 }
 0xfd2   : > { %s1416_s10 = spop %1415 }
 0xfda   : > { %s1418_s11 = spop %1417 }
 0xfdb   : > { %s1185_s13 = smax.f32 %s1418_s11, %s1416_s10 }
 0xfdc   : > { %p654_p5 = scmp.ge.f32.partialorder %s1185_s13, 3e-06 }
 0xfde   : > { %p655_p6 = pnand %p654_p5, %p653_p4 }
 0xfdf   :  { %v1218_v18 = vld [vmem:[#allocation10 + $0x78] sm:$0xff] (%p655_p6)  ;;  %v1217_v20 = vld [vmem:[#allocation10 + $0x70] sm:$0xff] (%p655_p6)  ;;  %v1216_v22 = vld [vmem:[#allocation10 + $0x68] sm:$0xff] (%p655_p6)  ;;  %s1748_s14 = smov (%p655_p6), [#allocation13]   ;;  %s1307_s0 = sshll.u32 (%p655_p6), %s2626_s6, 4  ;;  %s1308_s0 = int_to_ptr.hbm [resolvable:$true] %s1307_s0 }
 0xfe0   :  { %658 = sbr.rel (!%p655_p6) target bundleno = 2241 (0x8c1), region = 93  ;;  %v1202_v19 = vld [vmem:[#allocation8 + $0x78] sm:$0xff] (%p655_p6)  ;;  %1260 = vmatpush.msra.mxu2 (%p655_p6), %v1218_v18  ;;  %v1201_v21 = vld [vmem:[#allocation8 + $0x70] sm:$0xff] (%p655_p6)  ;;  %v1200_v23 = vld [vmem:[#allocation8 + $0x68] sm:$0xff] (%p655_p6)  ;;  %1219 = vmatpush.msra.mxu0 (%p655_p6), %v1218_v18  ;;  %s1305_s15 = sshll.u32 (%p655_p6), %s1748_s14, 4  ;;  %s1306_s15 = int_to_ptr.vmem [resolvable:$true] %s1305_s15 }
 0xfe1   :  { %1280 = vmatpush.msra.mxu3 (%p655_p6), %v1202_v19  ;;  %1239 = vmatpush.msra.mxu1 (%p655_p6), %v1202_v19  ;;  %v1215_v24 = vld [vmem:[#allocation10 + $0x60] sm:$0xff] (%p655_p6)  ;;  %v1214_v26 = vld [vmem:[#allocation10 + $0x58] sm:$0xff] (%p655_p6)  ;;  %v1213_v0 = vld [vmem:[#allocation10 + $0x50] sm:$0xff] (%p655_p6) }
 0xfe2   :  { %1261 = vmatpush.msra.mxu2 (%p655_p6), %v1217_v20  ;;  %v1199_v25 = vld [vmem:[#allocation8 + $0x60] sm:$0xff] (%p655_p6)  ;;  %1220 = vmatpush.msra.mxu0 (%p655_p6), %v1217_v20  ;;  %v1198_v27 = vld [vmem:[#allocation8 + $0x58] sm:$0xff] (%p655_p6)  ;;  %v1197_v1 = vld [vmem:[#allocation8 + $0x50] sm:$0xff] (%p655_p6) }
 0xfe3   :  { %1281 = vmatpush.msra.mxu3 (%p655_p6), %v1201_v21  ;;  %1240 = vmatpush.msra.mxu1 (%p655_p6), %v1201_v21  ;;  %v1212_v2 = vld [vmem:[#allocation10 + $0x48] sm:$0xff] (%p655_p6)  ;;  %v1211_v4 = vld [vmem:[#allocation10 + $0x40] sm:$0xff] (%p655_p6)  ;;  %v1210_v6 = vld [vmem:[#allocation10 + $0x38] sm:$0xff] (%p655_p6) }
 0xfe4   :  { %1262 = vmatpush.msra.mxu2 (%p655_p6), %v1216_v22  ;;  %1221 = vmatpush.msra.mxu0 (%p655_p6), %v1216_v22  ;;  %v1196_v3 = vld [vmem:[#allocation8 + $0x48] sm:$0xff] (%p655_p6)  ;;  %v1195_v5 = vld [vmem:[#allocation8 + $0x40] sm:$0xff] (%p655_p6)  ;;  %v1194_v7 = vld [vmem:[#allocation8 + $0x38] sm:$0xff] (%p655_p6) }
 0xfe5   :  { %1282 = vmatpush.msra.mxu3 %v1200_v23  ;;  %1241 = vmatpush.msra.mxu1 %v1200_v23  ;;  %v1209_v8 = vld [vmem:[#allocation10 + $0x30] sm:$0xff]  ;;  %v1208_v10 = vld [vmem:[#allocation10 + $0x28] sm:$0xff]  ;;  %v1207_v12 = vld [vmem:[#allocation10 + $0x20] sm:$0xff] }
 0xfe6   :  { %1263 = vmatpush.msra.mxu2 %v1215_v24  ;;  %1222 = vmatpush.msra.mxu0 %v1215_v24  ;;  %v1193_v9 = vld [vmem:[#allocation8 + $0x30] sm:$0xff]  ;;  %v1192_v11 = vld [vmem:[#allocation8 + $0x28] sm:$0xff]  ;;  %v1191_v13 = vld [vmem:[#allocation8 + $0x20] sm:$0xff] }
 0xfe7   :  { %1283 = vmatpush.msra.mxu3 %v1199_v25  ;;  %1242 = vmatpush.msra.mxu1 %v1199_v25  ;;  %v1206_v14 = vld [vmem:[#allocation10 + $0x18] sm:$0xff]  ;;  %v1205_v50 = vld [vmem:[#allocation10 + $0x10] sm:$0xff]  ;;  %v1204_v28 = vld [vmem:[#allocation10 + $0x8] sm:$0xff] }
 0xfe8   :  { %1264 = vmatpush.msra.mxu2 %v1214_v26  ;;  %1223 = vmatpush.msra.mxu0 %v1214_v26  ;;  %v1190_v15 = vld [vmem:[#allocation8 + $0x18] sm:$0xff]  ;;  %v1189_v51 = vld [vmem:[#allocation8 + $0x10] sm:$0xff]  ;;  %v1188_v29 = vld [vmem:[#allocation8 + $0x8] sm:$0xff] }
 0xfe9   :  { %1284 = vmatpush.msra.mxu3 %v1198_v27  ;;  %1243 = vmatpush.msra.mxu1 %v1198_v27  ;;  %v1203_v30 = vld [vmem:[#allocation10] sm:$0xff] }
 0xfea   :  { %1265 = vmatpush.msra.mxu2 %v1213_v0  ;;  %1224 = vmatpush.msra.mxu0 %v1213_v0  ;;  %v1187_v31 = vld [vmem:[#allocation8] sm:$0xff] }
 0xfeb   :  { %1285 = vmatpush.msra.mxu3 %v1197_v1  ;;  %1244 = vmatpush.msra.mxu1 %v1197_v1 }
 0xfec   :  { %1266 = vmatpush.msra.mxu2 %v1212_v2  ;;  %1225 = vmatpush.msra.mxu0 %v1212_v2 }
 0xfed   :  { %1286 = vmatpush.msra.mxu3 %v1196_v3  ;;  %1245 = vmatpush.msra.mxu1 %v1196_v3 }
 0xfee   :  { %1267 = vmatpush.msra.mxu2 %v1211_v4  ;;  %1226 = vmatpush.msra.mxu0 %v1211_v4 }
 0xfef   :  { %1287 = vmatpush.msra.mxu3 %v1195_v5  ;;  %1246 = vmatpush.msra.mxu1 %v1195_v5 }
 0xff0   :  { %1268 = vmatpush.msra.mxu2 %v1210_v6  ;;  %1227 = vmatpush.msra.mxu0 %v1210_v6 }
 0xff1   :  { %1288 = vmatpush.msra.mxu3 %v1194_v7  ;;  %1247 = vmatpush.msra.mxu1 %v1194_v7 }
 0xff2   :  { %1269 = vmatpush.msra.mxu2 %v1209_v8  ;;  %1228 = vmatpush.msra.mxu0 %v1209_v8 }
 0xff3   :  { %1289 = vmatpush.msra.mxu3 %v1193_v9  ;;  %1248 = vmatpush.msra.mxu1 %v1193_v9 }
 0xff4   :  { %1270 = vmatpush.msra.mxu2 %v1208_v10  ;;  %1229 = vmatpush.msra.mxu0 %v1208_v10 }
 0xff5   :  { %1290 = vmatpush.msra.mxu3 %v1192_v11  ;;  %1249 = vmatpush.msra.mxu1 %v1192_v11 }
 0xff6   :  { %1271 = vmatpush.msra.mxu2 %v1207_v12  ;;  %1230 = vmatpush.msra.mxu0 %v1207_v12 }
 0xff7   :  { %1291 = vmatpush.msra.mxu3 %v1191_v13  ;;  %1250 = vmatpush.msra.mxu1 %v1191_v13 }
 0xff8   :  { %1272 = vmatpush.msra.mxu2 %v1206_v14  ;;  %1231 = vmatpush.msra.mxu0 %v1206_v14 }
 0xff9   :  { %1292 = vmatpush.msra.mxu3 %v1190_v15  ;;  %1251 = vmatpush.msra.mxu1 %v1190_v15 }
 0xffa   :  { %1273 = vmatpush.msra.mxu2 %v1205_v50  ;;  %1232 = vmatpush.msra.mxu0 %v1205_v50 }
 0xffb   :  { %1293 = vmatpush.msra.mxu3 %v1189_v51  ;;  %1252 = vmatpush.msra.mxu1 %v1189_v51 }
 0xffc   :  { %1274 = vmatpush.msra.mxu2 %v1204_v28  ;;  %1233 = vmatpush.msra.mxu0 %v1204_v28 }
 0xffd   :  { %1294 = vmatpush.msra.mxu3 %v1188_v29  ;;  %1253 = vmatpush.msra.mxu1 %v1188_v29 }
 0xffe   :  { %1275 = vmatpush.msra.mxu2 %v1203_v30  ;;  %1234 = vmatpush.msra.mxu0 %v1203_v30 }
 0xfff   :  { %1295 = vmatpush.msra.mxu3 %v1187_v31  ;;  %1276 = vmatmul.f32.vlgmr.msra.gmra.mxu2 %v1883_v49 }
0x1000   :  { %1296 = vmatmul.f32.vlgmr.msra.gmra.mxu3 %v2632_v52  ;;  %1254 = vmatpush.msra.mxu1 %v1187_v31 }
0x1001   :  { %1235 = vmatmul.f32.vlgmr.msra.gmra.mxu0 %v1881_v48  ;;  %1255 = vmatmul.f32.vlgmr.msra.gmra.mxu1 %v2631_v45 }
0x107e   :  { %v1236_v60 = vpop.f32.mrf.mxu0  ;;  %v1256_v40 = vpop.f32.mrf.mxu1 }
0x107f   :  { %v1257_v63 = vadd.f32 %v1256_v40, %v1236_v60 }
0x1081   :  { %1259 = vst [vmem:[#allocation13] sm:$0xff] %v1257_v63 }
0x1082   :  { %v1277_v41 = vpop.f32.mrf.mxu2 }
0x1083   :  { %v1297_v49 = vpop.f32.mrf.mxu3 }
0x1084   :  { %v1298_v32 = vadd.f32 %v1297_v49, %v1277_v41 }
0x1086   :  { %1300 = vst [vmem:[#allocation13 + $0x8] sm:$0xff] %v1298_v32 }
0x1087   :  { %1313 = dma.vmem_to_hbm [thread:$0]  %s1306_s15, 256, %s1308_s0, [#allocation4], %s1741_s1, %s1741_s1, %s1742_s12  }
0x1088   :  { %1703 = dma.done.wait [#allocation4], 256  }
0x1089   :  { %1704 = vsyncadd [#allocation4], 4294967040 }
0x108a   :  { %1318 = vsyncpa [#allocation3], 1 }
0x108b   :  { %1319 = vsyncpa [#allocation6], 1 }
0x108c   :  { %1320 = vsyncpa [#allocation9], 1 }
0x108d   :  { %1321 = vsyncpa [#allocation12], 1 }
0x108e   :  { %1322 = vsyncpa [#allocation4], 1 }

// kernel: tpu_custom_call.1
= control target key start
LH: loop header
LB: loop body
LE: loop exit
PB: predicated region body
PF: predicated region fallthrough
CT: control target
= control target key end

     0   :  { %11 = vsyncpa [#allocation3], 0  ;;  %s2620_s0 = inlined_call_operand.hbm [shape: f32[128,128], index: 0, kind: input, shape index: {}]   ;;  %s2621_s1 = inlined_call_operand.hbm [shape: bf16[128,128], index: 1, kind: input, shape index: {}]   ;;  %s2622_s2 = inlined_call_operand.hbm [shape: f32[128,128], index: 2, kind: input, shape index: {}]   ;;  %s2623_s3 = inlined_call_operand.hbm [shape: f32[128,128], index: 3, kind: input, shape index: {}]   ;;  %s2624_s4 = inlined_call_operand.hbm [shape: f32[128,128], index: 4, kind: input, shape index: {}]   ;;  %s2625_s5 = inlined_call_operand.hbm [shape: f32[16,128], index: 5, kind: input, shape index: {}]   ;;  %s2626_s6 = inlined_call_operand.hbm [shape: f32[16,128], index: 6, kind: output, shape index: {}]  }
   0x1   :  { %12 = vsyncpa [#allocation6], 0 }
   0x2   :  { %13 = vsyncpa [#allocation9], 0 }
   0x3   :  { %14 = vsyncpa [#allocation12], 0  ;;  %s33_s23 = sshll.u32 %s2621_s1, 4  ;;  %s34_s23 = int_to_ptr.hbm [resolvable:$true] %s33_s23 }
   0x4   :  { %15 = vsyncpa [#allocation4], 0  ;;  %s1737_s24 = smov [#allocation5]   ;;  %s1738_s26 = smov 64  }
   0x5   :  { %s35_s25 = sshll.u32 %s1737_s24, 4  ;;  %s1739_s27 = smov 4   ;;  %s36_s25 = int_to_ptr.vmem [resolvable:$true] %s35_s25 }
   0x6   :  { %41 = dma.hbm_to_vmem [thread:$0]  %s34_s23, 1024, %s36_s25, [#allocation6], %s1738_s26, %s1738_s26, %s1739_s27  }
   0x7   :  { %s59_s30 = sshll.u32 %s2623_s3, 4  ;;  %s1740_s7 = smov [#allocation8]   ;;  %s60_s30 = int_to_ptr.hbm [resolvable:$true] %s59_s30 }
   0x8   :  { %s61_s8 = sshll.u32 %s1740_s7, 4  ;;  %s20_s11 = sshll.u32 %s2620_s0, 4  ;;  %s62_s8 = int_to_ptr.vmem [resolvable:$true] %s61_s8  ;;  %s21_s11 = int_to_ptr.hbm [resolvable:$true] %s20_s11 }
   0x9   :  { %s1741_s1 = smov 128   ;;  %s1742_s12 = smov 8  }
   0xa   :  { %67 = dma.hbm_to_vmem [thread:$0]  %s60_s30, 2048, %s62_s8, [#allocation9], %s1741_s1, %s1741_s1, %s1742_s12  }
   0xb   :  { %s46_s15 = sshll.u32 %s2622_s2, 4  ;;  %s1743_s3 = smov [#allocation2]   ;;  %s47_s15 = int_to_ptr.hbm [resolvable:$true] %s46_s15 }
   0xc   :  { %s22_s16 = sshll.u32 %s1743_s3, 4  ;;  %s1744_s0 = smov [#allocation7]   ;;  %s23_s16 = int_to_ptr.vmem [resolvable:$true] %s22_s16 }
   0xd   :  { %28 = dma.hbm_to_vmem [thread:$0]  %s21_s11, 2048, %s23_s16, [#allocation3], %s1741_s1, %s1741_s1, %s1742_s12  }
   0xe   :  { %s48_s17 = sshll.u32 %s1744_s0, 4  ;;  %s72_s20 = sshll.u32 %s2624_s4, 4  ;;  %s49_s17 = int_to_ptr.vmem [resolvable:$true] %s48_s17  ;;  %s73_s20 = int_to_ptr.hbm [resolvable:$true] %s72_s20 }
   0xf   :  { %54 = dma.hbm_to_vmem [thread:$0]  %s47_s15, 2048, %s49_s17, [#allocation6], %s1741_s1, %s1741_s1, %s1742_s12  }
  0x10   :  { %s85_s22 = sshll.u32 %s2625_s5, 4  ;;  %s1745_s23 = smov [#allocation10]   ;;  %s86_s22 = int_to_ptr.hbm [resolvable:$true] %s85_s22 }
  0x11   :  { %s74_s24 = sshll.u32 %s1745_s23, 4  ;;  %s1746_s25 = smov [#allocation11]   ;;  %s75_s24 = int_to_ptr.vmem [resolvable:$true] %s74_s24 }
  0x12   :  { %80 = dma.hbm_to_vmem [thread:$0]  %s73_s20, 2048, %s75_s24, [#allocation9], %s1741_s1, %s1741_s1, %s1742_s12  }
  0x13   :  { %s87_s4 = sshll.u32 %s1746_s25, 4  ;;  %s88_s4 = int_to_ptr.vmem [resolvable:$true] %s87_s4 }
  0x14   :  { %93 = dma.hbm_to_vmem [thread:$0]  %s86_s22, 256, %s88_s4, [#allocation12], %s1741_s1, %s1741_s1, %s1742_s12  }
  0x15   :  { %1695 = dma.done.wait [#allocation3], 2048  }
  0x16   :  { %1696 = vsyncadd [#allocation3], 4294965248 }
  0x17   :  { %1697 = dma.done.wait [#allocation6], 3072  }
  0x18   :  { %1698 = vsyncadd [#allocation6], 4294964224 }
  0x19   :  { %1699 = dma.done.wait [#allocation9], 4096  }
  0x1a   :  { %1700 = vsyncadd [#allocation9], 4294963200 }
  0x1b   :  { %1701 = dma.done.wait [#allocation12], 256  }
  0x1c   :  { %1702 = vsyncadd [#allocation12], 4294967040  ;;  %v1817_v0 = vld [vmem:[#allocation2] sm:$0xff]  ;;  %v1819_v1 = vld [vmem:[#allocation2 + $0x8] sm:$0xff]  ;;  %s1747_s27 = smov 3e-06  }
  0x1d   :  { %v1821_v2 = vld [vmem:[#allocation2 + $0x10] sm:$0xff]  ;;  %v1823_v3 = vld [vmem:[#allocation2 + $0x18] sm:$0xff]  ;;  %v1825_v4 = vld [vmem:[#allocation2 + $0x20] sm:$0xff]  ;;  %v1896_v62 = vmov 0.0   ;;  %v1898_v63 = vmov 0.0  }
  0x1e   :  { %v1827_v5 = vld [vmem:[#allocation2 + $0x28] sm:$0xff]  ;;  %v1829_v6 = vld [vmem:[#allocation2 + $0x30] sm:$0xff]  ;;  %v1831_v7 = vld [vmem:[#allocation2 + $0x38] sm:$0xff] }
  0x1f   :  { %v1833_v8 = vld [vmem:[#allocation2 + $0x40] sm:$0xff]  ;;  %v1835_v9 = vld [vmem:[#allocation2 + $0x48] sm:$0xff]  ;;  %v1837_v10 = vld [vmem:[#allocation2 + $0x50] sm:$0xff] }
  0x20   :  { %v1839_v11 = vld [vmem:[#allocation2 + $0x58] sm:$0xff]  ;;  %v1841_v12 = vld [vmem:[#allocation2 + $0x60] sm:$0xff]  ;;  %v1843_v13 = vld [vmem:[#allocation2 + $0x68] sm:$0xff] }
  0x21   :  { %v1845_v14 = vld [vmem:[#allocation2 + $0x70] sm:$0xff]  ;;  %v1847_v15 = vld [vmem:[#allocation2 + $0x78] sm:$0xff]  ;;  %v1849_v16 = vld [vmem:[#allocation5] sm:$0xf] }
  0x22   :  { %v1851_v17 = vld [vmem:[#allocation5] sm:$0xf0]  ;;  %v1853_v18 = vld [vmem:[#allocation5 + $0x8] sm:$0xf]  ;;  %v1855_v19 = vld [vmem:[#allocation5 + $0x8] sm:$0xf0] }
  0x23   :  { %v1857_v20 = vld [vmem:[#allocation5 + $0x10] sm:$0xf]  ;;  %v1859_v21 = vld [vmem:[#allocation5 + $0x10] sm:$0xf0]  ;;  %v1861_v22 = vld [vmem:[#allocation5 + $0x18] sm:$0xf] }
  0x24   :  { %v1863_v23 = vld [vmem:[#allocation5 + $0x18] sm:$0xf0]  ;;  %v1865_v24 = vld [vmem:[#allocation5 + $0x20] sm:$0xf]  ;;  %v1867_v25 = vld [vmem:[#allocation5 + $0x20] sm:$0xf0] }
  0x25   :  { %v1869_v26 = vld [vmem:[#allocation5 + $0x28] sm:$0xf]  ;;  %v1871_v27 = vld [vmem:[#allocation5 + $0x28] sm:$0xf0]  ;;  %v1873_v28 = vld [vmem:[#allocation5 + $0x30] sm:$0xf] }
  0x26   :  { %v1875_v29 = vld [vmem:[#allocation5 + $0x30] sm:$0xf0]  ;;  %v1877_v30 = vld [vmem:[#allocation5 + $0x38] sm:$0xf]  ;;  %v1879_v31 = vld [vmem:[#allocation5 + $0x38] sm:$0xf0] }
  0x27   :  { %v151_v32 = vld [vmem:[#allocation7 + $0x78] sm:$0xff]  ;;  %v150_v33 = vld [vmem:[#allocation7 + $0x70] sm:$0xff]  ;;  %v149_v34 = vld [vmem:[#allocation7 + $0x68] sm:$0xff] }
  0x28   :  { %152 = vmatpush.msra.mxu0 %v151_v32  ;;  %1393 = vmatpush.msra.mxu1 %v151_v32  ;;  %v148_v35 = vld [vmem:[#allocation7 + $0x60] sm:$0xff]  ;;  %v147_v36 = vld [vmem:[#allocation7 + $0x58] sm:$0xff]  ;;  %v146_v37 = vld [vmem:[#allocation7 + $0x50] sm:$0xff] }
  0x29   :  { %v145_v38 = vld [vmem:[#allocation7 + $0x48] sm:$0xff]  ;;  %v144_v39 = vld [vmem:[#allocation7 + $0x40] sm:$0xff]  ;;  %v143_v40 = vld [vmem:[#allocation7 + $0x38] sm:$0xff] }
  0x2a   :  { %153 = vmatpush.msra.mxu0 %v150_v33  ;;  %1394 = vmatpush.msra.mxu1 %v150_v33  ;;  %v142_v41 = vld [vmem:[#allocation7 + $0x30] sm:$0xff]  ;;  %v141_v42 = vld [vmem:[#allocation7 + $0x28] sm:$0xff]  ;;  %v140_v43 = vld [vmem:[#allocation7 + $0x20] sm:$0xff] }
  0x2b   :  { %v139_v44 = vld [vmem:[#allocation7 + $0x18] sm:$0xff]  ;;  %v138_v45 = vld [vmem:[#allocation7 + $0x10] sm:$0xff]  ;;  %v137_v46 = vld [vmem:[#allocation7 + $0x8] sm:$0xff] }
  0x2c   :  { %154 = vmatpush.msra.mxu0 %v149_v34  ;;  %1395 = vmatpush.msra.mxu1 %v149_v34  ;;  %v136_v47 = vld [vmem:[#allocation7] sm:$0xff]  ;;  %v1883_v49 = vld [vmem:[#allocation11 + $0x8] sm:$0xff] }
  0x2d   :  { %v1881_v48 = vld [vmem:[#allocation11] sm:$0xff] }
  0x2e   :  { %155 = vmatpush.msra.mxu0 %v148_v35  ;;  %1396 = vmatpush.msra.mxu1 %v148_v35 }
  0x30   :  { %156 = vmatpush.msra.mxu0 %v147_v36  ;;  %1397 = vmatpush.msra.mxu1 %v147_v36 }
  0x32   :  { %157 = vmatpush.msra.mxu0 %v146_v37  ;;  %1398 = vmatpush.msra.mxu1 %v146_v37 }
  0x34   :  { %158 = vmatpush.msra.mxu0 %v145_v38  ;;  %1399 = vmatpush.msra.mxu1 %v145_v38 }
  0x36   :  { %159 = vmatpush.msra.mxu0 %v144_v39  ;;  %1400 = vmatpush.msra.mxu1 %v144_v39 }
  0x38   :  { %160 = vmatpush.msra.mxu0 %v143_v40  ;;  %1401 = vmatpush.msra.mxu1 %v143_v40 }
  0x3a   :  { %161 = vmatpush.msra.mxu0 %v142_v41  ;;  %1402 = vmatpush.msra.mxu1 %v142_v41 }
  0x3c   :  { %162 = vmatpush.msra.mxu0 %v141_v42  ;;  %1403 = vmatpush.msra.mxu1 %v141_v42 }
  0x3e   :  { %163 = vmatpush.msra.mxu0 %v140_v43  ;;  %1404 = vmatpush.msra.mxu1 %v140_v43 }
  0x40   :  { %164 = vmatpush.msra.mxu0 %v139_v44  ;;  %1405 = vmatpush.msra.mxu1 %v139_v44 }
  0x42   :  { %165 = vmatpush.msra.mxu0 %v138_v45  ;;  %1406 = vmatpush.msra.mxu1 %v138_v45 }
  0x44   :  { %166 = vmatpush.msra.mxu0 %v137_v46  ;;  %1407 = vmatpush.msra.mxu1 %v137_v46 }
  0x46   :  { %167 = vmatpush.msra.mxu0 %v136_v47  ;;  %1408 = vmatpush.msra.mxu1 %v136_v47 }
  0x47   :  { %168 = vmatmul.f32.vlgmr.msra.gmra.mxu0 %v1881_v48  ;;  %171 = vmatmul.f32.vlgmr.msra.gmra.mxu1 %v1883_v49 }
  0xc4   :  { %v1887_v50 = vpop.f32.mrf.mxu0  ;;  %v1889_v51 = vpop.f32.mrf.mxu1 }
  0xc5   :  { %v191_v52 = vand.u32 2147483647, %v1887_v50  ;;  %v192_v53 = vand.u32 2147483647, %v1889_v51 }
  0xc7   :  { %v193_v54 = vmax.f32 %v191_v52, %v192_v53 }
  0xc9   :  { %194 = vmax.xlane.f32.xlu0 %v193_v54 }
 0x13c   :  { %v195_v55 = vpop.xlane.xlu0 %194 }
 0x13d   :  { %v196_v56 = vrot.slane %v195_v55, 4 }
 0x13f   :  { %v197_v57 = vmax.f32 %v195_v55, %v196_v56 }
 0x141   :  { %v198_v58 = vrot.slane %v197_v57, 2 }
 0x143   :  { %v199_v59 = vmax.f32 %v197_v57, %v198_v58 }
 0x145   :  { %v200_v60 = vrot.slane %v199_v59, 1 }
 0x147   :  { %v201_v61 = vmax.f32 %v199_v59, %v200_v60 }
 0x149   :  { %1409 = vpush %v201_v61 }
 0x17a   :  { %s1410_s5 = spop %1409 }
 0x17b   :  { %s203_s26 = smul.f32 0.015625, %s1410_s5 }
 0x17d   :  { %s1893_s28 = smax.f32 %s1747_s27, %s203_s26 }
 0x17e   :  { %p1351_p0 = scmp.le.f32.partialorder %s1893_s28, inf }
 0x17f   :  { %s1900_s29 = smov (%p1351_p0), 0   ;;  %v1902_v32 = vmov (%p1351_p0), 0.0   ;;  %v1904_v33 = vmov (%p1351_p0), 0.0  }
 0x180   :  { %1330 = sbr.rel (!%p1351_p0) target bundleno = 2240 (0x8c0), region = 76 }
 0x185 LB: > { %v1913_v34 = vor.u32 %v1879_v31, %v1877_v30  ;;  %v1919_v35 = vor.u32 %v1875_v29, %v1873_v28  ;;  %v1927_v36 = vor.u32 %v1871_v27, %v1869_v26  ;;  %v1935_v37 = vor.u32 %v1867_v25, %v1865_v24  ;;  %s647_s29 = sadd.s32 1, %s1707_s29   ;;  %v1715_v33 = vphi %v1904_v33, %v2628_v33   ;;  %v1711_v32 = vphi %v1902_v32, %v2627_v32   ;;  %s1707_s29 = sphi %s1900_s29, %s647_s29  }
 0x186   : > { %v1943_v38 = vor.u32 %v1863_v23, %v1861_v22  ;;  %v1951_v39 = vor.u32 %v1859_v21, %v1857_v20  ;;  %v1959_v40 = vor.u32 %v1855_v19, %v1853_v18  ;;  %v1967_v41 = vor.u32 %v1851_v17, %v1849_v16  ;;  %p210_p1 = scmp.lt.s32.totalorder %s647_s29, 25 }
 0x187   : > { %265 = vmatpush.bf16.msra.mxu0 %v1913_v34  ;;  %280 = vmatpush.bf16.msra.mxu1 %v1913_v34  ;;  %v216_v42 = vpack.c.bf16 %v1715_v33, %v1715_v33  ;;  %v279_v43 = vpack.c.bf16 %v1711_v32, %v1711_v32 }
 0x188   : > { %295 = vmatpush.bf16.msra.mxu2 %v1913_v34  ;;  %310 = vmatpush.bf16.msra.mxu3 %v1913_v34 }
 0x18b   : > { %266 = vmatpush.bf16.msra.mxu0 %v1919_v35  ;;  %281 = vmatpush.bf16.msra.mxu1 %v1919_v35 }
 0x18c   : > { %296 = vmatpush.bf16.msra.mxu2 %v1919_v35  ;;  %311 = vmatpush.bf16.msra.mxu3 %v1919_v35 }
 0x18f   : > { %267 = vmatpush.bf16.msra.mxu0 %v1927_v36  ;;  %282 = vmatpush.bf16.msra.mxu1 %v1927_v36 }
 0x190   : > { %297 = vmatpush.bf16.msra.mxu2 %v1927_v36  ;;  %312 = vmatpush.bf16.msra.mxu3 %v1927_v36 }
 0x193   : > { %268 = vmatpush.bf16.msra.mxu0 %v1935_v37  ;;  %283 = vmatpush.bf16.msra.mxu1 %v1935_v37 }
 0x194   : > { %298 = vmatpush.bf16.msra.mxu2 %v1935_v37  ;;  %313 = vmatpush.bf16.msra.mxu3 %v1935_v37 }
 0x197   : > { %269 = vmatpush.bf16.msra.mxu0 %v1943_v38  ;;  %284 = vmatpush.bf16.msra.mxu1 %v1943_v38 }
 0x198   : > { %299 = vmatpush.bf16.msra.mxu2 %v1943_v38  ;;  %314 = vmatpush.bf16.msra.mxu3 %v1943_v38 }
 0x19b   : > { %270 = vmatpush.bf16.msra.mxu0 %v1951_v39  ;;  %285 = vmatpush.bf16.msra.mxu1 %v1951_v39 }
 0x19c   : > { %300 = vmatpush.bf16.msra.mxu2 %v1951_v39  ;;  %315 = vmatpush.bf16.msra.mxu3 %v1951_v39 }
 0x19f   : > { %271 = vmatpush.bf16.msra.mxu0 %v1959_v40  ;;  %286 = vmatpush.bf16.msra.mxu1 %v1959_v40 }
 0x1a0   : > { %301 = vmatpush.bf16.msra.mxu2 %v1959_v40  ;;  %316 = vmatpush.bf16.msra.mxu3 %v1959_v40 }
 0x1a3   : > { %272 = vmatpush.bf16.msra.mxu0 %v1967_v41  ;;  %287 = vmatpush.bf16.msra.mxu1 %v1967_v41 }
 0x1a4   : > { %302 = vmatpush.bf16.msra.mxu2 %v1967_v41  ;;  %317 = vmatpush.bf16.msra.mxu3 %v1967_v41 }
 0x1a6   : > { %273 = vmatmul.bf16.vlgmr.msra.gmra.mxu0 %v216_v42  ;;  %288 = vmatmul.bf16.vlgmr.msra.gmra.mxu1 %v279_v43 }
 0x1a7   : > { %325 = vmatpush.bf16.msrb.mxu0 %v1913_v34  ;;  %340 = vmatpush.bf16.msrb.mxu1 %v1913_v34 }
 0x1a8   : > { %355 = vmatpush.bf16.msrb.mxu2 %v1913_v34  ;;  %370 = vmatpush.bf16.msrb.mxu3 %v1913_v34 }
 0x1ab   : > { %326 = vmatpush.bf16.msrb.mxu0 %v1919_v35  ;;  %341 = vmatpush.bf16.msrb.mxu1 %v1919_v35 }
 0x1ac   : > { %356 = vmatpush.bf16.msrb.mxu2 %v1919_v35  ;;  %371 = vmatpush.bf16.msrb.mxu3 %v1919_v35 }
 0x1af   : > { %327 = vmatpush.bf16.msrb.mxu0 %v1927_v36  ;;  %342 = vmatpush.bf16.msrb.mxu1 %v1927_v36 }
 0x1b0   : > { %357 = vmatpush.bf16.msrb.mxu2 %v1927_v36  ;;  %372 = vmatpush.bf16.msrb.mxu3 %v1927_v36 }
 0x1b3   : > { %328 = vmatpush.bf16.msrb.mxu0 %v1935_v37  ;;  %343 = vmatpush.bf16.msrb.mxu1 %v1935_v37 }
 0x1b4   : > { %358 = vmatpush.bf16.msrb.mxu2 %v1935_v37  ;;  %373 = vmatpush.bf16.msrb.mxu3 %v1935_v37 }
 0x1b7   : > { %329 = vmatpush.bf16.msrb.mxu0 %v1943_v38  ;;  %344 = vmatpush.bf16.msrb.mxu1 %v1943_v38 }
 0x1b8   : > { %359 = vmatpush.bf16.msrb.mxu2 %v1943_v38  ;;  %374 = vmatpush.bf16.msrb.mxu3 %v1943_v38 }
 0x1bb   : > { %330 = vmatpush.bf16.msrb.mxu0 %v1951_v39  ;;  %345 = vmatpush.bf16.msrb.mxu1 %v1951_v39 }
 0x1bc   : > { %360 = vmatpush.bf16.msrb.mxu2 %v1951_v39  ;;  %375 = vmatpush.bf16.msrb.mxu3 %v1951_v39 }
 0x1bf   : > { %331 = vmatpush.bf16.msrb.mxu0 %v1959_v40  ;;  %346 = vmatpush.bf16.msrb.mxu1 %v1959_v40 }
 0x1c0   : > { %361 = vmatpush.bf16.msrb.mxu2 %v1959_v40  ;;  %376 = vmatpush.bf16.msrb.mxu3 %v1959_v40 }
 0x1c3   : > { %332 = vmatpush.bf16.msrb.mxu0 %v1967_v41  ;;  %347 = vmatpush.bf16.msrb.mxu1 %v1967_v41 }
 0x1c4   : > { %362 = vmatpush.bf16.msrb.mxu2 %v1967_v41  ;;  %377 = vmatpush.bf16.msrb.mxu3 %v1967_v41 }
 0x1c7   : > { %385 = vmatpush.bf16.msra.mxu0 %v1913_v34  ;;  %400 = vmatpush.bf16.msra.mxu1 %v1913_v34 }
 0x1cb   : > { %386 = vmatpush.bf16.msra.mxu0 %v1919_v35  ;;  %401 = vmatpush.bf16.msra.mxu1 %v1919_v35 }
 0x1cf   : > { %387 = vmatpush.bf16.msra.mxu0 %v1927_v36  ;;  %402 = vmatpush.bf16.msra.mxu1 %v1927_v36 }
 0x1d3   : > { %388 = vmatpush.bf16.msra.mxu0 %v1935_v37  ;;  %403 = vmatpush.bf16.msra.mxu1 %v1935_v37 }
 0x1d7   : > { %389 = vmatpush.bf16.msra.mxu0 %v1943_v38  ;;  %404 = vmatpush.bf16.msra.mxu1 %v1943_v38 }
 0x1db   : > { %390 = vmatpush.bf16.msra.mxu0 %v1951_v39  ;;  %405 = vmatpush.bf16.msra.mxu1 %v1951_v39 }
 0x1df   : > { %391 = vmatpush.bf16.msra.mxu0 %v1959_v40  ;;  %406 = vmatpush.bf16.msra.mxu1 %v1959_v40 }
 0x1e3   : > { %392 = vmatpush.bf16.msra.mxu0 %v1967_v41  ;;  %407 = vmatpush.bf16.msra.mxu1 %v1967_v41 }
 0x223   : > { %v274_v44 = vpop.f32.mrf.mxu0  ;;  %v289_v45 = vpop.f32.mrf.mxu1 }
 0x224   : > { %v275_v46 = vadd.f32 %v274_v44, %v1887_v50  ;;  %v290_v47 = vadd.f32 %v289_v45, %v1889_v51 }
 0x226   : > { %v278_v52 = vmax.f32 %v275_v46, 0.0  ;;  %v293_v53 = vmax.f32 %v290_v47, 0.0 }
 0x228   : > { %v294_v54 = vpack.c.bf16 %v278_v52, %v278_v52  ;;  %v309_v55 = vpack.c.bf16 %v293_v53, %v293_v53 }
 0x22a   : > { %303 = vmatmul.bf16.vlgmr.msra.gmra.mxu2 %v294_v54  ;;  %318 = vmatmul.bf16.vlgmr.msra.gmra.mxu3 %v309_v55 }
 0x22b   : > { %v276_v56 = vpop.f32.mrf.mxu0  ;;  %v291_v57 = vpop.f32.mrf.mxu1  ;;  %415 = vmatpush.bf16.msra.mxu2 %v1913_v34  ;;  %430 = vmatpush.bf16.msra.mxu3 %v1913_v34 }
 0x22f   : > { %416 = vmatpush.bf16.msra.mxu2 %v1919_v35  ;;  %431 = vmatpush.bf16.msra.mxu3 %v1919_v35 }
 0x233   : > { %417 = vmatpush.bf16.msra.mxu2 %v1927_v36  ;;  %432 = vmatpush.bf16.msra.mxu3 %v1927_v36 }
 0x237   : > { %418 = vmatpush.bf16.msra.mxu2 %v1935_v37  ;;  %433 = vmatpush.bf16.msra.mxu3 %v1935_v37 }
 0x23b   : > { %419 = vmatpush.bf16.msra.mxu2 %v1943_v38  ;;  %434 = vmatpush.bf16.msra.mxu3 %v1943_v38 }
 0x23f   : > { %420 = vmatpush.bf16.msra.mxu2 %v1951_v39  ;;  %435 = vmatpush.bf16.msra.mxu3 %v1951_v39 }
 0x243   : > { %421 = vmatpush.bf16.msra.mxu2 %v1959_v40  ;;  %436 = vmatpush.bf16.msra.mxu3 %v1959_v40 }
 0x247   : > { %422 = vmatpush.bf16.msra.mxu2 %v1967_v41  ;;  %437 = vmatpush.bf16.msra.mxu3 %v1967_v41 }
 0x2ad   : > { %v304_v58 = vpop.f32.mrf.mxu2  ;;  %v319_v59 = vpop.f32.mrf.mxu3 }
 0x2ae   : > { %v305_v60 = vadd.f32 %v304_v58, %v1887_v50  ;;  %v320_v61 = vadd.f32 %v319_v59, %v1889_v51 }
 0x2b0   : > { %v308_v62 = vmax.f32 %v305_v60, 0.0  ;;  %v323_v63 = vmax.f32 %v320_v61, 0.0 }
 0x2b2   : > { %v324_v32 = vpack.c.bf16 %v308_v62, %v308_v62  ;;  %v339_v33 = vpack.c.bf16 %v323_v63, %v323_v63 }
 0x2b4   : > { %333 = vmatmul.bf16.vlgmr.msrb.gmra.mxu0 %v324_v32  ;;  %348 = vmatmul.bf16.vlgmr.msrb.gmra.mxu1 %v339_v33 }
 0x2b5   : > { %v306_v42 = vpop.f32.mrf.mxu2  ;;  %v321_v43 = vpop.f32.mrf.mxu3  ;;  %445 = vmatpush.bf16.msrb.mxu0 %v1913_v34  ;;  %460 = vmatpush.bf16.msrb.mxu1 %v1913_v34 }
 0x2b9   : > { %446 = vmatpush.bf16.msrb.mxu0 %v1919_v35  ;;  %461 = vmatpush.bf16.msrb.mxu1 %v1919_v35 }
 0x2bd   : > { %447 = vmatpush.bf16.msrb.mxu0 %v1927_v36  ;;  %462 = vmatpush.bf16.msrb.mxu1 %v1927_v36 }
 0x2c1   : > { %448 = vmatpush.bf16.msrb.mxu0 %v1935_v37  ;;  %463 = vmatpush.bf16.msrb.mxu1 %v1935_v37 }
 0x2c5   : > { %449 = vmatpush.bf16.msrb.mxu0 %v1943_v38  ;;  %464 = vmatpush.bf16.msrb.mxu1 %v1943_v38 }
 0x2c9   : > { %450 = vmatpush.bf16.msrb.mxu0 %v1951_v39  ;;  %465 = vmatpush.bf16.msrb.mxu1 %v1951_v39 }
 0x2cd   : > { %451 = vmatpush.bf16.msrb.mxu0 %v1959_v40  ;;  %466 = vmatpush.bf16.msrb.mxu1 %v1959_v40 }
 0x2d1   : > { %452 = vmatpush.bf16.msrb.mxu0 %v1967_v41  ;;  %467 = vmatpush.bf16.msrb.mxu1 %v1967_v41 }
 0x331   : > { %v334_v44 = vpop.f32.mrf.mxu0  ;;  %v349_v45 = vpop.f32.mrf.mxu1 }
 0x332   : > { %v335_v46 = vadd.f32 %v334_v44, %v1887_v50  ;;  %v350_v47 = vadd.f32 %v349_v45, %v1889_v51 }
 0x334   : > { %v338_v52 = vmax.f32 %v335_v46, 0.0  ;;  %v353_v53 = vmax.f32 %v350_v47, 0.0 }
 0x336   : > { %v354_v54 = vpack.c.bf16 %v338_v52, %v338_v52  ;;  %v369_v55 = vpack.c.bf16 %v353_v53, %v353_v53 }
 0x338   : > { %363 = vmatmul.bf16.vlgmr.msrb.gmra.mxu2 %v354_v54  ;;  %378 = vmatmul.bf16.vlgmr.msrb.gmra.mxu3 %v369_v55 }
 0x339   : > { %v336_v56 = vpop.f32.mrf.mxu0  ;;  %v351_v57 = vpop.f32.mrf.mxu1  ;;  %475 = vmatpush.bf16.msrb.mxu2 %v1913_v34  ;;  %490 = vmatpush.bf16.msrb.mxu3 %v1913_v34 }
 0x33d   : > { %476 = vmatpush.bf16.msrb.mxu2 %v1919_v35  ;;  %491 = vmatpush.bf16.msrb.mxu3 %v1919_v35 }
 0x341   : > { %477 = vmatpush.bf16.msrb.mxu2 %v1927_v36  ;;  %492 = vmatpush.bf16.msrb.mxu3 %v1927_v36 }
 0x345   : > { %478 = vmatpush.bf16.msrb.mxu2 %v1935_v37  ;;  %493 = vmatpush.bf16.msrb.mxu3 %v1935_v37 }
 0x349   : > { %479 = vmatpush.bf16.msrb.mxu2 %v1943_v38  ;;  %494 = vmatpush.bf16.msrb.mxu3 %v1943_v38 }
 0x34d   : > { %480 = vmatpush.bf16.msrb.mxu2 %v1951_v39  ;;  %495 = vmatpush.bf16.msrb.mxu3 %v1951_v39 }
 0x351   : > { %481 = vmatpush.bf16.msrb.mxu2 %v1959_v40  ;;  %496 = vmatpush.bf16.msrb.mxu3 %v1959_v40 }
 0x355   : > { %482 = vmatpush.bf16.msrb.mxu2 %v1967_v41  ;;  %497 = vmatpush.bf16.msrb.mxu3 %v1967_v41 }
 0x3bb   : > { %v364_v58 = vpop.f32.mrf.mxu2  ;;  %v379_v59 = vpop.f32.mrf.mxu3 }
 0x3bc   : > { %v365_v60 = vadd.f32 %v364_v58, %v1887_v50  ;;  %v380_v61 = vadd.f32 %v379_v59, %v1889_v51 }
 0x3be   : > { %v368_v62 = vmax.f32 %v365_v60, 0.0  ;;  %v383_v63 = vmax.f32 %v380_v61, 0.0 }
 0x3c0   : > { %v384_v32 = vpack.c.bf16 %v368_v62, %v368_v62  ;;  %v399_v33 = vpack.c.bf16 %v383_v63, %v383_v63 }
 0x3c2   : > { %393 = vmatmul.bf16.vlgmr.msra.gmra.mxu0 %v384_v32  ;;  %408 = vmatmul.bf16.vlgmr.msra.gmra.mxu1 %v399_v33 }
 0x3c3   : > { %v366_v42 = vpop.f32.mrf.mxu2  ;;  %v381_v43 = vpop.f32.mrf.mxu3  ;;  %505 = vmatpush.bf16.msra.mxu0 %v1913_v34  ;;  %520 = vmatpush.bf16.msra.mxu1 %v1913_v34 }
 0x3c7   : > { %506 = vmatpush.bf16.msra.mxu0 %v1919_v35  ;;  %521 = vmatpush.bf16.msra.mxu1 %v1919_v35 }
 0x3cb   : > { %507 = vmatpush.bf16.msra.mxu0 %v1927_v36  ;;  %522 = vmatpush.bf16.msra.mxu1 %v1927_v36 }
 0x3cf   : > { %508 = vmatpush.bf16.msra.mxu0 %v1935_v37  ;;  %523 = vmatpush.bf16.msra.mxu1 %v1935_v37 }
 0x3d3   : > { %509 = vmatpush.bf16.msra.mxu0 %v1943_v38  ;;  %524 = vmatpush.bf16.msra.mxu1 %v1943_v38 }
 0x3d7   : > { %510 = vmatpush.bf16.msra.mxu0 %v1951_v39  ;;  %525 = vmatpush.bf16.msra.mxu1 %v1951_v39 }
 0x3db   : > { %511 = vmatpush.bf16.msra.mxu0 %v1959_v40  ;;  %526 = vmatpush.bf16.msra.mxu1 %v1959_v40 }
 0x3df   : > { %512 = vmatpush.bf16.msra.mxu0 %v1967_v41  ;;  %527 = vmatpush.bf16.msra.mxu1 %v1967_v41 }
 0x43f   : > { %v394_v44 = vpop.f32.mrf.mxu0  ;;  %v409_v45 = vpop.f32.mrf.mxu1 }
 0x440   : > { %v395_v46 = vadd.f32 %v394_v44, %v1887_v50  ;;  %v410_v47 = vadd.f32 %v409_v45, %v1889_v51 }
 0x442   : > { %v398_v52 = vmax.f32 %v395_v46, 0.0  ;;  %v413_v53 = vmax.f32 %v410_v47, 0.0 }
 0x444   : > { %v414_v54 = vpack.c.bf16 %v398_v52, %v398_v52  ;;  %v429_v55 = vpack.c.bf16 %v413_v53, %v413_v53 }
 0x446   : > { %423 = vmatmul.bf16.vlgmr.msra.gmra.mxu2 %v414_v54  ;;  %438 = vmatmul.bf16.vlgmr.msra.gmra.mxu3 %v429_v55 }
 0x447   : > { %v396_v56 = vpop.f32.mrf.mxu0  ;;  %v411_v57 = vpop.f32.mrf.mxu1  ;;  %535 = vmatpush.bf16.msra.mxu2 %v1913_v34  ;;  %550 = vmatpush.bf16.msra.mxu3 %v1913_v34 }
 0x44b   : > { %536 = vmatpush.bf16.msra.mxu2 %v1919_v35  ;;  %551 = vmatpush.bf16.msra.mxu3 %v1919_v35 }
 0x44f   : > { %537 = vmatpush.bf16.msra.mxu2 %v1927_v36  ;;  %552 = vmatpush.bf16.msra.mxu3 %v1927_v36 }
 0x453   : > { %538 = vmatpush.bf16.msra.mxu2 %v1935_v37  ;;  %553 = vmatpush.bf16.msra.mxu3 %v1935_v37 }
 0x457   : > { %539 = vmatpush.bf16.msra.mxu2 %v1943_v38  ;;  %554 = vmatpush.bf16.msra.mxu3 %v1943_v38 }
 0x45b   : > { %540 = vmatpush.bf16.msra.mxu2 %v1951_v39  ;;  %555 = vmatpush.bf16.msra.mxu3 %v1951_v39 }
 0x45f   : > { %541 = vmatpush.bf16.msra.mxu2 %v1959_v40  ;;  %556 = vmatpush.bf16.msra.mxu3 %v1959_v40 }
 0x463   : > { %542 = vmatpush.bf16.msra.mxu2 %v1967_v41  ;;  %557 = vmatpush.bf16.msra.mxu3 %v1967_v41 }
 0x4c9   : > { %v424_v58 = vpop.f32.mrf.mxu2  ;;  %v439_v59 = vpop.f32.mrf.mxu3 }
 0x4ca   : > { %v425_v60 = vadd.f32 %v424_v58, %v1887_v50  ;;  %v440_v61 = vadd.f32 %v439_v59, %v1889_v51 }
 0x4cc   : > { %v428_v62 = vmax.f32 %v425_v60, 0.0  ;;  %v443_v63 = vmax.f32 %v440_v61, 0.0 }
 0x4ce   : > { %v444_v32 = vpack.c.bf16 %v428_v62, %v428_v62  ;;  %v459_v33 = vpack.c.bf16 %v443_v63, %v443_v63 }
 0x4d0   : > { %453 = vmatmul.bf16.vlgmr.msrb.gmra.mxu0 %v444_v32  ;;  %468 = vmatmul.bf16.vlgmr.msrb.gmra.mxu1 %v459_v33 }
 0x4d1   : > { %v426_v42 = vpop.f32.mrf.mxu2  ;;  %v441_v43 = vpop.f32.mrf.mxu3  ;;  %565 = vmatpush.bf16.msrb.mxu0 %v1913_v34  ;;  %580 = vmatpush.bf16.msrb.mxu1 %v1913_v34 }
 0x4d5   : > { %566 = vmatpush.bf16.msrb.mxu0 %v1919_v35  ;;  %581 = vmatpush.bf16.msrb.mxu1 %v1919_v35 }
 0x4d9   : > { %567 = vmatpush.bf16.msrb.mxu0 %v1927_v36  ;;  %582 = vmatpush.bf16.msrb.mxu1 %v1927_v36 }
 0x4dd   : > { %568 = vmatpush.bf16.msrb.mxu0 %v1935_v37  ;;  %583 = vmatpush.bf16.msrb.mxu1 %v1935_v37 }
 0x4e1   : > { %569 = vmatpush.bf16.msrb.mxu0 %v1943_v38  ;;  %584 = vmatpush.bf16.msrb.mxu1 %v1943_v38 }
 0x4e5   : > { %570 = vmatpush.bf16.msrb.mxu0 %v1951_v39  ;;  %585 = vmatpush.bf16.msrb.mxu1 %v1951_v39 }
 0x4e9   : > { %571 = vmatpush.bf16.msrb.mxu0 %v1959_v40  ;;  %586 = vmatpush.bf16.msrb.mxu1 %v1959_v40 }
 0x4ed   : > { %572 = vmatpush.bf16.msrb.mxu0 %v1967_v41  ;;  %587 = vmatpush.bf16.msrb.mxu1 %v1967_v41 }
 0x54d   : > { %v454_v44 = vpop.f32.mrf.mxu0  ;;  %v469_v45 = vpop.f32.mrf.mxu1 }
 0x54e   : > { %v455_v46 = vadd.f32 %v454_v44, %v1887_v50  ;;  %v470_v47 = vadd.f32 %v469_v45, %v1889_v51 }
 0x550   : > { %v458_v52 = vmax.f32 %v455_v46, 0.0  ;;  %v473_v53 = vmax.f32 %v470_v47, 0.0 }
 0x552   : > { %v474_v54 = vpack.c.bf16 %v458_v52, %v458_v52  ;;  %v489_v55 = vpack.c.bf16 %v473_v53, %v473_v53 }
 0x554   : > { %483 = vmatmul.bf16.vlgmr.msrb.gmra.mxu2 %v474_v54  ;;  %498 = vmatmul.bf16.vlgmr.msrb.gmra.mxu3 %v489_v55 }
 0x555   : > { %v456_v56 = vpop.f32.mrf.mxu0  ;;  %v471_v57 = vpop.f32.mrf.mxu1  ;;  %595 = vmatpush.bf16.msrb.mxu2 %v1913_v34  ;;  %610 = vmatpush.bf16.msrb.mxu3 %v1913_v34 }
 0x559   : > { %596 = vmatpush.bf16.msrb.mxu2 %v1919_v35  ;;  %611 = vmatpush.bf16.msrb.mxu3 %v1919_v35 }
 0x55d   : > { %597 = vmatpush.bf16.msrb.mxu2 %v1927_v36  ;;  %612 = vmatpush.bf16.msrb.mxu3 %v1927_v36 }
 0x561   : > { %598 = vmatpush.bf16.msrb.mxu2 %v1935_v37  ;;  %613 = vmatpush.bf16.msrb.mxu3 %v1935_v37 }
 0x565   : > { %599 = vmatpush.bf16.msrb.mxu2 %v1943_v38  ;;  %614 = vmatpush.bf16.msrb.mxu3 %v1943_v38 }
 0x569   : > { %600 = vmatpush.bf16.msrb.mxu2 %v1951_v39  ;;  %615 = vmatpush.bf16.msrb.mxu3 %v1951_v39 }
 0x56d   : > { %601 = vmatpush.bf16.msrb.mxu2 %v1959_v40  ;;  %616 = vmatpush.bf16.msrb.mxu3 %v1959_v40 }
 0x571   : > { %602 = vmatpush.bf16.msrb.mxu2 %v1967_v41  ;;  %617 = vmatpush.bf16.msrb.mxu3 %v1967_v41 }
 0x5d7   : > { %v484_v34 = vpop.f32.mrf.mxu2  ;;  %v499_v35 = vpop.f32.mrf.mxu3 }
 0x5d8   : > { %v485_v36 = vadd.f32 %v484_v34, %v1887_v50  ;;  %v500_v37 = vadd.f32 %v499_v35, %v1889_v51 }
 0x5da   : > { %v488_v58 = vmax.f32 %v485_v36, 0.0  ;;  %v503_v38 = vmax.f32 %v500_v37, 0.0 }
 0x5dc   : > { %v504_v59 = vpack.c.bf16 %v488_v58, %v488_v58  ;;  %v519_v60 = vpack.c.bf16 %v503_v38, %v503_v38 }
 0x5de   : > { %513 = vmatmul.bf16.vlgmr.msra.gmra.mxu0 %v504_v59  ;;  %528 = vmatmul.bf16.vlgmr.msra.gmra.mxu1 %v519_v60 }
 0x5df   : > { %v486_v39 = vpop.f32.mrf.mxu2  ;;  %v501_v61 = vpop.f32.mrf.mxu3 }
 0x65b   : > { %v514_v62 = vpop.f32.mrf.mxu0  ;;  %v529_v40 = vpop.f32.mrf.mxu1 }
 0x65c   : > { %v515_v63 = vadd.f32 %v514_v62, %v1887_v50  ;;  %v530_v41 = vadd.f32 %v529_v40, %v1889_v51 }
 0x65e   : > { %v518_v32 = vmax.f32 %v515_v63, 0.0  ;;  %v533_v33 = vmax.f32 %v530_v41, 0.0 }
 0x660   : > { %v534_v42 = vpack.c.bf16 %v518_v32, %v518_v32  ;;  %v549_v43 = vpack.c.bf16 %v533_v33, %v533_v33 }
 0x662   : > { %543 = vmatmul.bf16.vlgmr.msra.gmra.mxu2 %v534_v42  ;;  %558 = vmatmul.bf16.vlgmr.msra.gmra.mxu3 %v549_v43 }
 0x663   : > { %v516_v44 = vpop.f32.mrf.mxu0  ;;  %v531_v45 = vpop.f32.mrf.mxu1 }
 0x6e5   : > { %v544_v46 = vpop.f32.mrf.mxu2  ;;  %v559_v47 = vpop.f32.mrf.mxu3 }
 0x6e6   : > { %v545_v52 = vadd.f32 %v544_v46, %v1887_v50  ;;  %v560_v53 = vadd.f32 %v559_v47, %v1889_v51 }
 0x6e8   : > { %v548_v54 = vmax.f32 %v545_v52, 0.0  ;;  %v563_v55 = vmax.f32 %v560_v53, 0.0 }
 0x6ea   : > { %v564_v56 = vpack.c.bf16 %v548_v54, %v548_v54  ;;  %v579_v57 = vpack.c.bf16 %v563_v55, %v563_v55 }
 0x6ec   : > { %573 = vmatmul.bf16.vlgmr.msrb.gmra.mxu0 %v564_v56  ;;  %588 = vmatmul.bf16.vlgmr.msrb.gmra.mxu1 %v579_v57 }
 0x6ed   : > { %v546_v34 = vpop.f32.mrf.mxu2  ;;  %v561_v35 = vpop.f32.mrf.mxu3 }
 0x769   : > { %v574_v36 = vpop.f32.mrf.mxu0  ;;  %v589_v37 = vpop.f32.mrf.mxu1 }
 0x76a   : > { %v575_v58 = vadd.f32 %v574_v36, %v1887_v50  ;;  %v590_v38 = vadd.f32 %v589_v37, %v1889_v51 }
 0x76c   : > { %v578_v59 = vmax.f32 %v575_v58, 0.0  ;;  %v593_v60 = vmax.f32 %v590_v38, 0.0 }
 0x76e   : > { %v594_v39 = vpack.c.bf16 %v578_v59, %v578_v59  ;;  %v609_v61 = vpack.c.bf16 %v593_v60, %v593_v60 }
 0x770   : > { %603 = vmatmul.bf16.vlgmr.msrb.gmra.mxu2 %v594_v39  ;;  %618 = vmatmul.bf16.vlgmr.msrb.gmra.mxu3 %v609_v61 }
 0x771   : > { %v576_v62 = vpop.f32.mrf.mxu0  ;;  %v591_v40 = vpop.f32.mrf.mxu1 }
 0x7f3   : > { %v604_v63 = vpop.f32.mrf.mxu2  ;;  %v619_v41 = vpop.f32.mrf.mxu3 }
 0x7f4   : > { %v605_v32 = vadd.f32 %v604_v63, %v1887_v50  ;;  %v620_v33 = vadd.f32 %v619_v41, %v1889_v51 }
 0x7f6   : > { %v608_v42 = vmax.f32 %v605_v32, 0.0   ;;  %v623_v44 = vmax.f32 %v620_v33, 0.0  }
 0x7f8   : > { %v624_v43 = vsub.f32 %v608_v42, %v578_v59  ;;  %v635_v52 = vsub.f32 %v623_v44, %v593_v60  ;;  %v2627_v32 = vmov %v623_v44  ;;  %v2628_v33 = vmov %v608_v42 }
 0x7fa   : > { %v625_v45 = vand.u32 2147483647, %v624_v43  ;;  %v636_v53 = vand.u32 2147483647, %v635_v52 }
 0x7fb   : > { %v606_v46 = vpop.f32.mrf.mxu2  ;;  %v621_v47 = vpop.f32.mrf.mxu3 }
 0x7fc   : > { %626 = vmax.xlane.f32.xlu0 %v625_v45 }
 0x804   : > { %637 = vmax.xlane.f32.xlu0 %v636_v53 }
 0x86f   : > { %v627_v54 = vpop.xlane.xlu0 %626 }
 0x870   : > { %v628_v55 = vrot.slane %v627_v54, 4 }
 0x872   : > { %v629_v56 = vmax.f32 %v627_v54, %v628_v55 }
 0x874   : > { %v630_v57 = vrot.slane %v629_v56, 2 }
 0x876   : > { %v631_v34 = vmax.f32 %v629_v56, %v630_v57 }
 0x877   : > { %v638_v35 = vpop.xlane.xlu0 %637 }
 0x878   : > { %v639_v36 = vrot.slane %v638_v35, 4  ;;  %v632_v37 = vrot.slane %v631_v34, 1 }
 0x87a   : > { %v640_v58 = vmax.f32 %v638_v35, %v639_v36  ;;  %v633_v38 = vmax.f32 %v631_v34, %v632_v37 }
 0x87c   : > { %v641_v59 = vrot.slane %v640_v58, 2  ;;  %1411 = vpush %v633_v38 }
 0x87e   : > { %v642_v39 = vmax.f32 %v640_v58, %v641_v59 }
 0x880   : > { %v643_v61 = vrot.slane %v642_v39, 1 }
 0x882   : > { %v644_v62 = vmax.f32 %v642_v39, %v643_v61 }
 0x884   : > { %1413 = vpush %v644_v62 }
 0x8ad   : > { %s1412_s30 = spop %1411 }
 0x8b5   : > { %s1414_s7 = spop %1413 }
 0x8b6   : > { %s646_s8 = smax.f32 %s1414_s7, %s1412_s30 }
 0x8b7   : > { %p211_p2 = scmp.ge.f32.partialorder %s646_s8, %s1893_s28 }
 0x8b9   : > { %p212_p3 = pnand %p211_p2, %p210_p1 }
 0x8ba   :  { %v2629_v62 = vmov (%p212_p3), %v623_v44  ;;  %v2630_v63 = vmov (%p212_p3), %v608_v42 }
 0x8bb   :  { %215 = sbr.rel (!%p212_p3) target bundleno = 389 (0x185), region = 82 }
 0x8c0 PF:  { %s2173_s9 = smov 0   ;;  %v1723_v63 = vphi %v1898_v63, %v2630_v63   ;;  %v1719_v62 = vphi %v1896_v62, %v2629_v62  }
 0x8c1 LB: > { %659 = vmatpush.msra.mxu0 %v1847_v15  ;;  %680 = vmatpush.msra.mxu1 %v1847_v15  ;;  %s1186_s9 = sadd.s32 1, %s1727_s9   ;;  %v1735_v63 = vphi %v1723_v63, %v2634_v63   ;;  %v1731_v62 = vphi %v1719_v62, %v2633_v62   ;;  %s1727_s9 = sphi %s2173_s9, %s1186_s9  }
 0x8c2   : > { %701 = vmatpush.msra.mxu2 %v1847_v15  ;;  %722 = vmatpush.msra.mxu3 %v1847_v15  ;;  %p653_p4 = scmp.lt.s32.totalorder %s1186_s9, 25 }
 0x8c3   : > { %660 = vmatpush.msra.mxu0 %v1845_v14  ;;  %681 = vmatpush.msra.mxu1 %v1845_v14 }
 0x8c4   : > { %702 = vmatpush.msra.mxu2 %v1845_v14  ;;  %723 = vmatpush.msra.mxu3 %v1845_v14 }
 0x8c5   : > { %661 = vmatpush.msra.mxu0 %v1843_v13  ;;  %682 = vmatpush.msra.mxu1 %v1843_v13 }
 0x8c6   : > { %703 = vmatpush.msra.mxu2 %v1843_v13  ;;  %724 = vmatpush.msra.mxu3 %v1843_v13 }
 0x8c7   : > { %662 = vmatpush.msra.mxu0 %v1841_v12  ;;  %683 = vmatpush.msra.mxu1 %v1841_v12 }
 0x8c8   : > { %704 = vmatpush.msra.mxu2 %v1841_v12  ;;  %725 = vmatpush.msra.mxu3 %v1841_v12 }
 0x8c9   : > { %663 = vmatpush.msra.mxu0 %v1839_v11  ;;  %684 = vmatpush.msra.mxu1 %v1839_v11 }
 0x8ca   : > { %705 = vmatpush.msra.mxu2 %v1839_v11  ;;  %726 = vmatpush.msra.mxu3 %v1839_v11 }
 0x8cb   : > { %664 = vmatpush.msra.mxu0 %v1837_v10  ;;  %685 = vmatpush.msra.mxu1 %v1837_v10 }
 0x8cc   : > { %706 = vmatpush.msra.mxu2 %v1837_v10  ;;  %727 = vmatpush.msra.mxu3 %v1837_v10 }
 0x8cd   : > { %665 = vmatpush.msra.mxu0 %v1835_v9  ;;  %686 = vmatpush.msra.mxu1 %v1835_v9 }
 0x8ce   : > { %707 = vmatpush.msra.mxu2 %v1835_v9  ;;  %728 = vmatpush.msra.mxu3 %v1835_v9 }
 0x8cf   : > { %666 = vmatpush.msra.mxu0 %v1833_v8  ;;  %687 = vmatpush.msra.mxu1 %v1833_v8 }
 0x8d0   : > { %708 = vmatpush.msra.mxu2 %v1833_v8  ;;  %729 = vmatpush.msra.mxu3 %v1833_v8 }
 0x8d1   : > { %667 = vmatpush.msra.mxu0 %v1831_v7  ;;  %688 = vmatpush.msra.mxu1 %v1831_v7 }
 0x8d2   : > { %709 = vmatpush.msra.mxu2 %v1831_v7  ;;  %730 = vmatpush.msra.mxu3 %v1831_v7 }
 0x8d3   : > { %668 = vmatpush.msra.mxu0 %v1829_v6  ;;  %689 = vmatpush.msra.mxu1 %v1829_v6 }
 0x8d4   : > { %710 = vmatpush.msra.mxu2 %v1829_v6  ;;  %731 = vmatpush.msra.mxu3 %v1829_v6 }
 0x8d5   : > { %669 = vmatpush.msra.mxu0 %v1827_v5  ;;  %690 = vmatpush.msra.mxu1 %v1827_v5 }
 0x8d6   : > { %711 = vmatpush.msra.mxu2 %v1827_v5  ;;  %732 = vmatpush.msra.mxu3 %v1827_v5 }
 0x8d7   : > { %670 = vmatpush.msra.mxu0 %v1825_v4  ;;  %691 = vmatpush.msra.mxu1 %v1825_v4 }
 0x8d8   : > { %712 = vmatpush.msra.mxu2 %v1825_v4  ;;  %733 = vmatpush.msra.mxu3 %v1825_v4 }
 0x8d9   : > { %671 = vmatpush.msra.mxu0 %v1823_v3  ;;  %692 = vmatpush.msra.mxu1 %v1823_v3 }
 0x8da   : > { %713 = vmatpush.msra.mxu2 %v1823_v3  ;;  %734 = vmatpush.msra.mxu3 %v1823_v3 }
 0x8db   : > { %672 = vmatpush.msra.mxu0 %v1821_v2  ;;  %693 = vmatpush.msra.mxu1 %v1821_v2 }
 0x8dc   : > { %714 = vmatpush.msra.mxu2 %v1821_v2  ;;  %735 = vmatpush.msra.mxu3 %v1821_v2 }
 0x8dd   : > { %673 = vmatpush.msra.mxu0 %v1819_v1  ;;  %694 = vmatpush.msra.mxu1 %v1819_v1 }
 0x8de   : > { %715 = vmatpush.msra.mxu2 %v1819_v1  ;;  %736 = vmatpush.msra.mxu3 %v1819_v1 }
 0x8df   : > { %674 = vmatpush.msra.mxu0 %v1817_v0  ;;  %695 = vmatpush.msra.mxu1 %v1817_v0 }
 0x8e0   : > { %675 = vmatmul.f32.vlgmr.msra.gmra.mxu0 %v1735_v63  ;;  %696 = vmatmul.f32.vlgmr.msra.gmra.mxu1 %v1731_v62 }
 0x8e1   : > { %716 = vmatpush.msra.mxu2 %v1817_v0  ;;  %737 = vmatpush.msra.mxu3 %v1817_v0 }
 0x8e2   : > { %743 = vmatpush.msrb.mxu0 %v1847_v15  ;;  %764 = vmatpush.msrb.mxu1 %v1847_v15 }
 0x8e3   : > { %785 = vmatpush.msrb.mxu2 %v1847_v15  ;;  %806 = vmatpush.msrb.mxu3 %v1847_v15 }
 0x8e4   : > { %744 = vmatpush.msrb.mxu0 %v1845_v14  ;;  %765 = vmatpush.msrb.mxu1 %v1845_v14 }
 0x8e5   : > { %786 = vmatpush.msrb.mxu2 %v1845_v14  ;;  %807 = vmatpush.msrb.mxu3 %v1845_v14 }
 0x8e6   : > { %745 = vmatpush.msrb.mxu0 %v1843_v13  ;;  %766 = vmatpush.msrb.mxu1 %v1843_v13 }
 0x8e7   : > { %787 = vmatpush.msrb.mxu2 %v1843_v13  ;;  %808 = vmatpush.msrb.mxu3 %v1843_v13 }
 0x8e8   : > { %746 = vmatpush.msrb.mxu0 %v1841_v12  ;;  %767 = vmatpush.msrb.mxu1 %v1841_v12 }
 0x8e9   : > { %788 = vmatpush.msrb.mxu2 %v1841_v12  ;;  %809 = vmatpush.msrb.mxu3 %v1841_v12 }
 0x8ea   : > { %747 = vmatpush.msrb.mxu0 %v1839_v11  ;;  %768 = vmatpush.msrb.mxu1 %v1839_v11 }
 0x8eb   : > { %789 = vmatpush.msrb.mxu2 %v1839_v11  ;;  %810 = vmatpush.msrb.mxu3 %v1839_v11 }
 0x8ec   : > { %748 = vmatpush.msrb.mxu0 %v1837_v10  ;;  %769 = vmatpush.msrb.mxu1 %v1837_v10 }
 0x8ed   : > { %790 = vmatpush.msrb.mxu2 %v1837_v10  ;;  %811 = vmatpush.msrb.mxu3 %v1837_v10 }
 0x8ee   : > { %749 = vmatpush.msrb.mxu0 %v1835_v9  ;;  %770 = vmatpush.msrb.mxu1 %v1835_v9 }
 0x8ef   : > { %791 = vmatpush.msrb.mxu2 %v1835_v9  ;;  %812 = vmatpush.msrb.mxu3 %v1835_v9 }
 0x8f0   : > { %750 = vmatpush.msrb.mxu0 %v1833_v8  ;;  %771 = vmatpush.msrb.mxu1 %v1833_v8 }
 0x8f1   : > { %792 = vmatpush.msrb.mxu2 %v1833_v8  ;;  %813 = vmatpush.msrb.mxu3 %v1833_v8 }
 0x8f2   : > { %751 = vmatpush.msrb.mxu0 %v1831_v7  ;;  %772 = vmatpush.msrb.mxu1 %v1831_v7 }
 0x8f3   : > { %793 = vmatpush.msrb.mxu2 %v1831_v7  ;;  %814 = vmatpush.msrb.mxu3 %v1831_v7 }
 0x8f4   : > { %752 = vmatpush.msrb.mxu0 %v1829_v6  ;;  %773 = vmatpush.msrb.mxu1 %v1829_v6 }
 0x8f5   : > { %794 = vmatpush.msrb.mxu2 %v1829_v6  ;;  %815 = vmatpush.msrb.mxu3 %v1829_v6 }
 0x8f6   : > { %753 = vmatpush.msrb.mxu0 %v1827_v5  ;;  %774 = vmatpush.msrb.mxu1 %v1827_v5 }
 0x8f7   : > { %795 = vmatpush.msrb.mxu2 %v1827_v5  ;;  %816 = vmatpush.msrb.mxu3 %v1827_v5 }
 0x8f8   : > { %754 = vmatpush.msrb.mxu0 %v1825_v4  ;;  %775 = vmatpush.msrb.mxu1 %v1825_v4 }
 0x8f9   : > { %796 = vmatpush.msrb.mxu2 %v1825_v4  ;;  %817 = vmatpush.msrb.mxu3 %v1825_v4 }
 0x8fa   : > { %755 = vmatpush.msrb.mxu0 %v1823_v3  ;;  %776 = vmatpush.msrb.mxu1 %v1823_v3 }
 0x8fb   : > { %797 = vmatpush.msrb.mxu2 %v1823_v3  ;;  %818 = vmatpush.msrb.mxu3 %v1823_v3 }
 0x8fc   : > { %756 = vmatpush.msrb.mxu0 %v1821_v2  ;;  %777 = vmatpush.msrb.mxu1 %v1821_v2 }
 0x8fd   : > { %798 = vmatpush.msrb.mxu2 %v1821_v2  ;;  %819 = vmatpush.msrb.mxu3 %v1821_v2 }
 0x8fe   : > { %757 = vmatpush.msrb.mxu0 %v1819_v1  ;;  %778 = vmatpush.msrb.mxu1 %v1819_v1 }
 0x8ff   : > { %799 = vmatpush.msrb.mxu2 %v1819_v1  ;;  %820 = vmatpush.msrb.mxu3 %v1819_v1 }
 0x900   : > { %758 = vmatpush.msrb.mxu0 %v1817_v0  ;;  %779 = vmatpush.msrb.mxu1 %v1817_v0 }
 0x901   : > { %800 = vmatpush.msrb.mxu2 %v1817_v0  ;;  %821 = vmatpush.msrb.mxu3 %v1817_v0 }
 0x902   : > { %827 = vmatpush.msra.mxu0 %v1847_v15  ;;  %848 = vmatpush.msra.mxu1 %v1847_v15 }
 0x904   : > { %828 = vmatpush.msra.mxu0 %v1845_v14  ;;  %849 = vmatpush.msra.mxu1 %v1845_v14 }
 0x906   : > { %829 = vmatpush.msra.mxu0 %v1843_v13  ;;  %850 = vmatpush.msra.mxu1 %v1843_v13 }
 0x908   : > { %830 = vmatpush.msra.mxu0 %v1841_v12  ;;  %851 = vmatpush.msra.mxu1 %v1841_v12 }
 0x90a   : > { %831 = vmatpush.msra.mxu0 %v1839_v11  ;;  %852 = vmatpush.msra.mxu1 %v1839_v11 }
 0x90c   : > { %832 = vmatpush.msra.mxu0 %v1837_v10  ;;  %853 = vmatpush.msra.mxu1 %v1837_v10 }
 0x90e   : > { %833 = vmatpush.msra.mxu0 %v1835_v9  ;;  %854 = vmatpush.msra.mxu1 %v1835_v9 }
 0x910   : > { %834 = vmatpush.msra.mxu0 %v1833_v8  ;;  %855 = vmatpush.msra.mxu1 %v1833_v8 }
 0x912   : > { %835 = vmatpush.msra.mxu0 %v1831_v7  ;;  %856 = vmatpush.msra.mxu1 %v1831_v7 }
 0x914   : > { %836 = vmatpush.msra.mxu0 %v1829_v6  ;;  %857 = vmatpush.msra.mxu1 %v1829_v6 }
 0x916   : > { %837 = vmatpush.msra.mxu0 %v1827_v5  ;;  %858 = vmatpush.msra.mxu1 %v1827_v5 }
 0x918   : > { %838 = vmatpush.msra.mxu0 %v1825_v4  ;;  %859 = vmatpush.msra.mxu1 %v1825_v4 }
 0x91a   : > { %839 = vmatpush.msra.mxu0 %v1823_v3  ;;  %860 = vmatpush.msra.mxu1 %v1823_v3 }
 0x91c   : > { %840 = vmatpush.msra.mxu0 %v1821_v2  ;;  %861 = vmatpush.msra.mxu1 %v1821_v2 }
 0x91e   : > { %841 = vmatpush.msra.mxu0 %v1819_v1  ;;  %862 = vmatpush.msra.mxu1 %v1819_v1 }
 0x920   : > { %842 = vmatpush.msra.mxu0 %v1817_v0  ;;  %863 = vmatpush.msra.mxu1 %v1817_v0 }
 0x95d   : > { %v676_v16 = vpop.f32.mrf.mxu0  ;;  %v697_v17 = vpop.f32.mrf.mxu1 }
 0x95e   : > { %v677_v18 = vadd.f32 %v676_v16, %v1887_v50  ;;  %v698_v19 = vadd.f32 %v697_v17, %v1889_v51 }
 0x960   : > { %v679_v20 = vmax.f32 %v677_v18, 0.0  ;;  %v700_v21 = vmax.f32 %v698_v19, 0.0 }
 0x962   : > { %717 = vmatmul.f32.vlgmr.msra.gmra.mxu2 %v679_v20  ;;  %738 = vmatmul.f32.vlgmr.msra.gmra.mxu3 %v700_v21 }
 0x963   : > { %869 = vmatpush.msra.mxu2 %v1847_v15  ;;  %890 = vmatpush.msra.mxu3 %v1847_v15 }
 0x965   : > { %870 = vmatpush.msra.mxu2 %v1845_v14  ;;  %891 = vmatpush.msra.mxu3 %v1845_v14 }
 0x967   : > { %871 = vmatpush.msra.mxu2 %v1843_v13  ;;  %892 = vmatpush.msra.mxu3 %v1843_v13 }
 0x969   : > { %872 = vmatpush.msra.mxu2 %v1841_v12  ;;  %893 = vmatpush.msra.mxu3 %v1841_v12 }
 0x96b   : > { %873 = vmatpush.msra.mxu2 %v1839_v11  ;;  %894 = vmatpush.msra.mxu3 %v1839_v11 }
 0x96d   : > { %874 = vmatpush.msra.mxu2 %v1837_v10  ;;  %895 = vmatpush.msra.mxu3 %v1837_v10 }
 0x96f   : > { %875 = vmatpush.msra.mxu2 %v1835_v9  ;;  %896 = vmatpush.msra.mxu3 %v1835_v9 }
 0x971   : > { %876 = vmatpush.msra.mxu2 %v1833_v8  ;;  %897 = vmatpush.msra.mxu3 %v1833_v8 }
 0x973   : > { %877 = vmatpush.msra.mxu2 %v1831_v7  ;;  %898 = vmatpush.msra.mxu3 %v1831_v7 }
 0x975   : > { %878 = vmatpush.msra.mxu2 %v1829_v6  ;;  %899 = vmatpush.msra.mxu3 %v1829_v6 }
 0x977   : > { %879 = vmatpush.msra.mxu2 %v1827_v5  ;;  %900 = vmatpush.msra.mxu3 %v1827_v5 }
 0x979   : > { %880 = vmatpush.msra.mxu2 %v1825_v4  ;;  %901 = vmatpush.msra.mxu3 %v1825_v4 }
 0x97b   : > { %881 = vmatpush.msra.mxu2 %v1823_v3  ;;  %902 = vmatpush.msra.mxu3 %v1823_v3 }
 0x97d   : > { %882 = vmatpush.msra.mxu2 %v1821_v2  ;;  %903 = vmatpush.msra.mxu3 %v1821_v2 }
 0x97f   : > { %883 = vmatpush.msra.mxu2 %v1819_v1  ;;  %904 = vmatpush.msra.mxu3 %v1819_v1 }
 0x981   : > { %884 = vmatpush.msra.mxu2 %v1817_v0  ;;  %905 = vmatpush.msra.mxu3 %v1817_v0 }
 0x9e5   : > { %v718_v22 = vpop.f32.mrf.mxu2  ;;  %v739_v23 = vpop.f32.mrf.mxu3 }
 0x9e6   : > { %v719_v24 = vadd.f32 %v718_v22, %v1887_v50  ;;  %v740_v25 = vadd.f32 %v739_v23, %v1889_v51 }
 0x9e8   : > { %v721_v26 = vmax.f32 %v719_v24, 0.0  ;;  %v742_v27 = vmax.f32 %v740_v25, 0.0 }
 0x9ea   : > { %759 = vmatmul.f32.vlgmr.msrb.gmra.mxu0 %v721_v26  ;;  %780 = vmatmul.f32.vlgmr.msrb.gmra.mxu1 %v742_v27 }
 0x9eb   : > { %911 = vmatpush.msrb.mxu0 %v1847_v15  ;;  %932 = vmatpush.msrb.mxu1 %v1847_v15 }
 0x9ed   : > { %912 = vmatpush.msrb.mxu0 %v1845_v14  ;;  %933 = vmatpush.msrb.mxu1 %v1845_v14 }
 0x9ef   : > { %913 = vmatpush.msrb.mxu0 %v1843_v13  ;;  %934 = vmatpush.msrb.mxu1 %v1843_v13 }
 0x9f1   : > { %914 = vmatpush.msrb.mxu0 %v1841_v12  ;;  %935 = vmatpush.msrb.mxu1 %v1841_v12 }
 0x9f3   : > { %915 = vmatpush.msrb.mxu0 %v1839_v11  ;;  %936 = vmatpush.msrb.mxu1 %v1839_v11 }
 0x9f5   : > { %916 = vmatpush.msrb.mxu0 %v1837_v10  ;;  %937 = vmatpush.msrb.mxu1 %v1837_v10 }
 0x9f7   : > { %917 = vmatpush.msrb.mxu0 %v1835_v9  ;;  %938 = vmatpush.msrb.mxu1 %v1835_v9 }
 0x9f9   : > { %918 = vmatpush.msrb.mxu0 %v1833_v8  ;;  %939 = vmatpush.msrb.mxu1 %v1833_v8 }
 0x9fb   : > { %919 = vmatpush.msrb.mxu0 %v1831_v7  ;;  %940 = vmatpush.msrb.mxu1 %v1831_v7 }
 0x9fd   : > { %920 = vmatpush.msrb.mxu0 %v1829_v6  ;;  %941 = vmatpush.msrb.mxu1 %v1829_v6 }
 0x9ff   : > { %921 = vmatpush.msrb.mxu0 %v1827_v5  ;;  %942 = vmatpush.msrb.mxu1 %v1827_v5 }
 0xa01   : > { %922 = vmatpush.msrb.mxu0 %v1825_v4  ;;  %943 = vmatpush.msrb.mxu1 %v1825_v4 }
 0xa03   : > { %923 = vmatpush.msrb.mxu0 %v1823_v3  ;;  %944 = vmatpush.msrb.mxu1 %v1823_v3 }
 0xa05   : > { %924 = vmatpush.msrb.mxu0 %v1821_v2  ;;  %945 = vmatpush.msrb.mxu1 %v1821_v2 }
 0xa07   : > { %925 = vmatpush.msrb.mxu0 %v1819_v1  ;;  %946 = vmatpush.msrb.mxu1 %v1819_v1 }
 0xa09   : > { %926 = vmatpush.msrb.mxu0 %v1817_v0  ;;  %947 = vmatpush.msrb.mxu1 %v1817_v0 }
 0xa67   : > { %v760_v28 = vpop.f32.mrf.mxu0  ;;  %v781_v29 = vpop.f32.mrf.mxu1 }
 0xa68   : > { %v761_v30 = vadd.f32 %v760_v28, %v1887_v50  ;;  %v782_v31 = vadd.f32 %v781_v29, %v1889_v51 }
 0xa6a   : > { %v763_v60 = vmax.f32 %v761_v30, 0.0  ;;  %v784_v40 = vmax.f32 %v782_v31, 0.0 }
 0xa6c   : > { %801 = vmatmul.f32.vlgmr.msrb.gmra.mxu2 %v763_v60  ;;  %822 = vmatmul.f32.vlgmr.msrb.gmra.mxu3 %v784_v40 }
 0xa6d   : > { %953 = vmatpush.msrb.mxu2 %v1847_v15  ;;  %974 = vmatpush.msrb.mxu3 %v1847_v15 }
 0xa6f   : > { %954 = vmatpush.msrb.mxu2 %v1845_v14  ;;  %975 = vmatpush.msrb.mxu3 %v1845_v14 }
 0xa71   : > { %955 = vmatpush.msrb.mxu2 %v1843_v13  ;;  %976 = vmatpush.msrb.mxu3 %v1843_v13 }
 0xa73   : > { %956 = vmatpush.msrb.mxu2 %v1841_v12  ;;  %977 = vmatpush.msrb.mxu3 %v1841_v12 }
 0xa75   : > { %957 = vmatpush.msrb.mxu2 %v1839_v11  ;;  %978 = vmatpush.msrb.mxu3 %v1839_v11 }
 0xa77   : > { %958 = vmatpush.msrb.mxu2 %v1837_v10  ;;  %979 = vmatpush.msrb.mxu3 %v1837_v10 }
 0xa79   : > { %959 = vmatpush.msrb.mxu2 %v1835_v9  ;;  %980 = vmatpush.msrb.mxu3 %v1835_v9 }
 0xa7b   : > { %960 = vmatpush.msrb.mxu2 %v1833_v8  ;;  %981 = vmatpush.msrb.mxu3 %v1833_v8 }
 0xa7d   : > { %961 = vmatpush.msrb.mxu2 %v1831_v7  ;;  %982 = vmatpush.msrb.mxu3 %v1831_v7 }
 0xa7f   : > { %962 = vmatpush.msrb.mxu2 %v1829_v6  ;;  %983 = vmatpush.msrb.mxu3 %v1829_v6 }
 0xa81   : > { %963 = vmatpush.msrb.mxu2 %v1827_v5  ;;  %984 = vmatpush.msrb.mxu3 %v1827_v5 }
 0xa83   : > { %964 = vmatpush.msrb.mxu2 %v1825_v4  ;;  %985 = vmatpush.msrb.mxu3 %v1825_v4 }
 0xa85   : > { %965 = vmatpush.msrb.mxu2 %v1823_v3  ;;  %986 = vmatpush.msrb.mxu3 %v1823_v3 }
 0xa87   : > { %966 = vmatpush.msrb.mxu2 %v1821_v2  ;;  %987 = vmatpush.msrb.mxu3 %v1821_v2 }
 0xa89   : > { %967 = vmatpush.msrb.mxu2 %v1819_v1  ;;  %988 = vmatpush.msrb.mxu3 %v1819_v1 }
 0xa8b   : > { %968 = vmatpush.msrb.mxu2 %v1817_v0  ;;  %989 = vmatpush.msrb.mxu3 %v1817_v0 }
 0xaef   : > { %v802_v63 = vpop.f32.mrf.mxu2  ;;  %v823_v41 = vpop.f32.mrf.mxu3 }
 0xaf0   : > { %v803_v32 = vadd.f32 %v802_v63, %v1887_v50  ;;  %v824_v42 = vadd.f32 %v823_v41, %v1889_v51 }
 0xaf2   : > { %v805_v33 = vmax.f32 %v803_v32, 0.0  ;;  %v826_v43 = vmax.f32 %v824_v42, 0.0 }
 0xaf4   : > { %843 = vmatmul.f32.vlgmr.msra.gmra.mxu0 %v805_v33  ;;  %864 = vmatmul.f32.vlgmr.msra.gmra.mxu1 %v826_v43 }
 0xaf5   : > { %995 = vmatpush.msra.mxu0 %v1847_v15  ;;  %1016 = vmatpush.msra.mxu1 %v1847_v15 }
 0xaf7   : > { %996 = vmatpush.msra.mxu0 %v1845_v14  ;;  %1017 = vmatpush.msra.mxu1 %v1845_v14 }
 0xaf9   : > { %997 = vmatpush.msra.mxu0 %v1843_v13  ;;  %1018 = vmatpush.msra.mxu1 %v1843_v13 }
 0xafb   : > { %998 = vmatpush.msra.mxu0 %v1841_v12  ;;  %1019 = vmatpush.msra.mxu1 %v1841_v12 }
 0xafd   : > { %999 = vmatpush.msra.mxu0 %v1839_v11  ;;  %1020 = vmatpush.msra.mxu1 %v1839_v11 }
 0xaff   : > { %1000 = vmatpush.msra.mxu0 %v1837_v10  ;;  %1021 = vmatpush.msra.mxu1 %v1837_v10 }
 0xb01   : > { %1001 = vmatpush.msra.mxu0 %v1835_v9  ;;  %1022 = vmatpush.msra.mxu1 %v1835_v9 }
 0xb03   : > { %1002 = vmatpush.msra.mxu0 %v1833_v8  ;;  %1023 = vmatpush.msra.mxu1 %v1833_v8 }
 0xb05   : > { %1003 = vmatpush.msra.mxu0 %v1831_v7  ;;  %1024 = vmatpush.msra.mxu1 %v1831_v7 }
 0xb07   : > { %1004 = vmatpush.msra.mxu0 %v1829_v6  ;;  %1025 = vmatpush.msra.mxu1 %v1829_v6 }
 0xb09   : > { %1005 = vmatpush.msra.mxu0 %v1827_v5  ;;  %1026 = vmatpush.msra.mxu1 %v1827_v5 }
 0xb0b   : > { %1006 = vmatpush.msra.mxu0 %v1825_v4  ;;  %1027 = vmatpush.msra.mxu1 %v1825_v4 }
 0xb0d   : > { %1007 = vmatpush.msra.mxu0 %v1823_v3  ;;  %1028 = vmatpush.msra.mxu1 %v1823_v3 }
 0xb0f   : > { %1008 = vmatpush.msra.mxu0 %v1821_v2  ;;  %1029 = vmatpush.msra.mxu1 %v1821_v2 }
 0xb11   : > { %1009 = vmatpush.msra.mxu0 %v1819_v1  ;;  %1030 = vmatpush.msra.mxu1 %v1819_v1 }
 0xb13   : > { %1010 = vmatpush.msra.mxu0 %v1817_v0  ;;  %1031 = vmatpush.msra.mxu1 %v1817_v0 }
 0xb71   : > { %v844_v44 = vpop.f32.mrf.mxu0  ;;  %v865_v45 = vpop.f32.mrf.mxu1 }
 0xb72   : > { %v845_v46 = vadd.f32 %v844_v44, %v1887_v50  ;;  %v866_v47 = vadd.f32 %v865_v45, %v1889_v51 }
 0xb74   : > { %v847_v52 = vmax.f32 %v845_v46, 0.0  ;;  %v868_v53 = vmax.f32 %v866_v47, 0.0 }
 0xb76   : > { %885 = vmatmul.f32.vlgmr.msra.gmra.mxu2 %v847_v52  ;;  %906 = vmatmul.f32.vlgmr.msra.gmra.mxu3 %v868_v53 }
 0xb77   : > { %1037 = vmatpush.msra.mxu2 %v1847_v15  ;;  %1058 = vmatpush.msra.mxu3 %v1847_v15 }
 0xb79   : > { %1038 = vmatpush.msra.mxu2 %v1845_v14  ;;  %1059 = vmatpush.msra.mxu3 %v1845_v14 }
 0xb7b   : > { %1039 = vmatpush.msra.mxu2 %v1843_v13  ;;  %1060 = vmatpush.msra.mxu3 %v1843_v13 }
 0xb7d   : > { %1040 = vmatpush.msra.mxu2 %v1841_v12  ;;  %1061 = vmatpush.msra.mxu3 %v1841_v12 }
 0xb7f   : > { %1041 = vmatpush.msra.mxu2 %v1839_v11  ;;  %1062 = vmatpush.msra.mxu3 %v1839_v11 }
 0xb81   : > { %1042 = vmatpush.msra.mxu2 %v1837_v10  ;;  %1063 = vmatpush.msra.mxu3 %v1837_v10 }
 0xb83   : > { %1043 = vmatpush.msra.mxu2 %v1835_v9  ;;  %1064 = vmatpush.msra.mxu3 %v1835_v9 }
 0xb85   : > { %1044 = vmatpush.msra.mxu2 %v1833_v8  ;;  %1065 = vmatpush.msra.mxu3 %v1833_v8 }
 0xb87   : > { %1045 = vmatpush.msra.mxu2 %v1831_v7  ;;  %1066 = vmatpush.msra.mxu3 %v1831_v7 }
 0xb89   : > { %1046 = vmatpush.msra.mxu2 %v1829_v6  ;;  %1067 = vmatpush.msra.mxu3 %v1829_v6 }
 0xb8b   : > { %1047 = vmatpush.msra.mxu2 %v1827_v5  ;;  %1068 = vmatpush.msra.mxu3 %v1827_v5 }
 0xb8d   : > { %1048 = vmatpush.msra.mxu2 %v1825_v4  ;;  %1069 = vmatpush.msra.mxu3 %v1825_v4 }
 0xb8f   : > { %1049 = vmatpush.msra.mxu2 %v1823_v3  ;;  %1070 = vmatpush.msra.mxu3 %v1823_v3 }
 0xb91   : > { %1050 = vmatpush.msra.mxu2 %v1821_v2  ;;  %1071 = vmatpush.msra.mxu3 %v1821_v2 }
 0xb93   : > { %1051 = vmatpush.msra.mxu2 %v1819_v1  ;;  %1072 = vmatpush.msra.mxu3 %v1819_v1 }
 0xb95   : > { %1052 = vmatpush.msra.mxu2 %v1817_v0  ;;  %1073 = vmatpush.msra.mxu3 %v1817_v0 }
 0xbf9   : > { %v886_v54 = vpop.f32.mrf.mxu2  ;;  %v907_v55 = vpop.f32.mrf.mxu3 }
 0xbfa   : > { %v887_v56 = vadd.f32 %v886_v54, %v1887_v50  ;;  %v908_v57 = vadd.f32 %v907_v55, %v1889_v51 }
 0xbfc   : > { %v889_v34 = vmax.f32 %v887_v56, 0.0  ;;  %v910_v35 = vmax.f32 %v908_v57, 0.0 }
 0xbfe   : > { %927 = vmatmul.f32.vlgmr.msrb.gmra.mxu0 %v889_v34  ;;  %948 = vmatmul.f32.vlgmr.msrb.gmra.mxu1 %v910_v35 }
 0xbff   : > { %1079 = vmatpush.msrb.mxu0 %v1847_v15  ;;  %1100 = vmatpush.msrb.mxu1 %v1847_v15 }
 0xc01   : > { %1080 = vmatpush.msrb.mxu0 %v1845_v14  ;;  %1101 = vmatpush.msrb.mxu1 %v1845_v14 }
 0xc03   : > { %1081 = vmatpush.msrb.mxu0 %v1843_v13  ;;  %1102 = vmatpush.msrb.mxu1 %v1843_v13 }
 0xc05   : > { %1082 = vmatpush.msrb.mxu0 %v1841_v12  ;;  %1103 = vmatpush.msrb.mxu1 %v1841_v12 }
 0xc07   : > { %1083 = vmatpush.msrb.mxu0 %v1839_v11  ;;  %1104 = vmatpush.msrb.mxu1 %v1839_v11 }
 0xc09   : > { %1084 = vmatpush.msrb.mxu0 %v1837_v10  ;;  %1105 = vmatpush.msrb.mxu1 %v1837_v10 }
 0xc0b   : > { %1085 = vmatpush.msrb.mxu0 %v1835_v9  ;;  %1106 = vmatpush.msrb.mxu1 %v1835_v9 }
 0xc0d   : > { %1086 = vmatpush.msrb.mxu0 %v1833_v8  ;;  %1107 = vmatpush.msrb.mxu1 %v1833_v8 }
 0xc0f   : > { %1087 = vmatpush.msrb.mxu0 %v1831_v7  ;;  %1108 = vmatpush.msrb.mxu1 %v1831_v7 }
 0xc11   : > { %1088 = vmatpush.msrb.mxu0 %v1829_v6  ;;  %1109 = vmatpush.msrb.mxu1 %v1829_v6 }
 0xc13   : > { %1089 = vmatpush.msrb.mxu0 %v1827_v5  ;;  %1110 = vmatpush.msrb.mxu1 %v1827_v5 }
 0xc15   : > { %1090 = vmatpush.msrb.mxu0 %v1825_v4  ;;  %1111 = vmatpush.msrb.mxu1 %v1825_v4 }
 0xc17   : > { %1091 = vmatpush.msrb.mxu0 %v1823_v3  ;;  %1112 = vmatpush.msrb.mxu1 %v1823_v3 }
 0xc19   : > { %1092 = vmatpush.msrb.mxu0 %v1821_v2  ;;  %1113 = vmatpush.msrb.mxu1 %v1821_v2 }
 0xc1b   : > { %1093 = vmatpush.msrb.mxu0 %v1819_v1  ;;  %1114 = vmatpush.msrb.mxu1 %v1819_v1 }
 0xc1d   : > { %1094 = vmatpush.msrb.mxu0 %v1817_v0  ;;  %1115 = vmatpush.msrb.mxu1 %v1817_v0 }
 0xc7b   : > { %v928_v36 = vpop.f32.mrf.mxu0  ;;  %v949_v37 = vpop.f32.mrf.mxu1 }
 0xc7c   : > { %v929_v58 = vadd.f32 %v928_v36, %v1887_v50  ;;  %v950_v38 = vadd.f32 %v949_v37, %v1889_v51 }
 0xc7e   : > { %v931_v59 = vmax.f32 %v929_v58, 0.0  ;;  %v952_v39 = vmax.f32 %v950_v38, 0.0 }
 0xc80   : > { %969 = vmatmul.f32.vlgmr.msrb.gmra.mxu2 %v931_v59  ;;  %990 = vmatmul.f32.vlgmr.msrb.gmra.mxu3 %v952_v39 }
 0xc81   : > { %1121 = vmatpush.msrb.mxu2 %v1847_v15  ;;  %1142 = vmatpush.msrb.mxu3 %v1847_v15 }
 0xc83   : > { %1122 = vmatpush.msrb.mxu2 %v1845_v14  ;;  %1143 = vmatpush.msrb.mxu3 %v1845_v14 }
 0xc85   : > { %1123 = vmatpush.msrb.mxu2 %v1843_v13  ;;  %1144 = vmatpush.msrb.mxu3 %v1843_v13 }
 0xc87   : > { %1124 = vmatpush.msrb.mxu2 %v1841_v12  ;;  %1145 = vmatpush.msrb.mxu3 %v1841_v12 }
 0xc89   : > { %1125 = vmatpush.msrb.mxu2 %v1839_v11  ;;  %1146 = vmatpush.msrb.mxu3 %v1839_v11 }
 0xc8b   : > { %1126 = vmatpush.msrb.mxu2 %v1837_v10  ;;  %1147 = vmatpush.msrb.mxu3 %v1837_v10 }
 0xc8d   : > { %1127 = vmatpush.msrb.mxu2 %v1835_v9  ;;  %1148 = vmatpush.msrb.mxu3 %v1835_v9 }
 0xc8f   : > { %1128 = vmatpush.msrb.mxu2 %v1833_v8  ;;  %1149 = vmatpush.msrb.mxu3 %v1833_v8 }
 0xc91   : > { %1129 = vmatpush.msrb.mxu2 %v1831_v7  ;;  %1150 = vmatpush.msrb.mxu3 %v1831_v7 }
 0xc93   : > { %1130 = vmatpush.msrb.mxu2 %v1829_v6  ;;  %1151 = vmatpush.msrb.mxu3 %v1829_v6 }
 0xc95   : > { %1131 = vmatpush.msrb.mxu2 %v1827_v5  ;;  %1152 = vmatpush.msrb.mxu3 %v1827_v5 }
 0xc97   : > { %1132 = vmatpush.msrb.mxu2 %v1825_v4  ;;  %1153 = vmatpush.msrb.mxu3 %v1825_v4 }
 0xc99   : > { %1133 = vmatpush.msrb.mxu2 %v1823_v3  ;;  %1154 = vmatpush.msrb.mxu3 %v1823_v3 }
 0xc9b   : > { %1134 = vmatpush.msrb.mxu2 %v1821_v2  ;;  %1155 = vmatpush.msrb.mxu3 %v1821_v2 }
 0xc9d   : > { %1135 = vmatpush.msrb.mxu2 %v1819_v1  ;;  %1156 = vmatpush.msrb.mxu3 %v1819_v1 }
 0xc9f   : > { %1136 = vmatpush.msrb.mxu2 %v1817_v0  ;;  %1157 = vmatpush.msrb.mxu3 %v1817_v0 }
 0xd03   : > { %v970_v61 = vpop.f32.mrf.mxu2  ;;  %v991_v62 = vpop.f32.mrf.mxu3 }
 0xd04   : > { %v971_v16 = vadd.f32 %v970_v61, %v1887_v50  ;;  %v992_v17 = vadd.f32 %v991_v62, %v1889_v51 }
 0xd06   : > { %v973_v18 = vmax.f32 %v971_v16, 0.0  ;;  %v994_v19 = vmax.f32 %v992_v17, 0.0 }
 0xd08   : > { %1011 = vmatmul.f32.vlgmr.msra.gmra.mxu0 %v973_v18  ;;  %1032 = vmatmul.f32.vlgmr.msra.gmra.mxu1 %v994_v19 }
 0xd85   : > { %v1012_v20 = vpop.f32.mrf.mxu0  ;;  %v1033_v21 = vpop.f32.mrf.mxu1 }
 0xd86   : > { %v1013_v22 = vadd.f32 %v1012_v20, %v1887_v50  ;;  %v1034_v23 = vadd.f32 %v1033_v21, %v1889_v51 }
 0xd88   : > { %v1015_v24 = vmax.f32 %v1013_v22, 0.0  ;;  %v1036_v25 = vmax.f32 %v1034_v23, 0.0 }
 0xd8a   : > { %1053 = vmatmul.f32.vlgmr.msra.gmra.mxu2 %v1015_v24  ;;  %1074 = vmatmul.f32.vlgmr.msra.gmra.mxu3 %v1036_v25 }
 0xe0d   : > { %v1054_v26 = vpop.f32.mrf.mxu2  ;;  %v1075_v27 = vpop.f32.mrf.mxu3 }
 0xe0e   : > { %v1055_v28 = vadd.f32 %v1054_v26, %v1887_v50  ;;  %v1076_v29 = vadd.f32 %v1075_v27, %v1889_v51 }
 0xe10   : > { %v1057_v30 = vmax.f32 %v1055_v28, 0.0  ;;  %v1078_v31 = vmax.f32 %v1076_v29, 0.0 }
 0xe12   : > { %1095 = vmatmul.f32.vlgmr.msrb.gmra.mxu0 %v1057_v30  ;;  %1116 = vmatmul.f32.vlgmr.msrb.gmra.mxu1 %v1078_v31 }
 0xe8f   : > { %v1096_v60 = vpop.f32.mrf.mxu0  ;;  %v1117_v40 = vpop.f32.mrf.mxu1 }
 0xe90   : > { %v1097_v63 = vadd.f32 %v1096_v60, %v1887_v50  ;;  %v1118_v41 = vadd.f32 %v1117_v40, %v1889_v51 }
 0xe92   : > { %v1099_v32 = vmax.f32 %v1097_v63, 0.0  ;;  %v1120_v42 = vmax.f32 %v1118_v41, 0.0 }
 0xe94   : > { %1137 = vmatmul.f32.vlgmr.msrb.gmra.mxu2 %v1099_v32  ;;  %1158 = vmatmul.f32.vlgmr.msrb.gmra.mxu3 %v1120_v42 }
 0xf17   : > { %v1138_v33 = vpop.f32.mrf.mxu2  ;;  %v1159_v43 = vpop.f32.mrf.mxu3 }
 0xf18   : > { %v1139_v44 = vadd.f32 %v1138_v33, %v1887_v50  ;;  %v1160_v46 = vadd.f32 %v1159_v43, %v1889_v51 }
 0xf1a   : > { %v2594_v63 = vmax.f32 %v1139_v44, 0.0   ;;  %v2598_v62 = vmax.f32 %v1160_v46, 0.0  }
 0xf1c   : > { %v2631_v45 = vmov %v2594_v63  ;;  %v2632_v52 = vmov %v2598_v62 }
 0xf1d   : > { %v1163_v47 = vsub.f32 %v2631_v45, %v1099_v32  ;;  %v1174_v54 = vsub.f32 %v2632_v52, %v1120_v42  ;;  %v2634_v63 = vmov %v2631_v45 }
 0xf1f   : > { %v1164_v53 = vand.u32 2147483647, %v1163_v47  ;;  %v1175_v55 = vand.u32 2147483647, %v1174_v54 }
 0xf21   : > { %1165 = vmax.xlane.f32.xlu0 %v1164_v53 }
 0xf29   : > { %1176 = vmax.xlane.f32.xlu0 %v1175_v55 }
 0xf94   : > { %v1166_v56 = vpop.xlane.xlu0 %1165 }
 0xf95   : > { %v1167_v57 = vrot.slane %v1166_v56, 4 }
 0xf97   : > { %v1168_v34 = vmax.f32 %v1166_v56, %v1167_v57 }
 0xf99   : > { %v1169_v35 = vrot.slane %v1168_v34, 2 }
 0xf9b   : > { %v1170_v36 = vmax.f32 %v1168_v34, %v1169_v35 }
 0xf9c   : > { %v1177_v37 = vpop.xlane.xlu0 %1176 }
 0xf9d   : > { %v1178_v58 = vrot.slane %v1177_v37, 4  ;;  %v1171_v38 = vrot.slane %v1170_v36, 1 }
 0xf9f   : > { %v1179_v59 = vmax.f32 %v1177_v37, %v1178_v58  ;;  %v1172_v39 = vmax.f32 %v1170_v36, %v1171_v38 }
 0xfa1   : > { %v1180_v61 = vrot.slane %v1179_v59, 2  ;;  %1415 = vpush %v1172_v39 }
 0xfa3   : > { %v1181_v62 = vmax.f32 %v1179_v59, %v1180_v61 }
 0xfa5   : > { %v1182_v16 = vrot.slane %v1181_v62, 1 }
 0xfa7   : > { %v1183_v17 = vmax.f32 %v1181_v62, %v1182_v16  ;;  %v2633_v62 = vmov %v2632_v52 }
 0xfa9   : > { %1417 = vpush %v1183_v17 }
 0xfd2   : > { %s1416_s10 = spop %1415 }
 0xfda   : > { %s1418_s11 = spop %1417 }
 0xfdb   : > { %s1185_s13 = smax.f32 %s1418_s11, %s1416_s10 }
 0xfdc   : > { %p654_p5 = scmp.ge.f32.partialorder %s1185_s13, 3e-06 }
 0xfde   : > { %p655_p6 = pnand %p654_p5, %p653_p4 }
 0xfdf   :  { %v1218_v18 = vld [vmem:[#allocation10 + $0x78] sm:$0xff] (%p655_p6)  ;;  %v1217_v20 = vld [vmem:[#allocation10 + $0x70] sm:$0xff] (%p655_p6)  ;;  %v1216_v22 = vld [vmem:[#allocation10 + $0x68] sm:$0xff] (%p655_p6)  ;;  %s1748_s14 = smov (%p655_p6), [#allocation13]   ;;  %s1307_s0 = sshll.u32 (%p655_p6), %s2626_s6, 4  ;;  %s1308_s0 = int_to_ptr.hbm [resolvable:$true] %s1307_s0 }
 0xfe0   :  { %658 = sbr.rel (!%p655_p6) target bundleno = 2241 (0x8c1), region = 93  ;;  %v1202_v19 = vld [vmem:[#allocation8 + $0x78] sm:$0xff] (%p655_p6)  ;;  %1260 = vmatpush.msra.mxu2 (%p655_p6), %v1218_v18  ;;  %v1201_v21 = vld [vmem:[#allocation8 + $0x70] sm:$0xff] (%p655_p6)  ;;  %v1200_v23 = vld [vmem:[#allocation8 + $0x68] sm:$0xff] (%p655_p6)  ;;  %1219 = vmatpush.msra.mxu0 (%p655_p6), %v1218_v18  ;;  %s1305_s15 = sshll.u32 (%p655_p6), %s1748_s14, 4  ;;  %s1306_s15 = int_to_ptr.vmem [resolvable:$true] %s1305_s15 }
 0xfe1   :  { %1280 = vmatpush.msra.mxu3 (%p655_p6), %v1202_v19  ;;  %1239 = vmatpush.msra.mxu1 (%p655_p6), %v1202_v19  ;;  %v1215_v24 = vld [vmem:[#allocation10 + $0x60] sm:$0xff] (%p655_p6)  ;;  %v1214_v26 = vld [vmem:[#allocation10 + $0x58] sm:$0xff] (%p655_p6)  ;;  %v1213_v0 = vld [vmem:[#allocation10 + $0x50] sm:$0xff] (%p655_p6) }
 0xfe2   :  { %1261 = vmatpush.msra.mxu2 (%p655_p6), %v1217_v20  ;;  %v1199_v25 = vld [vmem:[#allocation8 + $0x60] sm:$0xff] (%p655_p6)  ;;  %1220 = vmatpush.msra.mxu0 (%p655_p6), %v1217_v20  ;;  %v1198_v27 = vld [vmem:[#allocation8 + $0x58] sm:$0xff] (%p655_p6)  ;;  %v1197_v1 = vld [vmem:[#allocation8 + $0x50] sm:$0xff] (%p655_p6) }
 0xfe3   :  { %1281 = vmatpush.msra.mxu3 (%p655_p6), %v1201_v21  ;;  %1240 = vmatpush.msra.mxu1 (%p655_p6), %v1201_v21  ;;  %v1212_v2 = vld [vmem:[#allocation10 + $0x48] sm:$0xff] (%p655_p6)  ;;  %v1211_v4 = vld [vmem:[#allocation10 + $0x40] sm:$0xff] (%p655_p6)  ;;  %v1210_v6 = vld [vmem:[#allocation10 + $0x38] sm:$0xff] (%p655_p6) }
 0xfe4   :  { %1262 = vmatpush.msra.mxu2 (%p655_p6), %v1216_v22  ;;  %1221 = vmatpush.msra.mxu0 (%p655_p6), %v1216_v22  ;;  %v1196_v3 = vld [vmem:[#allocation8 + $0x48] sm:$0xff] (%p655_p6)  ;;  %v1195_v5 = vld [vmem:[#allocation8 + $0x40] sm:$0xff] (%p655_p6)  ;;  %v1194_v7 = vld [vmem:[#allocation8 + $0x38] sm:$0xff] (%p655_p6) }
 0xfe5   :  { %1282 = vmatpush.msra.mxu3 %v1200_v23  ;;  %1241 = vmatpush.msra.mxu1 %v1200_v23  ;;  %v1209_v8 = vld [vmem:[#allocation10 + $0x30] sm:$0xff]  ;;  %v1208_v10 = vld [vmem:[#allocation10 + $0x28] sm:$0xff]  ;;  %v1207_v12 = vld [vmem:[#allocation10 + $0x20] sm:$0xff] }
 0xfe6   :  { %1263 = vmatpush.msra.mxu2 %v1215_v24  ;;  %1222 = vmatpush.msra.mxu0 %v1215_v24  ;;  %v1193_v9 = vld [vmem:[#allocation8 + $0x30] sm:$0xff]  ;;  %v1192_v11 = vld [vmem:[#allocation8 + $0x28] sm:$0xff]  ;;  %v1191_v13 = vld [vmem:[#allocation8 + $0x20] sm:$0xff] }
 0xfe7   :  { %1283 = vmatpush.msra.mxu3 %v1199_v25  ;;  %1242 = vmatpush.msra.mxu1 %v1199_v25  ;;  %v1206_v14 = vld [vmem:[#allocation10 + $0x18] sm:$0xff]  ;;  %v1205_v50 = vld [vmem:[#allocation10 + $0x10] sm:$0xff]  ;;  %v1204_v28 = vld [vmem:[#allocation10 + $0x8] sm:$0xff] }
 0xfe8   :  { %1264 = vmatpush.msra.mxu2 %v1214_v26  ;;  %1223 = vmatpush.msra.mxu0 %v1214_v26  ;;  %v1190_v15 = vld [vmem:[#allocation8 + $0x18] sm:$0xff]  ;;  %v1189_v51 = vld [vmem:[#allocation8 + $0x10] sm:$0xff]  ;;  %v1188_v29 = vld [vmem:[#allocation8 + $0x8] sm:$0xff] }
 0xfe9   :  { %1284 = vmatpush.msra.mxu3 %v1198_v27  ;;  %1243 = vmatpush.msra.mxu1 %v1198_v27  ;;  %v1203_v30 = vld [vmem:[#allocation10] sm:$0xff] }
 0xfea   :  { %1265 = vmatpush.msra.mxu2 %v1213_v0  ;;  %1224 = vmatpush.msra.mxu0 %v1213_v0  ;;  %v1187_v31 = vld [vmem:[#allocation8] sm:$0xff] }
 0xfeb   :  { %1285 = vmatpush.msra.mxu3 %v1197_v1  ;;  %1244 = vmatpush.msra.mxu1 %v1197_v1 }
 0xfec   :  { %1266 = vmatpush.msra.mxu2 %v1212_v2  ;;  %1225 = vmatpush.msra.mxu0 %v1212_v2 }
 0xfed   :  { %1286 = vmatpush.msra.mxu3 %v1196_v3  ;;  %1245 = vmatpush.msra.mxu1 %v1196_v3 }
 0xfee   :  { %1267 = vmatpush.msra.mxu2 %v1211_v4  ;;  %1226 = vmatpush.msra.mxu0 %v1211_v4 }
 0xfef   :  { %1287 = vmatpush.msra.mxu3 %v1195_v5  ;;  %1246 = vmatpush.msra.mxu1 %v1195_v5 }
 0xff0   :  { %1268 = vmatpush.msra.mxu2 %v1210_v6  ;;  %1227 = vmatpush.msra.mxu0 %v1210_v6 }
 0xff1   :  { %1288 = vmatpush.msra.mxu3 %v1194_v7  ;;  %1247 = vmatpush.msra.mxu1 %v1194_v7 }
 0xff2   :  { %1269 = vmatpush.msra.mxu2 %v1209_v8  ;;  %1228 = vmatpush.msra.mxu0 %v1209_v8 }
 0xff3   :  { %1289 = vmatpush.msra.mxu3 %v1193_v9  ;;  %1248 = vmatpush.msra.mxu1 %v1193_v9 }
 0xff4   :  { %1270 = vmatpush.msra.mxu2 %v1208_v10  ;;  %1229 = vmatpush.msra.mxu0 %v1208_v10 }
 0xff5   :  { %1290 = vmatpush.msra.mxu3 %v1192_v11  ;;  %1249 = vmatpush.msra.mxu1 %v1192_v11 }
 0xff6   :  { %1271 = vmatpush.msra.mxu2 %v1207_v12  ;;  %1230 = vmatpush.msra.mxu0 %v1207_v12 }
 0xff7   :  { %1291 = vmatpush.msra.mxu3 %v1191_v13  ;;  %1250 = vmatpush.msra.mxu1 %v1191_v13 }
 0xff8   :  { %1272 = vmatpush.msra.mxu2 %v1206_v14  ;;  %1231 = vmatpush.msra.mxu0 %v1206_v14 }
 0xff9   :  { %1292 = vmatpush.msra.mxu3 %v1190_v15  ;;  %1251 = vmatpush.msra.mxu1 %v1190_v15 }
 0xffa   :  { %1273 = vmatpush.msra.mxu2 %v1205_v50  ;;  %1232 = vmatpush.msra.mxu0 %v1205_v50 }
 0xffb   :  { %1293 = vmatpush.msra.mxu3 %v1189_v51  ;;  %1252 = vmatpush.msra.mxu1 %v1189_v51 }
 0xffc   :  { %1274 = vmatpush.msra.mxu2 %v1204_v28  ;;  %1233 = vmatpush.msra.mxu0 %v1204_v28 }
 0xffd   :  { %1294 = vmatpush.msra.mxu3 %v1188_v29  ;;  %1253 = vmatpush.msra.mxu1 %v1188_v29 }
 0xffe   :  { %1275 = vmatpush.msra.mxu2 %v1203_v30  ;;  %1234 = vmatpush.msra.mxu0 %v1203_v30 }
 0xfff   :  { %1295 = vmatpush.msra.mxu3 %v1187_v31  ;;  %1276 = vmatmul.f32.vlgmr.msra.gmra.mxu2 %v1883_v49 }
0x1000   :  { %1296 = vmatmul.f32.vlgmr.msra.gmra.mxu3 %v2632_v52  ;;  %1254 = vmatpush.msra.mxu1 %v1187_v31 }
0x1001   :  { %1235 = vmatmul.f32.vlgmr.msra.gmra.mxu0 %v1881_v48  ;;  %1255 = vmatmul.f32.vlgmr.msra.gmra.mxu1 %v2631_v45 }
0x107e   :  { %v1236_v60 = vpop.f32.mrf.mxu0  ;;  %v1256_v40 = vpop.f32.mrf.mxu1 }
0x107f   :  { %v1257_v63 = vadd.f32 %v1256_v40, %v1236_v60 }
0x1081   :  { %1259 = vst [vmem:[#allocation13] sm:$0xff] %v1257_v63 }
0x1082   :  { %v1277_v41 = vpop.f32.mrf.mxu2 }
0x1083   :  { %v1297_v49 = vpop.f32.mrf.mxu3 }
0x1084   :  { %v1298_v32 = vadd.f32 %v1297_v49, %v1277_v41 }
0x1086   :  { %1300 = vst [vmem:[#allocation13 + $0x8] sm:$0xff] %v1298_v32 }
0x1087   :  { %1313 = dma.vmem_to_hbm [thread:$0]  %s1306_s15, 256, %s1308_s0, [#allocation4], %s1741_s1, %s1741_s1, %s1742_s12  }
0x1088   :  { %1703 = dma.done.wait [#allocation4], 256  }
0x1089   :  { %1704 = vsyncadd [#allocation4], 4294967040 }
0x108a   :  { %1318 = vsyncpa [#allocation3], 1 }
0x108b   :  { %1319 = vsyncpa [#allocation6], 1 }
0x108c   :  { %1320 = vsyncpa [#allocation9], 1 }
0x108d   :  { %1321 = vsyncpa [#allocation12], 1 }
0x108e   :  { %1322 = vsyncpa [#allocation4], 1 }

</bundles_post_ra>
